<compile_context>
chip_gen: v7x
topology: tpu7x:2x2x1
jax: 0.10.0
libtpu: 0.0.40
codegen_flags: <defaults>
</compile_context>

<pallas_src>
import jax
import jax.numpy as jnp
from jax.experimental import pallas as pl
from jax.experimental.pallas import tpu as pltpu

BN_EPS = 1e-5


def _rup(x, m):
    return ((x + m - 1) // m) * m


def _pad_to(a, shape):
    pads = [(0, s - d) for d, s in zip(a.shape, shape)]
    if any(p[1] for p in pads):
        return jnp.pad(a, pads)
    return a


def _quant_int8_cols(w):
    """Symmetric per-output-channel (per-column) int8 quantization."""
    amax = jnp.max(jnp.abs(w), axis=0, keepdims=True)
    scale = jnp.where(amax > 0, amax / 127.0, 1.0).astype(jnp.float32)
    q = jnp.clip(jnp.round(w / scale), -127.0, 127.0).astype(jnp.int8)
    return q, scale


def _bn_train(x, gamma, beta):
    # torch.nn.BatchNorm1d forward in training mode: biased batch statistics.
    mu = jnp.mean(x, axis=0, keepdims=True)
    var = jnp.mean((x - mu) ** 2, axis=0, keepdims=True)
    return (x - mu) * jax.lax.rsqrt(var + BN_EPS) * gamma + beta


# ----------------------------- Pallas kernel ------------------------------
def _make_kernel(B, Bp):
    """B = real batch size, Bp = batch padded to a multiple of 8 sublanes."""
    bf16 = jnp.bfloat16

    def kernel(lang_ref, vis_ref,
               bnl_g, bnl_b, wl_q, sl, bl,
               bnv_g, bnv_b, wv_q, sv, bv,
               wc1_q, sc1, bc1, bnc_g, bnc_b, wc2_q, sc2, bc2,
               vis_emb_ref, lang_emb_ref, logits_v_ref, logits_l_ref,
               lcat, xcat, acc):
        j = pl.program_id(0)
        nj = pl.num_programs(0)
        inv_b = 1.0 / B

        def bn_masked(x, g, b):
            # Training-mode BN whose batch statistics ignore padded batch rows.
            # (iota/mask built here so it only exists inside pl.when blocks.)
            row = jax.lax.broadcasted_iota(jnp.int32, (x.shape[0], 1), 0)
            bmask = (row < B).astype(jnp.float32)
            mu = jnp.sum(x * bmask, axis=0, keepdims=True) * inv_b
            d = (x - mu) * bmask
            var = jnp.sum(d * d, axis=0, keepdims=True) * inv_b
            return (x - mu) * jax.lax.rsqrt(var + BN_EPS) * g + b

        # ---- step 0: pooling + input BatchNorms (cached), accumulator init ----
        @pl.when(j == 0)
        def _init():
            lang_h = lang_ref[...].astype(jnp.float32)          # [Bp, T, Dl]
            l1 = jnp.mean(lang_h, axis=1)                       # [Bp, Dl]
            l2 = jnp.max(lang_h, axis=1)                        # [Bp, Dl]
            lc = jnp.concatenate([l1, l2], axis=1)              # [Bp, 2*Dl]
            lcat[...] = bn_masked(lc, bnl_g[...], bnl_b[...]).astype(bf16)

            vis_h = vis_ref[...].astype(jnp.float32)            # [Bp, HW, C]
            x1 = jnp.mean(vis_h, axis=1)                        # [Bp, C]
            x2 = jnp.max(vis_h, axis=1)                         # [Bp, C]
            xc = jnp.concatenate([x1, x2], axis=1)              # [Bp, 2*C]
            xcat[...] = bn_masked(xc, bnv_g[...], bnv_b[...]).astype(bf16)

            acc[...] = jnp.zeros_like(acc)

        # ---- per-tile: lang_fc / visual_fc columns (int8 weights, dequant
        #      via per-output-channel scale applied to the f32 dot result) ----
        lang_t = (jnp.dot(lcat[...], wl_q[...].astype(bf16),
                          preferred_element_type=jnp.float32) * sl[...] + bl[...])
        vis_t = (jnp.dot(xcat[...], wv_q[...].astype(bf16),
                         preferred_element_type=jnp.float32) * sv[...] + bv[...])

        # Shared ClassBlock bottleneck: push this wc1 row-tile ONCE for both
        # branches by stacking lang and visual rows (scale applied at finalize).
        stacked = jnp.concatenate([lang_t, vis_t], axis=0).astype(bf16)
        acc[...] += jnp.dot(stacked, wc1_q[...].astype(bf16),
                            preferred_element_type=jnp.float32)

        # ---- last step: per-branch BN(Nb), classifier, stores ----
        @pl.when(j == nj - 1)
        def _finalize():
            f = acc[...] * sc1[...] + bc1[...]                  # [2*Bp, Nbp]
            f_l = bn_masked(f[:Bp], bnc_g[...], bnc_b[...])     # per-branch stats
            f_v = bn_masked(f[Bp:], bnc_g[...], bnc_b[...])
            lang_emb_ref[...] = f_l
            vis_emb_ref[...] = f_v

            f_stack = jnp.concatenate([f_l, f_v], axis=0).astype(bf16)
            logits = (jnp.dot(f_stack, wc2_q[...].astype(bf16),
                              preferred_element_type=jnp.float32)
                      * sc2[...] + bc2[...])
            logits_l_ref[...] = logits[:Bp]
            logits_v_ref[...] = logits[Bp:]

    return kernel


# ------------------------------- wrapper -----------------------------------
def siamese_head(lang_hidden, vis_feat, params, *, tile_m=1024,
                 vmem_limit_bytes=48 * 1024 * 1024, vis_channels_last=False):
    """Forward pass of SiameseBaselineModel after the two backbones.

    Returns (visual_embeds, lang_embeds, predict_class_v, predict_class_l),
    matching the PyTorch forward's return order.

    tile_m: mid_dim tile width. 1024 (default) fits v7x's 64 MiB VMEM with
    int8 weights double-buffered; use 2048 + vmem_limit_bytes~96 MiB on
    v5e/v6e (128 MiB VMEM) to cut per-step pipeline overhead further.
    """
    B, T, Dl = lang_hidden.shape
    if vis_channels_last:
        _, HW, C = vis_feat.shape
        vis = vis_feat
    else:
        # TODO(synk): have the conv backbone emit NHWC / [B, HW, C] directly so
        # this standalone transpose (extra HBM read+write) disappears.
        _, C, H, W = vis_feat.shape
        HW = H * W
        vis = jnp.transpose(vis_feat.reshape(B, C, HW), (0, 2, 1))

    M = params["wl"].shape[1]
    Nb = params["wc1"].shape[1]
    NC = params["wc2"].shape[1]

    Bp = _rup(B, 8)                      # sublane-aligned batch
    Nbp = _rup(Nb, 128)                  # lane-dense bottleneck
    NCp = _rup(NC, 128)                  # lane-dense logits (2498 -> 2560)
    TM = min(tile_m, _rup(M, 128))       # mid_dim tile width
    Mp = _rup(M, TM)
    grid_m = Mp // TM

    bf16 = jnp.bfloat16

    # Activations in bf16 (kernel upcasts to f32 for pooling/BN).
    lang_p = _pad_to(lang_hidden.astype(bf16), (Bp, T, Dl))
    vis_p = _pad_to(vis.astype(bf16), (Bp, HW, C))

    # Weight-only int8 quantization (per-output-channel scales), then padding.
    p = params
    wl_q, sl = _quant_int8_cols(p["wl"])
    wl_q, sl = _pad_to(wl_q, (2 * Dl, Mp)), _pad_to(sl, (1, Mp))
    wv_q, sv = _quant_int8_cols(p["wv"])
    wv_q, sv = _pad_to(wv_q, (2 * C, Mp)), _pad_to(sv, (1, Mp))
    bl = _pad_to(p["bl"], (1, Mp))
    bv = _pad_to(p["bv"], (1, Mp))
    wc1_q, sc1 = _quant_int8_cols(p["wc1"])
    wc1_q, sc1 = _pad_to(wc1_q, (Mp, Nbp)), _pad_to(sc1, (1, Nbp))
    bc1 = _pad_to(p["bc1"], (1, Nbp))
    bnc_g = _pad_to(p["bnc_g"], (1, Nbp))
    bnc_b = _pad_to(p["bnc_b"], (1, Nbp))
    wc2_q, sc2 = _quant_int8_cols(p["wc2"])
    wc2_q, sc2 = _pad_to(wc2_q, (Nbp, NCp)), _pad_to(sc2, (1, NCp))
    bc2 = _pad_to(p["bc2"], (1, NCp))

    ins = (lang_p, vis_p,
           p["bnl_g"], p["bnl_b"], wl_q, sl, bl,
           p["bnv_g"], p["bnv_b"], wv_q, sv, bv,
           wc1_q, sc1, bc1, bnc_g, bnc_b, wc2_q, sc2, bc2)

    def _in_specs(single_buffer_constants):
        # Constant-index blocks never change block index across the grid, so a
        # single buffer suffices (frees VMEM for the streamed weight tiles).
        cbuf = ({"pipeline_mode": pl.Buffered(1)}
                if single_buffer_constants else {})

        def const2(shape):
            return pl.BlockSpec(shape, lambda j: (0, 0), **cbuf)

        def const3(shape):
            return pl.BlockSpec(shape, lambda j: (0, 0, 0), **cbuf)

        def mcol(shape):  # tile the second (M) axis
            return pl.BlockSpec(shape, lambda j: (0, j))

        def mrow(shape):  # tile the first (M) axis
            return pl.BlockSpec(shape, lambda j: (j, 0))

        return [
            const3((Bp, T, Dl)), const3((Bp, HW, C)),
            const2((1, 2 * Dl)), const2((1, 2 * Dl)),
            mcol((2 * Dl, TM)), mcol((1, TM)), mcol((1, TM)),
            const2((1, 2 * C)), const2((1, 2 * C)),
            mcol((2 * C, TM)), mcol((1, TM)), mcol((1, TM)),
            mrow((TM, Nbp)), const2((1, Nbp)), const2((1, Nbp)),
            const2((1, Nbp)), const2((1, Nbp)),
            const2((Nbp, NCp)), const2((1, NCp)), const2((1, NCp)),
        ]

    out_shape = (
        jax.ShapeDtypeStruct((Bp, Nbp), jnp.float32),   # visual_embeds
        jax.ShapeDtypeStruct((Bp, Nbp), jnp.float32),   # lang_embeds
        jax.ShapeDtypeStruct((Bp, NCp), jnp.float32),   # predict_class_v
        jax.ShapeDtypeStruct((Bp, NCp), jnp.float32),   # predict_class_l
    )
    out_specs = (pl.BlockSpec((Bp, Nbp), lambda j: (0, 0)),
                 pl.BlockSpec((Bp, Nbp), lambda j: (0, 0)),
                 pl.BlockSpec((Bp, NCp), lambda j: (0, 0)),
                 pl.BlockSpec((Bp, NCp), lambda j: (0, 0)))

    scratch_shapes = [
        pltpu.VMEM((Bp, 2 * Dl), bf16),              # BN'd cat(mean,max) lang
        pltpu.VMEM((Bp, 2 * C), bf16),               # BN'd cat(avg,max) visual
        pltpu.VMEM((2 * Bp, Nbp), jnp.float32),      # shared wc1 accumulator
    ]

    kernel = _make_kernel(B, Bp)

    def _attempt(single_buffer_constants):
        return pl.pallas_call(
            kernel,
            out_shape=out_shape,
            grid_spec=pltpu.PrefetchScalarGridSpec(
                num_scalar_prefetch=0,
                grid=(grid_m,),
                in_specs=_in_specs(single_buffer_constants),
                out_specs=out_specs,
                scratch_shapes=scratch_shapes,
            ),
            compiler_params=pltpu.CompilerParams(
                dimension_semantics=("arbitrary",),   # M axis carries the wc1 reduction
                vmem_limit_bytes=vmem_limit_bytes,
            ),
        )(*ins)

    try:
        outs = _attempt(True)
    except Exception:
        # pipeline_mode=pl.Buffered(1) (single-buffering of constant blocks, a
        # VMEM-headroom optimization) is not accepted by every jax version —
        # fall back to default double-buffering, which is always valid.
        outs = _attempt(False)

    vis_emb, lang_emb, logits_v, logits_l = outs
    return (vis_emb[:B, :Nb], lang_emb[:B, :Nb],
            logits_v[:B, :NC], logits_l[:B, :NC])


# ------------------------- reference (plain JAX) -------------------------
def siamese_head_ref(lang_hidden, vis_feat_nchw, p):
    """Mirrors the kernel's bf16-activation / int8-weight math exactly."""
    B, T, Dl = lang_hidden.shape
    _, C, H, W = vis_feat_nchw.shape
    bf16 = jnp.bfloat16

    lang_h = lang_hidden.astype(bf16).astype(jnp.float32)
    vis = vis_feat_nchw.reshape(B, C, H * W).astype(bf16).astype(jnp.float32)

    l1 = jnp.mean(lang_h, axis=1)
    l2 = jnp.max(lang_h, axis=1)
    x1 = jnp.mean(vis, axis=2)
    x2 = jnp.max(vis, axis=2)

    lc = _bn_train(jnp.concatenate([l1, l2], axis=1), p["bnl_g"], p["bnl_b"])
    xc = _bn_train(jnp.concatenate([x1, x2], axis=1), p["bnv_g"], p["bnv_b"])

    def qdot(x, w):  # int8 weight, bf16 LHS, per-column dequant after the dot
        q, s = _quant_int8_cols(w)
        return jnp.dot(x.astype(bf16), q.astype(bf16),
                       preferred_element_type=jnp.float32) * s

    lang = qdot(lc, p["wl"]) + p["bl"]
    visual = qdot(xc, p["wv"]) + p["bv"]

    def classblock(x):
        f = qdot(x, p["wc1"]) + p["bc1"]
        f = _bn_train(f, p["bnc_g"], p["bnc_b"])
        return qdot(f, p["wc2"]) + p["bc2"], f

    logits_l, f_l = classblock(lang)
    logits_v, f_v = classblock(visual)
    return f_v, f_l, logits_v, logits_l


# ------------------------- deterministic init -------------------------
def init_params(key, Dl, C, M, Nb, NC):
    ks = jax.random.split(key, 8)

    def lin_w(k, fin, fout):  # kaiming-normal, fan_out-ish
        return (jax.random.normal(k, (fin, fout), jnp.float32)
                * jnp.sqrt(2.0 / fout))

    def bn_g(k, f):  # weights_init_kaiming: BN weight ~ N(1, 0.02), bias = 0
        return 1.0 + 0.02 * jax.random.normal(k, (1, f), jnp.float32)

    return {
        # lang_fc: BatchNorm1d(2*Dl) + Linear(2*Dl, M)
        "bnl_g": bn_g(ks[0], 2 * Dl), "bnl_b": jnp.zeros((1, 2 * Dl), jnp.float32),
        "wl": lin_w(ks[1], 2 * Dl, M), "bl": jnp.zeros((1, M), jnp.float32),
        # visual_fc: BatchNorm1d(2*C) + Linear(2*C, M)
        "bnv_g": bn_g(ks[2], 2 * C), "bnv_b": jnp.zeros((1, 2 * C), jnp.float32),
        "wv": lin_w(ks[3], 2 * C, M), "bv": jnp.zeros((1, M), jnp.float32),
        # ClassBlock: Linear(M, Nb) + BN(Nb) -> feature, Linear(Nb, NC) -> logits
        "wc1": lin_w(ks[4], M, Nb), "bc1": jnp.zeros((1, Nb), jnp.float32),
        "bnc_g": bn_g(ks[5], Nb), "bnc_b": jnp.zeros((1, Nb), jnp.float32),
        "wc2": lin_w(ks[6], Nb, NC), "bc2": jnp.zeros((1, NC), jnp.float32),
    }


if __name__ == "__main__":
    # Small shapes consistent with the module structure (scaled down), chosen
    # deliberately non-aligned to exercise the padding + multi-tile grid paths:
    #   Dl = 64   stands in for 768   (roberta hidden)
    #   C  = 32   stands in for 2048  (resnet50 feature channels)
    #   M  = 192  stands in for 4096  (mid_dim)    -> 2 tiles with tile_m=128
    #   Nb = 96   stands in for 512   (ClassBlock bottleneck) -> padded to 128
    #   NC = 250  stands in for 2498  (class_num)             -> padded to 256
    B, T, Dl = 2, 8, 64
    C, H, W = 32, 4, 4
    M, Nb, NC = 192, 96, 250

    key = jax.random.PRNGKey(0)
    k_lang, k_vis, k_par = jax.random.split(key, 3)

    # Stand-ins for backbone outputs (see TODO(synk) at top).
    lang_hidden = jax.random.normal(k_lang, (B, T, Dl), jnp.float32)
    visual_features = jax.random.normal(k_vis, (B, C, H, W), jnp.float32)

    params = init_params(k_par, Dl, C, M, Nb, NC)

    outs = siamese_head(lang_hidden, visual_features, params, tile_m=128)
    outs = jax.block_until_ready(outs)
    visual_embeds, lang_embeds, predict_class_v, predict_class_l = outs

    # Cross-check against a plain-JAX reference of the same quantized math.
    refs = siamese_head_ref(lang_hidden, visual_features, params)
    for got, ref in zip(outs, refs):
        assert got.shape == ref.shape
        assert jnp.allclose(got, ref, rtol=1e-2, atol=1e-2), "mismatch vs reference"

    assert visual_embeds.shape == (B, Nb)
    assert lang_embeds.shape == (B, Nb)
    assert predict_class_v.shape == (B, NC)
    assert predict_class_l.shape == (B, NC)

    print("KERNEL_OK")
</pallas_src>

<mosaic_0001>
module attributes {stable_mosaic.version = 11 : i64} {
  func.func @kernel(%arg0: i32, %arg1: memref<8x8x64xbf16, #tpu.memory_space<vmem>>, %arg2: memref<8x16x32xbf16, #tpu.memory_space<vmem>>, %arg3: memref<1x128xf32, #tpu.memory_space<vmem>>, %arg4: memref<1x128xf32, #tpu.memory_space<vmem>>, %arg5: memref<128x128xi8, #tpu.memory_space<vmem>>, %arg6: memref<1x128xf32, #tpu.memory_space<vmem>>, %arg7: memref<1x128xf32, #tpu.memory_space<vmem>>, %arg8: memref<1x64xf32, #tpu.memory_space<vmem>>, %arg9: memref<1x64xf32, #tpu.memory_space<vmem>>, %arg10: memref<64x128xi8, #tpu.memory_space<vmem>>, %arg11: memref<1x128xf32, #tpu.memory_space<vmem>>, %arg12: memref<1x128xf32, #tpu.memory_space<vmem>>, %arg13: memref<128x128xi8, #tpu.memory_space<vmem>>, %arg14: memref<1x128xf32, #tpu.memory_space<vmem>>, %arg15: memref<1x128xf32, #tpu.memory_space<vmem>>, %arg16: memref<1x128xf32, #tpu.memory_space<vmem>>, %arg17: memref<1x128xf32, #tpu.memory_space<vmem>>, %arg18: memref<128x256xi8, #tpu.memory_space<vmem>>, %arg19: memref<1x256xf32, #tpu.memory_space<vmem>>, %arg20: memref<1x256xf32, #tpu.memory_space<vmem>>, %arg21: memref<8x128xf32, #tpu.memory_space<vmem>>, %arg22: memref<8x128xf32, #tpu.memory_space<vmem>>, %arg23: memref<8x256xf32, #tpu.memory_space<vmem>>, %arg24: memref<8x256xf32, #tpu.memory_space<vmem>>, %arg25: memref<8x128xbf16, #tpu.memory_space<vmem>>, %arg26: memref<8x64xbf16, #tpu.memory_space<vmem>>, %arg27: memref<16x128xf32, #tpu.memory_space<vmem>>) attributes {dimension_semantics = [#tpu.dimension_semantics<arbitrary>], iteration_bounds = array<i64: 2>, scalar_prefetch = 0 : i64, scratch_operands = 3 : i64, tpu.core_type = #tpu.core_type<tc>, window_params = [{pipeline_mode = #tpu.pipeline_mode<synchronous>, transform_indices = @transform_0, window_bounds = array<i64: 8, 8, 64>}, {pipeline_mode = #tpu.pipeline_mode<synchronous>, transform_indices = @transform_1, window_bounds = array<i64: 8, 16, 32>}, {pipeline_mode = #tpu.pipeline_mode<synchronous>, transform_indices = @transform_2, window_bounds = array<i64: 1, 128>}, {pipeline_mode = #tpu.pipeline_mode<synchronous>, transform_indices = @transform_3, window_bounds = array<i64: 1, 128>}, {transform_indices = @transform_4, window_bounds = array<i64: 128, 128>}, {transform_indices = @transform_5, window_bounds = array<i64: 1, 128>}, {transform_indices = @transform_6, window_bounds = array<i64: 1, 128>}, {pipeline_mode = #tpu.pipeline_mode<synchronous>, transform_indices = @transform_7, window_bounds = array<i64: 1, 64>}, {pipeline_mode = #tpu.pipeline_mode<synchronous>, transform_indices = @transform_8, window_bounds = array<i64: 1, 64>}, {transform_indices = @transform_9, window_bounds = array<i64: 64, 128>}, {transform_indices = @transform_10, window_bounds = array<i64: 1, 128>}, {transform_indices = @transform_11, window_bounds = array<i64: 1, 128>}, {transform_indices = @transform_12, window_bounds = array<i64: 128, 128>}, {pipeline_mode = #tpu.pipeline_mode<synchronous>, transform_indices = @transform_13, window_bounds = array<i64: 1, 128>}, {pipeline_mode = #tpu.pipeline_mode<synchronous>, transform_indices = @transform_14, window_bounds = array<i64: 1, 128>}, {pipeline_mode = #tpu.pipeline_mode<synchronous>, transform_indices = @transform_15, window_bounds = array<i64: 1, 128>}, {pipeline_mode = #tpu.pipeline_mode<synchronous>, transform_indices = @transform_16, window_bounds = array<i64: 1, 128>}, {pipeline_mode = #tpu.pipeline_mode<synchronous>, transform_indices = @transform_17, window_bounds = array<i64: 128, 256>}, {pipeline_mode = #tpu.pipeline_mode<synchronous>, transform_indices = @transform_18, window_bounds = array<i64: 1, 256>}, {pipeline_mode = #tpu.pipeline_mode<synchronous>, transform_indices = @transform_19, window_bounds = array<i64: 1, 256>}, {pipeline_mode = #tpu.pipeline_mode<synchronous>, transform_indices = @transform_20, window_bounds = array<i64: 8, 128>}, {pipeline_mode = #tpu.pipeline_mode<synchronous>, transform_indices = @transform_21, window_bounds = array<i64: 8, 128>}, {pipeline_mode = #tpu.pipeline_mode<synchronous>, transform_indices = @transform_22, window_bounds = array<i64: 8, 256>}, {pipeline_mode = #tpu.pipeline_mode<synchronous>, transform_indices = @transform_23, window_bounds = array<i64: 8, 256>}]} {
    %c0_i32 = arith.constant 0 : i32
    %0 = arith.cmpi eq, %arg0, %c0_i32 : i32
    %1 = arith.extui %0 : i1 to i32
    %c0_i32_0 = arith.constant 0 : i32
    %2 = arith.cmpi ne, %1, %c0_i32_0 : i32
    scf.if %2 {
      %c0_25 = arith.constant 0 : index
      %c0_26 = arith.constant 0 : index
      %c0_27 = arith.constant 0 : index
      %34 = vector.load %arg1[%c0_25, %c0_26, %c0_27] : memref<8x8x64xbf16, #tpu.memory_space<vmem>>, vector<8x8x64xbf16>
      %35 = arith.extf %34 : vector<8x8x64xbf16> to vector<8x8x64xf32>
      %cst_28 = arith.constant dense<0.000000e+00> : vector<8x64xf32>
      %36 = vector.multi_reduction <add>, %35, %cst_28 [1] : vector<8x8x64xf32> to vector<8x64xf32>
      %cst_29 = arith.constant 8.000000e+00 : f32
      %37 = vector.broadcast %cst_29 : f32 to vector<8x64xf32>
      %38 = arith.divf %36, %37 : vector<8x64xf32>
      %cst_30 = arith.constant dense<0xFF800000> : vector<8x64xf32>
      %39 = vector.multi_reduction <maximumf>, %35, %cst_30 [1] : vector<8x8x64xf32> to vector<8x64xf32>
      %40 = tpu.concatenate %38, %39 in 1 : vector<8x64xf32>, vector<8x64xf32> -> vector<8x128xf32>
      %c0_31 = arith.constant 0 : index
      %c0_32 = arith.constant 0 : index
      %41 = vector.load %arg3[%c0_31, %c0_32] : memref<1x128xf32, #tpu.memory_space<vmem>>, vector<1x128xf32>
      %c0_33 = arith.constant 0 : index
      %c0_34 = arith.constant 0 : index
      %42 = vector.load %arg4[%c0_33, %c0_34] : memref<1x128xf32, #tpu.memory_space<vmem>>, vector<1x128xf32>
      %43 = tpu.iota {dimensions = array<i32: 0>} : vector<8x1xi32>
      %c2_i32 = arith.constant 2 : i32
      %44 = vector.broadcast %c2_i32 : i32 to vector<8x1xi32>
      %45 = arith.cmpi slt, %43, %44 : vector<8x1xi32>
      %46 = arith.extui %45 : vector<8x1xi1> to vector<8x1xi32>
      %47 = arith.sitofp %46 : vector<8x1xi32> to vector<8x1xf32>
      %48 = vector.broadcast %47 : vector<8x1xf32> to vector<8x128xf32>
      %49 = arith.mulf %40, %48 : vector<8x128xf32>
      %cst_35 = arith.constant dense<0.000000e+00> : vector<128xf32>
      %50 = vector.multi_reduction <add>, %49, %cst_35 [0] : vector<8x128xf32> to vector<128xf32>
      %51 = vector.shape_cast %50 : vector<128xf32> to vector<1x128xf32>
      %cst_36 = arith.constant 5.000000e-01 : f32
      %52 = vector.broadcast %cst_36 : f32 to vector<1x128xf32>
      %53 = arith.mulf %51, %52 : vector<1x128xf32>
      %54 = vector.broadcast %53 : vector<1x128xf32> to vector<8x128xf32>
      %55 = arith.subf %40, %54 : vector<8x128xf32>
      %56 = vector.broadcast %47 : vector<8x1xf32> to vector<8x128xf32>
      %57 = arith.mulf %55, %56 : vector<8x128xf32>
      %58 = arith.mulf %57, %57 : vector<8x128xf32>
      %cst_37 = arith.constant dense<0.000000e+00> : vector<128xf32>
      %59 = vector.multi_reduction <add>, %58, %cst_37 [0] : vector<8x128xf32> to vector<128xf32>
      %60 = vector.shape_cast %59 : vector<128xf32> to vector<1x128xf32>
      %cst_38 = arith.constant 5.000000e-01 : f32
      %61 = vector.broadcast %cst_38 : f32 to vector<1x128xf32>
      %62 = arith.mulf %60, %61 : vector<1x128xf32>
      %63 = vector.broadcast %53 : vector<1x128xf32> to vector<8x128xf32>
      %64 = arith.subf %40, %63 : vector<8x128xf32>
      %cst_39 = arith.constant 9.99999974E-6 : f32
      %65 = vector.broadcast %cst_39 : f32 to vector<1x128xf32>
      %66 = arith.addf %62, %65 : vector<1x128xf32>
      %67 = math.rsqrt %66 : vector<1x128xf32>
      %68 = vector.broadcast %67 : vector<1x128xf32> to vector<8x128xf32>
      %69 = arith.mulf %64, %68 : vector<8x128xf32>
      %70 = vector.broadcast %41 : vector<1x128xf32> to vector<8x128xf32>
      %71 = arith.mulf %69, %70 : vector<8x128xf32>
      %72 = vector.broadcast %42 : vector<1x128xf32> to vector<8x128xf32>
      %73 = arith.addf %71, %72 : vector<8x128xf32>
      %74 = arith.truncf %73 : vector<8x128xf32> to vector<8x128xbf16>
      %c0_40 = arith.constant 0 : index
      %c0_41 = arith.constant 0 : index
      %75 = vector.load %arg25[%c0_40, %c0_41] : memref<8x128xbf16, #tpu.memory_space<vmem>>, vector<8x128xbf16>
      tpu.vector_store %arg25[%c0_40, %c0_41], %74 {strides = array<i32>} : memref<8x128xbf16, #tpu.memory_space<vmem>>, vector<8x128xbf16>,
      %c0_42 = arith.constant 0 : index
      %c0_43 = arith.constant 0 : index
      %c0_44 = arith.constant 0 : index
      %76 = vector.load %arg2[%c0_42, %c0_43, %c0_44] : memref<8x16x32xbf16, #tpu.memory_space<vmem>>, vector<8x16x32xbf16>
      %77 = arith.extf %76 : vector<8x16x32xbf16> to vector<8x16x32xf32>
      %cst_45 = arith.constant dense<0.000000e+00> : vector<8x32xf32>
      %78 = vector.multi_reduction <add>, %77, %cst_45 [1] : vector<8x16x32xf32> to vector<8x32xf32>
      %cst_46 = arith.constant 1.600000e+01 : f32
      %79 = vector.broadcast %cst_46 : f32 to vector<8x32xf32>
      %80 = arith.divf %78, %79 : vector<8x32xf32>
      %cst_47 = arith.constant dense<0xFF800000> : vector<8x32xf32>
      %81 = vector.multi_reduction <maximumf>, %77, %cst_47 [1] : vector<8x16x32xf32> to vector<8x32xf32>
      %82 = tpu.concatenate %80, %81 in 1 : vector<8x32xf32>, vector<8x32xf32> -> vector<8x64xf32>
      %c0_48 = arith.constant 0 : index
      %c0_49 = arith.constant 0 : index
      %83 = vector.load %arg8[%c0_48, %c0_49] : memref<1x64xf32, #tpu.memory_space<vmem>>, vector<1x64xf32>
      %c0_50 = arith.constant 0 : index
      %c0_51 = arith.constant 0 : index
      %84 = vector.load %arg9[%c0_50, %c0_51] : memref<1x64xf32, #tpu.memory_space<vmem>>, vector<1x64xf32>
      %85 = tpu.iota {dimensions = array<i32: 0>} : vector<8x1xi32>
      %c2_i32_52 = arith.constant 2 : i32
      %86 = vector.broadcast %c2_i32_52 : i32 to vector<8x1xi32>
      %87 = arith.cmpi slt, %85, %86 : vector<8x1xi32>
      %88 = arith.extui %87 : vector<8x1xi1> to vector<8x1xi32>
      %89 = arith.sitofp %88 : vector<8x1xi32> to vector<8x1xf32>
      %90 = vector.broadcast %89 : vector<8x1xf32> to vector<8x64xf32>
      %91 = arith.mulf %82, %90 : vector<8x64xf32>
      %cst_53 = arith.constant dense<0.000000e+00> : vector<64xf32>
      %92 = vector.multi_reduction <add>, %91, %cst_53 [0] : vector<8x64xf32> to vector<64xf32>
      %93 = vector.shape_cast %92 : vector<64xf32> to vector<1x64xf32>
      %cst_54 = arith.constant 5.000000e-01 : f32
      %94 = vector.broadcast %cst_54 : f32 to vector<1x64xf32>
      %95 = arith.mulf %93, %94 : vector<1x64xf32>
      %96 = vector.broadcast %95 : vector<1x64xf32> to vector<8x64xf32>
      %97 = arith.subf %82, %96 : vector<8x64xf32>
      %98 = vector.broadcast %89 : vector<8x1xf32> to vector<8x64xf32>
      %99 = arith.mulf %97, %98 : vector<8x64xf32>
      %100 = arith.mulf %99, %99 : vector<8x64xf32>
      %cst_55 = arith.constant dense<0.000000e+00> : vector<64xf32>
      %101 = vector.multi_reduction <add>, %100, %cst_55 [0] : vector<8x64xf32> to vector<64xf32>
      %102 = vector.shape_cast %101 : vector<64xf32> to vector<1x64xf32>
      %cst_56 = arith.constant 5.000000e-01 : f32
      %103 = vector.broadcast %cst_56 : f32 to vector<1x64xf32>
      %104 = arith.mulf %102, %103 : vector<1x64xf32>
      %105 = vector.broadcast %95 : vector<1x64xf32> to vector<8x64xf32>
      %106 = arith.subf %82, %105 : vector<8x64xf32>
      %cst_57 = arith.constant 9.99999974E-6 : f32
      %107 = vector.broadcast %cst_57 : f32 to vector<1x64xf32>
      %108 = arith.addf %104, %107 : vector<1x64xf32>
      %109 = math.rsqrt %108 : vector<1x64xf32>
      %110 = vector.broadcast %109 : vector<1x64xf32> to vector<8x64xf32>
      %111 = arith.mulf %106, %110 : vector<8x64xf32>
      %112 = vector.broadcast %83 : vector<1x64xf32> to vector<8x64xf32>
      %113 = arith.mulf %111, %112 : vector<8x64xf32>
      %114 = vector.broadcast %84 : vector<1x64xf32> to vector<8x64xf32>
      %115 = arith.addf %113, %114 : vector<8x64xf32>
      %116 = arith.truncf %115 : vector<8x64xf32> to vector<8x64xbf16>
      %c0_58 = arith.constant 0 : index
      %c0_59 = arith.constant 0 : index
      %117 = vector.load %arg26[%c0_58, %c0_59] : memref<8x64xbf16, #tpu.memory_space<vmem>>, vector<8x64xbf16>
      tpu.vector_store %arg26[%c0_58, %c0_59], %116 {strides = array<i32>} : memref<8x64xbf16, #tpu.memory_space<vmem>>, vector<8x64xbf16>,
      %cst_60 = arith.constant 0.000000e+00 : f32
      %118 = vector.broadcast %cst_60 : f32 to vector<16x128xf32>
      %c0_61 = arith.constant 0 : index
      %c0_62 = arith.constant 0 : index
      %119 = vector.load %arg27[%c0_61, %c0_62] : memref<16x128xf32, #tpu.memory_space<vmem>>, vector<16x128xf32>
      tpu.vector_store %arg27[%c0_61, %c0_62], %118 {strides = array<i32>} : memref<16x128xf32, #tpu.memory_space<vmem>>, vector<16x128xf32>,
    } else {
    }
    %c0 = arith.constant 0 : index
    %c0_1 = arith.constant 0 : index
    %3 = vector.load %arg25[%c0, %c0_1] : memref<8x128xbf16, #tpu.memory_space<vmem>>, vector<8x128xbf16>
    %c0_2 = arith.constant 0 : index
    %c0_3 = arith.constant 0 : index
    %4 = vector.load %arg5[%c0_2, %c0_3] : memref<128x128xi8, #tpu.memory_space<vmem>>, vector<128x128xi8>
    %5 = arith.sitofp %4 : vector<128x128xi8> to vector<128x128xbf16>
    %cst = arith.constant dense<0.000000e+00> : vector<8x128xf32>
    %6 = tpu.matmul %3, %5, %cst {dimension_numbers = #tpu.dot_dimension_numbers<[1], [0], [0], [1], [0, 0, 1, 1], [], []>} : vector<8x128xbf16>, vector<128x128xbf16>, vector<8x128xf32> -> vector<8x128xf32>
    %c0_4 = arith.constant 0 : index
    %c0_5 = arith.constant 0 : index
    %7 = vector.load %arg6[%c0_4, %c0_5] : memref<1x128xf32, #tpu.memory_space<vmem>>, vector<1x128xf32>
    %8 = vector.broadcast %7 : vector<1x128xf32> to vector<8x128xf32>
    %9 = arith.mulf %6, %8 : vector<8x128xf32>
    %c0_6 = arith.constant 0 : index
    %c0_7 = arith.constant 0 : index
    %10 = vector.load %arg7[%c0_6, %c0_7] : memref<1x128xf32, #tpu.memory_space<vmem>>, vector<1x128xf32>
    %11 = vector.broadcast %10 : vector<1x128xf32> to vector<8x128xf32>
    %12 = arith.addf %9, %11 : vector<8x128xf32>
    %c0_8 = arith.constant 0 : index
    %c0_9 = arith.constant 0 : index
    %13 = vector.load %arg26[%c0_8, %c0_9] : memref<8x64xbf16, #tpu.memory_space<vmem>>, vector<8x64xbf16>
    %c0_10 = arith.constant 0 : index
    %c0_11 = arith.constant 0 : index
    %14 = vector.load %arg10[%c0_10, %c0_11] : memref<64x128xi8, #tpu.memory_space<vmem>>, vector<64x128xi8>
    %15 = arith.sitofp %14 : vector<64x128xi8> to vector<64x128xbf16>
    %cst_12 = arith.constant dense<0.000000e+00> : vector<8x128xf32>
    %16 = tpu.matmul %13, %15, %cst_12 {dimension_numbers = #tpu.dot_dimension_numbers<[1], [0], [0], [1], [0, 0, 1, 1], [], []>} : vector<8x64xbf16>, vector<64x128xbf16>, vector<8x128xf32> -> vector<8x128xf32>
    %c0_13 = arith.constant 0 : index
    %c0_14 = arith.constant 0 : index
    %17 = vector.load %arg11[%c0_13, %c0_14] : memref<1x128xf32, #tpu.memory_space<vmem>>, vector<1x128xf32>
    %18 = vector.broadcast %17 : vector<1x128xf32> to vector<8x128xf32>
    %19 = arith.mulf %16, %18 : vector<8x128xf32>
    %c0_15 = arith.constant 0 : index
    %c0_16 = arith.constant 0 : index
    %20 = vector.load %arg12[%c0_15, %c0_16] : memref<1x128xf32, #tpu.memory_space<vmem>>, vector<1x128xf32>
    %21 = vector.broadcast %20 : vector<1x128xf32> to vector<8x128xf32>
    %22 = arith.addf %19, %21 : vector<8x128xf32>
    %23 = tpu.concatenate %12, %22 in 0 : vector<8x128xf32>, vector<8x128xf32> -> vector<16x128xf32>
    %24 = arith.truncf %23 : vector<16x128xf32> to vector<16x128xbf16>
    %c0_17 = arith.constant 0 : index
    %c0_18 = arith.constant 0 : index
    %25 = vector.load %arg27[%c0_17, %c0_18] : memref<16x128xf32, #tpu.memory_space<vmem>>, vector<16x128xf32>
    %c0_19 = arith.constant 0 : index
    %c0_20 = arith.constant 0 : index
    %26 = vector.load %arg13[%c0_19, %c0_20] : memref<128x128xi8, #tpu.memory_space<vmem>>, vector<128x128xi8>
    %27 = arith.sitofp %26 : vector<128x128xi8> to vector<128x128xbf16>
    %cst_21 = arith.constant dense<0.000000e+00> : vector<16x128xf32>
    %28 = tpu.matmul %24, %27, %cst_21 {dimension_numbers = #tpu.dot_dimension_numbers<[1], [0], [0], [1], [0, 0, 1, 1], [], []>} : vector<16x128xbf16>, vector<128x128xbf16>, vector<16x128xf32> -> vector<16x128xf32>
    %29 = arith.addf %25, %28 : vector<16x128xf32>
    %c0_22 = arith.constant 0 : index
    %c0_23 = arith.constant 0 : index
    %30 = vector.load %arg27[%c0_22, %c0_23] : memref<16x128xf32, #tpu.memory_space<vmem>>, vector<16x128xf32>
    tpu.vector_store %arg27[%c0_22, %c0_23], %29 {strides = array<i32>} : memref<16x128xf32, #tpu.memory_space<vmem>>, vector<16x128xf32>,
    %c1_i32 = arith.constant 1 : i32
    %31 = arith.cmpi eq, %arg0, %c1_i32 : i32
    %32 = arith.extui %31 : i1 to i32
    %c0_i32_24 = arith.constant 0 : i32
    %33 = arith.cmpi ne, %32, %c0_i32_24 : i32
    scf.if %33 {
      %c0_25 = arith.constant 0 : index
      %c0_26 = arith.constant 0 : index
      %34 = vector.load %arg27[%c0_25, %c0_26] : memref<16x128xf32, #tpu.memory_space<vmem>>, vector<16x128xf32>
      %c0_27 = arith.constant 0 : index
      %c0_28 = arith.constant 0 : index
      %35 = vector.load %arg14[%c0_27, %c0_28] : memref<1x128xf32, #tpu.memory_space<vmem>>, vector<1x128xf32>
      %36 = vector.broadcast %35 : vector<1x128xf32> to vector<16x128xf32>
      %37 = arith.mulf %34, %36 : vector<16x128xf32>
      %c0_29 = arith.constant 0 : index
      %c0_30 = arith.constant 0 : index
      %38 = vector.load %arg15[%c0_29, %c0_30] : memref<1x128xf32, #tpu.memory_space<vmem>>, vector<1x128xf32>
      %39 = vector.broadcast %38 : vector<1x128xf32> to vector<16x128xf32>
      %40 = arith.addf %37, %39 : vector<16x128xf32>
      %41 = vector.extract_strided_slice %40 {offsets = [0, 0], sizes = [8, 128], strides = [1, 1]} : vector<16x128xf32> to vector<8x128xf32>
      %c0_31 = arith.constant 0 : index
      %c0_32 = arith.constant 0 : index
      %42 = vector.load %arg16[%c0_31, %c0_32] : memref<1x128xf32, #tpu.memory_space<vmem>>, vector<1x128xf32>
      %c0_33 = arith.constant 0 : index
      %c0_34 = arith.constant 0 : index
      %43 = vector.load %arg17[%c0_33, %c0_34] : memref<1x128xf32, #tpu.memory_space<vmem>>, vector<1x128xf32>
      %44 = tpu.iota {dimensions = array<i32: 0>} : vector<8x1xi32>
      %c2_i32 = arith.constant 2 : i32
      %45 = vector.broadcast %c2_i32 : i32 to vector<8x1xi32>
      %46 = arith.cmpi slt, %44, %45 : vector<8x1xi32>
      %47 = arith.extui %46 : vector<8x1xi1> to vector<8x1xi32>
      %48 = arith.sitofp %47 : vector<8x1xi32> to vector<8x1xf32>
      %49 = vector.broadcast %48 : vector<8x1xf32> to vector<8x128xf32>
      %50 = arith.mulf %41, %49 : vector<8x128xf32>
      %cst_35 = arith.constant dense<0.000000e+00> : vector<128xf32>
      %51 = vector.multi_reduction <add>, %50, %cst_35 [0] : vector<8x128xf32> to vector<128xf32>
      %52 = vector.shape_cast %51 : vector<128xf32> to vector<1x128xf32>
      %cst_36 = arith.constant 5.000000e-01 : f32
      %53 = vector.broadcast %cst_36 : f32 to vector<1x128xf32>
      %54 = arith.mulf %52, %53 : vector<1x128xf32>
      %55 = vector.broadcast %54 : vector<1x128xf32> to vector<8x128xf32>
      %56 = arith.subf %41, %55 : vector<8x128xf32>
      %57 = vector.broadcast %48 : vector<8x1xf32> to vector<8x128xf32>
      %58 = arith.mulf %56, %57 : vector<8x128xf32>
      %59 = arith.mulf %58, %58 : vector<8x128xf32>
      %cst_37 = arith.constant dense<0.000000e+00> : vector<128xf32>
      %60 = vector.multi_reduction <add>, %59, %cst_37 [0] : vector<8x128xf32> to vector<128xf32>
      %61 = vector.shape_cast %60 : vector<128xf32> to vector<1x128xf32>
      %cst_38 = arith.constant 5.000000e-01 : f32
      %62 = vector.broadcast %cst_38 : f32 to vector<1x128xf32>
      %63 = arith.mulf %61, %62 : vector<1x128xf32>
      %64 = vector.broadcast %54 : vector<1x128xf32> to vector<8x128xf32>
      %65 = arith.subf %41, %64 : vector<8x128xf32>
      %cst_39 = arith.constant 9.99999974E-6 : f32
      %66 = vector.broadcast %cst_39 : f32 to vector<1x128xf32>
      %67 = arith.addf %63, %66 : vector<1x128xf32>
      %68 = math.rsqrt %67 : vector<1x128xf32>
      %69 = vector.broadcast %68 : vector<1x128xf32> to vector<8x128xf32>
      %70 = arith.mulf %65, %69 : vector<8x128xf32>
      %71 = vector.broadcast %42 : vector<1x128xf32> to vector<8x128xf32>
      %72 = arith.mulf %70, %71 : vector<8x128xf32>
      %73 = vector.broadcast %43 : vector<1x128xf32> to vector<8x128xf32>
      %74 = arith.addf %72, %73 : vector<8x128xf32>
      %75 = vector.extract_strided_slice %40 {offsets = [8, 0], sizes = [8, 128], strides = [1, 1]} : vector<16x128xf32> to vector<8x128xf32>
      %c0_40 = arith.constant 0 : index
      %c0_41 = arith.constant 0 : index
      %76 = vector.load %arg16[%c0_40, %c0_41] : memref<1x128xf32, #tpu.memory_space<vmem>>, vector<1x128xf32>
      %c0_42 = arith.constant 0 : index
      %c0_43 = arith.constant 0 : index
      %77 = vector.load %arg17[%c0_42, %c0_43] : memref<1x128xf32, #tpu.memory_space<vmem>>, vector<1x128xf32>
      %78 = tpu.iota {dimensions = array<i32: 0>} : vector<8x1xi32>
      %c2_i32_44 = arith.constant 2 : i32
      %79 = vector.broadcast %c2_i32_44 : i32 to vector<8x1xi32>
      %80 = arith.cmpi slt, %78, %79 : vector<8x1xi32>
      %81 = arith.extui %80 : vector<8x1xi1> to vector<8x1xi32>
      %82 = arith.sitofp %81 : vector<8x1xi32> to vector<8x1xf32>
      %83 = vector.broadcast %82 : vector<8x1xf32> to vector<8x128xf32>
      %84 = arith.mulf %75, %83 : vector<8x128xf32>
      %cst_45 = arith.constant dense<0.000000e+00> : vector<128xf32>
      %85 = vector.multi_reduction <add>, %84, %cst_45 [0] : vector<8x128xf32> to vector<128xf32>
      %86 = vector.shape_cast %85 : vector<128xf32> to vector<1x128xf32>
      %cst_46 = arith.constant 5.000000e-01 : f32
      %87 = vector.broadcast %cst_46 : f32 to vector<1x128xf32>
      %88 = arith.mulf %86, %87 : vector<1x128xf32>
      %89 = vector.broadcast %88 : vector<1x128xf32> to vector<8x128xf32>
      %90 = arith.subf %75, %89 : vector<8x128xf32>
      %91 = vector.broadcast %82 : vector<8x1xf32> to vector<8x128xf32>
      %92 = arith.mulf %90, %91 : vector<8x128xf32>
      %93 = arith.mulf %92, %92 : vector<8x128xf32>
      %cst_47 = arith.constant dense<0.000000e+00> : vector<128xf32>
      %94 = vector.multi_reduction <add>, %93, %cst_47 [0] : vector<8x128xf32> to vector<128xf32>
      %95 = vector.shape_cast %94 : vector<128xf32> to vector<1x128xf32>
      %cst_48 = arith.constant 5.000000e-01 : f32
      %96 = vector.broadcast %cst_48 : f32 to vector<1x128xf32>
      %97 = arith.mulf %95, %96 : vector<1x128xf32>
      %98 = vector.broadcast %88 : vector<1x128xf32> to vector<8x128xf32>
      %99 = arith.subf %75, %98 : vector<8x128xf32>
      %cst_49 = arith.constant 9.99999974E-6 : f32
      %100 = vector.broadcast %cst_49 : f32 to vector<1x128xf32>
      %101 = arith.addf %97, %100 : vector<1x128xf32>
      %102 = math.rsqrt %101 : vector<1x128xf32>
      %103 = vector.broadcast %102 : vector<1x128xf32> to vector<8x128xf32>
      %104 = arith.mulf %99, %103 : vector<8x128xf32>
      %105 = vector.broadcast %76 : vector<1x128xf32> to vector<8x128xf32>
      %106 = arith.mulf %104, %105 : vector<8x128xf32>
      %107 = vector.broadcast %77 : vector<1x128xf32> to vector<8x128xf32>
      %108 = arith.addf %106, %107 : vector<8x128xf32>
      %c0_50 = arith.constant 0 : index
      %c0_51 = arith.constant 0 : index
      %109 = vector.load %arg22[%c0_50, %c0_51] : memref<8x128xf32, #tpu.memory_space<vmem>>, vector<8x128xf32>
      tpu.vector_store %arg22[%c0_50, %c0_51], %74 {strides = array<i32>} : memref<8x128xf32, #tpu.memory_space<vmem>>, vector<8x128xf32>,
      %c0_52 = arith.constant 0 : index
      %c0_53 = arith.constant 0 : index
      %110 = vector.load %arg21[%c0_52, %c0_53] : memref<8x128xf32, #tpu.memory_space<vmem>>, vector<8x128xf32>
      tpu.vector_store %arg21[%c0_52, %c0_53], %108 {strides = array<i32>} : memref<8x128xf32, #tpu.memory_space<vmem>>, vector<8x128xf32>,
      %111 = tpu.concatenate %74, %108 in 0 : vector<8x128xf32>, vector<8x128xf32> -> vector<16x128xf32>
      %112 = arith.truncf %111 : vector<16x128xf32> to vector<16x128xbf16>
      %c0_54 = arith.constant 0 : index
      %c0_55 = arith.constant 0 : index
      %113 = vector.load %arg18[%c0_54, %c0_55] : memref<128x256xi8, #tpu.memory_space<vmem>>, vector<128x256xi8>
      %114 = arith.sitofp %113 : vector<128x256xi8> to vector<128x256xbf16>
      %cst_56 = arith.constant dense<0.000000e+00> : vector<16x256xf32>
      %115 = tpu.matmul %112, %114, %cst_56 {dimension_numbers = #tpu.dot_dimension_numbers<[1], [0], [0], [1], [0, 0, 1, 1], [], []>} : vector<16x128xbf16>, vector<128x256xbf16>, vector<16x256xf32> -> vector<16x256xf32>
      %c0_57 = arith.constant 0 : index
      %c0_58 = arith.constant 0 : index
      %116 = vector.load %arg19[%c0_57, %c0_58] : memref<1x256xf32, #tpu.memory_space<vmem>>, vector<1x256xf32>
      %117 = vector.broadcast %116 : vector<1x256xf32> to vector<16x256xf32>
      %118 = arith.mulf %115, %117 : vector<16x256xf32>
      %c0_59 = arith.constant 0 : index
      %c0_60 = arith.constant 0 : index
      %119 = vector.load %arg20[%c0_59, %c0_60] : memref<1x256xf32, #tpu.memory_space<vmem>>, vector<1x256xf32>
      %120 = vector.broadcast %119 : vector<1x256xf32> to vector<16x256xf32>
      %121 = arith.addf %118, %120 : vector<16x256xf32>
      %122 = vector.extract_strided_slice %121 {offsets = [0, 0], sizes = [8, 256], strides = [1, 1]} : vector<16x256xf32> to vector<8x256xf32>
      %c0_61 = arith.constant 0 : index
      %c0_62 = arith.constant 0 : index
      %123 = vector.load %arg24[%c0_61, %c0_62] : memref<8x256xf32, #tpu.memory_space<vmem>>, vector<8x256xf32>
      tpu.vector_store %arg24[%c0_61, %c0_62], %122 {strides = array<i32>} : memref<8x256xf32, #tpu.memory_space<vmem>>, vector<8x256xf32>,
      %124 = vector.extract_strided_slice %121 {offsets = [8, 0], sizes = [8, 256], strides = [1, 1]} : vector<16x256xf32> to vector<8x256xf32>
      %c0_63 = arith.constant 0 : index
      %c0_64 = arith.constant 0 : index
      %125 = vector.load %arg23[%c0_63, %c0_64] : memref<8x256xf32, #tpu.memory_space<vmem>>, vector<8x256xf32>
      tpu.vector_store %arg23[%c0_63, %c0_64], %124 {strides = array<i32>} : memref<8x256xf32, #tpu.memory_space<vmem>>, vector<8x256xf32>,
    } else {
    }
    return
  }
  func.func @transform_0(%arg0: i32) -> (i32, i32, i32) {
    %c0_i32 = arith.constant 0 : i32
    %c0_i32_0 = arith.constant 0 : i32
    %c0_i32_1 = arith.constant 0 : i32
    %c0_i32_2 = arith.constant 0 : i32
    return %c0_i32, %c0_i32_0, %c0_i32_1 : i32, i32, i32
  }
  func.func @transform_1(%arg0: i32) -> (i32, i32, i32) {
    %c0_i32 = arith.constant 0 : i32
    %c0_i32_0 = arith.constant 0 : i32
    %c0_i32_1 = arith.constant 0 : i32
    %c0_i32_2 = arith.constant 0 : i32
    return %c0_i32, %c0_i32_0, %c0_i32_1 : i32, i32, i32
  }
  func.func @transform_2(%arg0: i32) -> (i32, i32) {
    %c0_i32 = arith.constant 0 : i32
    %c0_i32_0 = arith.constant 0 : i32
    %c0_i32_1 = arith.constant 0 : i32
    return %c0_i32, %c0_i32_0 : i32, i32
  }
  func.func @transform_3(%arg0: i32) -> (i32, i32) {
    %c0_i32 = arith.constant 0 : i32
    %c0_i32_0 = arith.constant 0 : i32
    %c0_i32_1 = arith.constant 0 : i32
    return %c0_i32, %c0_i32_0 : i32, i32
  }
  func.func @transform_4(%arg0: i32) -> (i32, i32) {
    %c0_i32 = arith.constant 0 : i32
    %c0_i32_0 = arith.constant 0 : i32
    return %c0_i32, %arg0 : i32, i32
  }
  func.func @transform_5(%arg0: i32) -> (i32, i32) {
    %c0_i32 = arith.constant 0 : i32
    %c0_i32_0 = arith.constant 0 : i32
    return %c0_i32, %arg0 : i32, i32
  }
  func.func @transform_6(%arg0: i32) -> (i32, i32) {
    %c0_i32 = arith.constant 0 : i32
    %c0_i32_0 = arith.constant 0 : i32
    return %c0_i32, %arg0 : i32, i32
  }
  func.func @transform_7(%arg0: i32) -> (i32, i32) {
    %c0_i32 = arith.constant 0 : i32
    %c0_i32_0 = arith.constant 0 : i32
    %c0_i32_1 = arith.constant 0 : i32
    return %c0_i32, %c0_i32_0 : i32, i32
  }
  func.func @transform_8(%arg0: i32) -> (i32, i32) {
    %c0_i32 = arith.constant 0 : i32
    %c0_i32_0 = arith.constant 0 : i32
    %c0_i32_1 = arith.constant 0 : i32
    return %c0_i32, %c0_i32_0 : i32, i32
  }
  func.func @transform_9(%arg0: i32) -> (i32, i32) {
    %c0_i32 = arith.constant 0 : i32
    %c0_i32_0 = arith.constant 0 : i32
    return %c0_i32, %arg0 : i32, i32
  }
  func.func @transform_10(%arg0: i32) -> (i32, i32) {
    %c0_i32 = arith.constant 0 : i32
    %c0_i32_0 = arith.constant 0 : i32
    return %c0_i32, %arg0 : i32, i32
  }
  func.func @transform_11(%arg0: i32) -> (i32, i32) {
    %c0_i32 = arith.constant 0 : i32
    %c0_i32_0 = arith.constant 0 : i32
    return %c0_i32, %arg0 : i32, i32
  }
  func.func @transform_12(%arg0: i32) -> (i32, i32) {
    %c0_i32 = arith.constant 0 : i32
    %c0_i32_0 = arith.constant 0 : i32
    return %arg0, %c0_i32 : i32, i32
  }
  func.func @transform_13(%arg0: i32) -> (i32, i32) {
    %c0_i32 = arith.constant 0 : i32
    %c0_i32_0 = arith.constant 0 : i32
    %c0_i32_1 = arith.constant 0 : i32
    return %c0_i32, %c0_i32_0 : i32, i32
  }
  func.func @transform_14(%arg0: i32) -> (i32, i32) {
    %c0_i32 = arith.constant 0 : i32
    %c0_i32_0 = arith.constant 0 : i32
    %c0_i32_1 = arith.constant 0 : i32
    return %c0_i32, %c0_i32_0 : i32, i32
  }
  func.func @transform_15(%arg0: i32) -> (i32, i32) {
    %c0_i32 = arith.constant 0 : i32
    %c0_i32_0 = arith.constant 0 : i32
    %c0_i32_1 = arith.constant 0 : i32
    return %c0_i32, %c0_i32_0 : i32, i32
  }
  func.func @transform_16(%arg0: i32) -> (i32, i32) {
    %c0_i32 = arith.constant 0 : i32
    %c0_i32_0 = arith.constant 0 : i32
    %c0_i32_1 = arith.constant 0 : i32
    return %c0_i32, %c0_i32_0 : i32, i32
  }
  func.func @transform_17(%arg0: i32) -> (i32, i32) {
    %c0_i32 = arith.constant 0 : i32
    %c0_i32_0 = arith.constant 0 : i32
    %c0_i32_1 = arith.constant 0 : i32
    return %c0_i32, %c0_i32_0 : i32, i32
  }
  func.func @transform_18(%arg0: i32) -> (i32, i32) {
    %c0_i32 = arith.constant 0 : i32
    %c0_i32_0 = arith.constant 0 : i32
    %c0_i32_1 = arith.constant 0 : i32
    return %c0_i32, %c0_i32_0 : i32, i32
  }
  func.func @transform_19(%arg0: i32) -> (i32, i32) {
    %c0_i32 = arith.constant 0 : i32
    %c0_i32_0 = arith.constant 0 : i32
    %c0_i32_1 = arith.constant 0 : i32
    return %c0_i32, %c0_i32_0 : i32, i32
  }
  func.func @transform_20(%arg0: i32) -> (i32, i32) {
    %c0_i32 = arith.constant 0 : i32
    %c0_i32_0 = arith.constant 0 : i32
    %c0_i32_1 = arith.constant 0 : i32
    return %c0_i32, %c0_i32_0 : i32, i32
  }
  func.func @transform_21(%arg0: i32) -> (i32, i32) {
    %c0_i32 = arith.constant 0 : i32
    %c0_i32_0 = arith.constant 0 : i32
    %c0_i32_1 = arith.constant 0 : i32
    return %c0_i32, %c0_i32_0 : i32, i32
  }
  func.func @transform_22(%arg0: i32) -> (i32, i32) {
    %c0_i32 = arith.constant 0 : i32
    %c0_i32_0 = arith.constant 0 : i32
    %c0_i32_1 = arith.constant 0 : i32
    return %c0_i32, %c0_i32_0 : i32, i32
  }
  func.func @transform_23(%arg0: i32) -> (i32, i32) {
    %c0_i32 = arith.constant 0 : i32
    %c0_i32_0 = arith.constant 0 : i32
    %c0_i32_1 = arith.constant 0 : i32
    return %c0_i32, %c0_i32_0 : i32, i32
  }
}

module attributes {stable_mosaic.version = 11 : i64} {
  func.func @kernel(%arg0: i32, %arg1: memref<8x8x64xbf16, #tpu.memory_space<vmem>>, %arg2: memref<8x16x32xbf16, #tpu.memory_space<vmem>>, %arg3: memref<1x128xf32, #tpu.memory_space<vmem>>, %arg4: memref<1x128xf32, #tpu.memory_space<vmem>>, %arg5: memref<128x128xi8, #tpu.memory_space<vmem>>, %arg6: memref<1x128xf32, #tpu.memory_space<vmem>>, %arg7: memref<1x128xf32, #tpu.memory_space<vmem>>, %arg8: memref<1x64xf32, #tpu.memory_space<vmem>>, %arg9: memref<1x64xf32, #tpu.memory_space<vmem>>, %arg10: memref<64x128xi8, #tpu.memory_space<vmem>>, %arg11: memref<1x128xf32, #tpu.memory_space<vmem>>, %arg12: memref<1x128xf32, #tpu.memory_space<vmem>>, %arg13: memref<128x128xi8, #tpu.memory_space<vmem>>, %arg14: memref<1x128xf32, #tpu.memory_space<vmem>>, %arg15: memref<1x128xf32, #tpu.memory_space<vmem>>, %arg16: memref<1x128xf32, #tpu.memory_space<vmem>>, %arg17: memref<1x128xf32, #tpu.memory_space<vmem>>, %arg18: memref<128x256xi8, #tpu.memory_space<vmem>>, %arg19: memref<1x256xf32, #tpu.memory_space<vmem>>, %arg20: memref<1x256xf32, #tpu.memory_space<vmem>>, %arg21: memref<8x128xf32, #tpu.memory_space<vmem>>, %arg22: memref<8x128xf32, #tpu.memory_space<vmem>>, %arg23: memref<8x256xf32, #tpu.memory_space<vmem>>, %arg24: memref<8x256xf32, #tpu.memory_space<vmem>>, %arg25: memref<8x128xbf16, #tpu.memory_space<vmem>>, %arg26: memref<8x64xbf16, #tpu.memory_space<vmem>>, %arg27: memref<16x128xf32, #tpu.memory_space<vmem>>) attributes {dimension_semantics = [#tpu.dimension_semantics<arbitrary>], iteration_bounds = array<i64: 2>, scalar_prefetch = 0 : i64, scratch_operands = 3 : i64, tpu.core_type = #tpu.core_type<tc>, window_params = [{pipeline_mode = #tpu.pipeline_mode<synchronous>, transform_indices = @transform_0, window_bounds = array<i64: 8, 8, 64>}, {pipeline_mode = #tpu.pipeline_mode<synchronous>, transform_indices = @transform_1, window_bounds = array<i64: 8, 16, 32>}, {pipeline_mode = #tpu.pipeline_mode<synchronous>, transform_indices = @transform_2, window_bounds = array<i64: 1, 128>}, {pipeline_mode = #tpu.pipeline_mode<synchronous>, transform_indices = @transform_3, window_bounds = array<i64: 1, 128>}, {transform_indices = @transform_4, window_bounds = array<i64: 128, 128>}, {transform_indices = @transform_5, window_bounds = array<i64: 1, 128>}, {transform_indices = @transform_6, window_bounds = array<i64: 1, 128>}, {pipeline_mode = #tpu.pipeline_mode<synchronous>, transform_indices = @transform_7, window_bounds = array<i64: 1, 64>}, {pipeline_mode = #tpu.pipeline_mode<synchronous>, transform_indices = @transform_8, window_bounds = array<i64: 1, 64>}, {transform_indices = @transform_9, window_bounds = array<i64: 64, 128>}, {transform_indices = @transform_10, window_bounds = array<i64: 1, 128>}, {transform_indices = @transform_11, window_bounds = array<i64: 1, 128>}, {transform_indices = @transform_12, window_bounds = array<i64: 128, 128>}, {pipeline_mode = #tpu.pipeline_mode<synchronous>, transform_indices = @transform_13, window_bounds = array<i64: 1, 128>}, {pipeline_mode = #tpu.pipeline_mode<synchronous>, transform_indices = @transform_14, window_bounds = array<i64: 1, 128>}, {pipeline_mode = #tpu.pipeline_mode<synchronous>, transform_indices = @transform_15, window_bounds = array<i64: 1, 128>}, {pipeline_mode = #tpu.pipeline_mode<synchronous>, transform_indices = @transform_16, window_bounds = array<i64: 1, 128>}, {pipeline_mode = #tpu.pipeline_mode<synchronous>, transform_indices = @transform_17, window_bounds = array<i64: 128, 256>}, {pipeline_mode = #tpu.pipeline_mode<synchronous>, transform_indices = @transform_18, window_bounds = array<i64: 1, 256>}, {pipeline_mode = #tpu.pipeline_mode<synchronous>, transform_indices = @transform_19, window_bounds = array<i64: 1, 256>}, {pipeline_mode = #tpu.pipeline_mode<synchronous>, transform_indices = @transform_20, window_bounds = array<i64: 8, 128>}, {pipeline_mode = #tpu.pipeline_mode<synchronous>, transform_indices = @transform_21, window_bounds = array<i64: 8, 128>}, {pipeline_mode = #tpu.pipeline_mode<synchronous>, transform_indices = @transform_22, window_bounds = array<i64: 8, 256>}, {pipeline_mode = #tpu.pipeline_mode<synchronous>, transform_indices = @transform_23, window_bounds = array<i64: 8, 256>}]} {
    %c0_i32 = arith.constant 0 : i32
    %0 = arith.cmpi eq, %arg0, %c0_i32 : i32
    %1 = arith.extui %0 : i1 to i32
    %c0_i32_0 = arith.constant 0 : i32
    %2 = arith.cmpi ne, %1, %c0_i32_0 : i32
    scf.if %2 {
      %c0_25 = arith.constant 0 : index
      %c0_26 = arith.constant 0 : index
      %c0_27 = arith.constant 0 : index
      %34 = vector.load %arg1[%c0_25, %c0_26, %c0_27] : memref<8x8x64xbf16, #tpu.memory_space<vmem>>, vector<8x8x64xbf16>
      %35 = arith.extf %34 : vector<8x8x64xbf16> to vector<8x8x64xf32>
      %cst_28 = arith.constant dense<0.000000e+00> : vector<8x64xf32>
      %36 = vector.multi_reduction <add>, %35, %cst_28 [1] : vector<8x8x64xf32> to vector<8x64xf32>
      %cst_29 = arith.constant 8.000000e+00 : f32
      %37 = vector.broadcast %cst_29 : f32 to vector<8x64xf32>
      %38 = arith.divf %36, %37 : vector<8x64xf32>
      %cst_30 = arith.constant dense<0xFF800000> : vector<8x64xf32>
      %39 = vector.multi_reduction <maximumf>, %35, %cst_30 [1] : vector<8x8x64xf32> to vector<8x64xf32>
      %40 = tpu.concatenate %38, %39 in 1 : vector<8x64xf32>, vector<8x64xf32> -> vector<8x128xf32>
      %c0_31 = arith.constant 0 : index
      %c0_32 = arith.constant 0 : index
      %41 = vector.load %arg3[%c0_31, %c0_32] : memref<1x128xf32, #tpu.memory_space<vmem>>, vector<1x128xf32>
      %c0_33 = arith.constant 0 : index
      %c0_34 = arith.constant 0 : index
      %42 = vector.load %arg4[%c0_33, %c0_34] : memref<1x128xf32, #tpu.memory_space<vmem>>, vector<1x128xf32>
      %43 = tpu.iota {dimensions = array<i32: 0>} : vector<8x1xi32>
      %c2_i32 = arith.constant 2 : i32
      %44 = vector.broadcast %c2_i32 : i32 to vector<8x1xi32>
      %45 = arith.cmpi slt, %43, %44 : vector<8x1xi32>
      %46 = arith.extui %45 : vector<8x1xi1> to vector<8x1xi32>
      %47 = arith.sitofp %46 : vector<8x1xi32> to vector<8x1xf32>
      %48 = vector.broadcast %47 : vector<8x1xf32> to vector<8x128xf32>
      %49 = arith.mulf %40, %48 : vector<8x128xf32>
      %cst_35 = arith.constant dense<0.000000e+00> : vector<128xf32>
      %50 = vector.multi_reduction <add>, %49, %cst_35 [0] : vector<8x128xf32> to vector<128xf32>
      %51 = vector.shape_cast %50 : vector<128xf32> to vector<1x128xf32>
      %cst_36 = arith.constant 5.000000e-01 : f32
      %52 = vector.broadcast %cst_36 : f32 to vector<1x128xf32>
      %53 = arith.mulf %51, %52 : vector<1x128xf32>
      %54 = vector.broadcast %53 : vector<1x128xf32> to vector<8x128xf32>
      %55 = arith.subf %40, %54 : vector<8x128xf32>
      %56 = vector.broadcast %47 : vector<8x1xf32> to vector<8x128xf32>
      %57 = arith.mulf %55, %56 : vector<8x128xf32>
      %58 = arith.mulf %57, %57 : vector<8x128xf32>
      %cst_37 = arith.constant dense<0.000000e+00> : vector<128xf32>
      %59 = vector.multi_reduction <add>, %58, %cst_37 [0] : vector<8x128xf32> to vector<128xf32>
      %60 = vector.shape_cast %59 : vector<128xf32> to vector<1x128xf32>
      %cst_38 = arith.constant 5.000000e-01 : f32
      %61 = vector.broadcast %cst_38 : f32 to vector<1x128xf32>
      %62 = arith.mulf %60, %61 : vector<1x128xf32>
      %63 = vector.broadcast %53 : vector<1x128xf32> to vector<8x128xf32>
      %64 = arith.subf %40, %63 : vector<8x128xf32>
      %cst_39 = arith.constant 9.99999974E-6 : f32
      %65 = vector.broadcast %cst_39 : f32 to vector<1x128xf32>
      %66 = arith.addf %62, %65 : vector<1x128xf32>
      %67 = math.rsqrt %66 : vector<1x128xf32>
      %68 = vector.broadcast %67 : vector<1x128xf32> to vector<8x128xf32>
      %69 = arith.mulf %64, %68 : vector<8x128xf32>
      %70 = vector.broadcast %41 : vector<1x128xf32> to vector<8x128xf32>
      %71 = arith.mulf %69, %70 : vector<8x128xf32>
      %72 = vector.broadcast %42 : vector<1x128xf32> to vector<8x128xf32>
      %73 = arith.addf %71, %72 : vector<8x128xf32>
      %74 = arith.truncf %73 : vector<8x128xf32> to vector<8x128xbf16>
      %c0_40 = arith.constant 0 : index
      %c0_41 = arith.constant 0 : index
      %75 = vector.load %arg25[%c0_40, %c0_41] : memref<8x128xbf16, #tpu.memory_space<vmem>>, vector<8x128xbf16>
      tpu.vector_store %arg25[%c0_40, %c0_41], %74 {strides = array<i32>} : memref<8x128xbf16, #tpu.memory_space<vmem>>, vector<8x128xbf16>,
      %c0_42 = arith.constant 0 : index
      %c0_43 = arith.constant 0 : index
      %c0_44 = arith.constant 0 : index
      %76 = vector.load %arg2[%c0_42, %c0_43, %c0_44] : memref<8x16x32xbf16, #tpu.memory_space<vmem>>, vector<8x16x32xbf16>
      %77 = arith.extf %76 : vector<8x16x32xbf16> to vector<8x16x32xf32>
      %cst_45 = arith.constant dense<0.000000e+00> : vector<8x32xf32>
      %78 = vector.multi_reduction <add>, %77, %cst_45 [1] : vector<8x16x32xf32> to vector<8x32xf32>
      %cst_46 = arith.constant 1.600000e+01 : f32
      %79 = vector.broadcast %cst_46 : f32 to vector<8x32xf32>
      %80 = arith.divf %78, %79 : vector<8x32xf32>
      %cst_47 = arith.constant dense<0xFF800000> : vector<8x32xf32>
      %81 = vector.multi_reduction <maximumf>, %77, %cst_47 [1] : vector<8x16x32xf32> to vector<8x32xf32>
      %82 = tpu.concatenate %80, %81 in 1 : vector<8x32xf32>, vector<8x32xf32> -> vector<8x64xf32>
      %c0_48 = arith.constant 0 : index
      %c0_49 = arith.constant 0 : index
      %83 = vector.load %arg8[%c0_48, %c0_49] : memref<1x64xf32, #tpu.memory_space<vmem>>, vector<1x64xf32>
      %c0_50 = arith.constant 0 : index
      %c0_51 = arith.constant 0 : index
      %84 = vector.load %arg9[%c0_50, %c0_51] : memref<1x64xf32, #tpu.memory_space<vmem>>, vector<1x64xf32>
      %85 = tpu.iota {dimensions = array<i32: 0>} : vector<8x1xi32>
      %c2_i32_52 = arith.constant 2 : i32
      %86 = vector.broadcast %c2_i32_52 : i32 to vector<8x1xi32>
      %87 = arith.cmpi slt, %85, %86 : vector<8x1xi32>
      %88 = arith.extui %87 : vector<8x1xi1> to vector<8x1xi32>
      %89 = arith.sitofp %88 : vector<8x1xi32> to vector<8x1xf32>
      %90 = vector.broadcast %89 : vector<8x1xf32> to vector<8x64xf32>
      %91 = arith.mulf %82, %90 : vector<8x64xf32>
      %cst_53 = arith.constant dense<0.000000e+00> : vector<64xf32>
      %92 = vector.multi_reduction <add>, %91, %cst_53 [0] : vector<8x64xf32> to vector<64xf32>
      %93 = vector.shape_cast %92 : vector<64xf32> to vector<1x64xf32>
      %cst_54 = arith.constant 5.000000e-01 : f32
      %94 = vector.broadcast %cst_54 : f32 to vector<1x64xf32>
      %95 = arith.mulf %93, %94 : vector<1x64xf32>
      %96 = vector.broadcast %95 : vector<1x64xf32> to vector<8x64xf32>
      %97 = arith.subf %82, %96 : vector<8x64xf32>
      %98 = vector.broadcast %89 : vector<8x1xf32> to vector<8x64xf32>
      %99 = arith.mulf %97, %98 : vector<8x64xf32>
      %100 = arith.mulf %99, %99 : vector<8x64xf32>
      %cst_55 = arith.constant dense<0.000000e+00> : vector<64xf32>
      %101 = vector.multi_reduction <add>, %100, %cst_55 [0] : vector<8x64xf32> to vector<64xf32>
      %102 = vector.shape_cast %101 : vector<64xf32> to vector<1x64xf32>
      %cst_56 = arith.constant 5.000000e-01 : f32
      %103 = vector.broadcast %cst_56 : f32 to vector<1x64xf32>
      %104 = arith.mulf %102, %103 : vector<1x64xf32>
      %105 = vector.broadcast %95 : vector<1x64xf32> to vector<8x64xf32>
      %106 = arith.subf %82, %105 : vector<8x64xf32>
      %cst_57 = arith.constant 9.99999974E-6 : f32
      %107 = vector.broadcast %cst_57 : f32 to vector<1x64xf32>
      %108 = arith.addf %104, %107 : vector<1x64xf32>
      %109 = math.rsqrt %108 : vector<1x64xf32>
      %110 = vector.broadcast %109 : vector<1x64xf32> to vector<8x64xf32>
      %111 = arith.mulf %106, %110 : vector<8x64xf32>
      %112 = vector.broadcast %83 : vector<1x64xf32> to vector<8x64xf32>
      %113 = arith.mulf %111, %112 : vector<8x64xf32>
      %114 = vector.broadcast %84 : vector<1x64xf32> to vector<8x64xf32>
      %115 = arith.addf %113, %114 : vector<8x64xf32>
      %116 = arith.truncf %115 : vector<8x64xf32> to vector<8x64xbf16>
      %c0_58 = arith.constant 0 : index
      %c0_59 = arith.constant 0 : index
      %117 = vector.load %arg26[%c0_58, %c0_59] : memref<8x64xbf16, #tpu.memory_space<vmem>>, vector<8x64xbf16>
      tpu.vector_store %arg26[%c0_58, %c0_59], %116 {strides = array<i32>} : memref<8x64xbf16, #tpu.memory_space<vmem>>, vector<8x64xbf16>,
      %cst_60 = arith.constant 0.000000e+00 : f32
      %118 = vector.broadcast %cst_60 : f32 to vector<16x128xf32>
      %c0_61 = arith.constant 0 : index
      %c0_62 = arith.constant 0 : index
      %119 = vector.load %arg27[%c0_61, %c0_62] : memref<16x128xf32, #tpu.memory_space<vmem>>, vector<16x128xf32>
      tpu.vector_store %arg27[%c0_61, %c0_62], %118 {strides = array<i32>} : memref<16x128xf32, #tpu.memory_space<vmem>>, vector<16x128xf32>,
    } else {
    }
    %c0 = arith.constant 0 : index
    %c0_1 = arith.constant 0 : index
    %3 = vector.load %arg25[%c0, %c0_1] : memref<8x128xbf16, #tpu.memory_space<vmem>>, vector<8x128xbf16>
    %c0_2 = arith.constant 0 : index
    %c0_3 = arith.constant 0 : index
    %4 = vector.load %arg5[%c0_2, %c0_3] : memref<128x128xi8, #tpu.memory_space<vmem>>, vector<128x128xi8>
    %5 = arith.sitofp %4 : vector<128x128xi8> to vector<128x128xbf16>
    %cst = arith.constant dense<0.000000e+00> : vector<8x128xf32>
    %6 = tpu.matmul %3, %5, %cst {dimension_numbers = #tpu.dot_dimension_numbers<[1], [0], [0], [1], [0, 0, 1, 1], [], []>} : vector<8x128xbf16>, vector<128x128xbf16>, vector<8x128xf32> -> vector<8x128xf32>
    %c0_4 = arith.constant 0 : index
    %c0_5 = arith.constant 0 : index
    %7 = vector.load %arg6[%c0_4, %c0_5] : memref<1x128xf32, #tpu.memory_space<vmem>>, vector<1x128xf32>
    %8 = vector.broadcast %7 : vector<1x128xf32> to vector<8x128xf32>
    %9 = arith.mulf %6, %8 : vector<8x128xf32>
    %c0_6 = arith.constant 0 : index
    %c0_7 = arith.constant 0 : index
    %10 = vector.load %arg7[%c0_6, %c0_7] : memref<1x128xf32, #tpu.memory_space<vmem>>, vector<1x128xf32>
    %11 = vector.broadcast %10 : vector<1x128xf32> to vector<8x128xf32>
    %12 = arith.addf %9, %11 : vector<8x128xf32>
    %c0_8 = arith.constant 0 : index
    %c0_9 = arith.constant 0 : index
    %13 = vector.load %arg26[%c0_8, %c0_9] : memref<8x64xbf16, #tpu.memory_space<vmem>>, vector<8x64xbf16>
    %c0_10 = arith.constant 0 : index
    %c0_11 = arith.constant 0 : index
    %14 = vector.load %arg10[%c0_10, %c0_11] : memref<64x128xi8, #tpu.memory_space<vmem>>, vector<64x128xi8>
    %15 = arith.sitofp %14 : vector<64x128xi8> to vector<64x128xbf16>
    %cst_12 = arith.constant dense<0.000000e+00> : vector<8x128xf32>
    %16 = tpu.matmul %13, %15, %cst_12 {dimension_numbers = #tpu.dot_dimension_numbers<[1], [0], [0], [1], [0, 0, 1, 1], [], []>} : vector<8x64xbf16>, vector<64x128xbf16>, vector<8x128xf32> -> vector<8x128xf32>
    %c0_13 = arith.constant 0 : index
    %c0_14 = arith.constant 0 : index
    %17 = vector.load %arg11[%c0_13, %c0_14] : memref<1x128xf32, #tpu.memory_space<vmem>>, vector<1x128xf32>
    %18 = vector.broadcast %17 : vector<1x128xf32> to vector<8x128xf32>
    %19 = arith.mulf %16, %18 : vector<8x128xf32>
    %c0_15 = arith.constant 0 : index
    %c0_16 = arith.constant 0 : index
    %20 = vector.load %arg12[%c0_15, %c0_16] : memref<1x128xf32, #tpu.memory_space<vmem>>, vector<1x128xf32>
    %21 = vector.broadcast %20 : vector<1x128xf32> to vector<8x128xf32>
    %22 = arith.addf %19, %21 : vector<8x128xf32>
    %23 = tpu.concatenate %12, %22 in 0 : vector<8x128xf32>, vector<8x128xf32> -> vector<16x128xf32>
    %24 = arith.truncf %23 : vector<16x128xf32> to vector<16x128xbf16>
    %c0_17 = arith.constant 0 : index
    %c0_18 = arith.constant 0 : index
    %25 = vector.load %arg27[%c0_17, %c0_18] : memref<16x128xf32, #tpu.memory_space<vmem>>, vector<16x128xf32>
    %c0_19 = arith.constant 0 : index
    %c0_20 = arith.constant 0 : index
    %26 = vector.load %arg13[%c0_19, %c0_20] : memref<128x128xi8, #tpu.memory_space<vmem>>, vector<128x128xi8>
    %27 = arith.sitofp %26 : vector<128x128xi8> to vector<128x128xbf16>
    %cst_21 = arith.constant dense<0.000000e+00> : vector<16x128xf32>
    %28 = tpu.matmul %24, %27, %cst_21 {dimension_numbers = #tpu.dot_dimension_numbers<[1], [0], [0], [1], [0, 0, 1, 1], [], []>} : vector<16x128xbf16>, vector<128x128xbf16>, vector<16x128xf32> -> vector<16x128xf32>
    %29 = arith.addf %25, %28 : vector<16x128xf32>
    %c0_22 = arith.constant 0 : index
    %c0_23 = arith.constant 0 : index
    %30 = vector.load %arg27[%c0_22, %c0_23] : memref<16x128xf32, #tpu.memory_space<vmem>>, vector<16x128xf32>
    tpu.vector_store %arg27[%c0_22, %c0_23], %29 {strides = array<i32>} : memref<16x128xf32, #tpu.memory_space<vmem>>, vector<16x128xf32>,
    %c1_i32 = arith.constant 1 : i32
    %31 = arith.cmpi eq, %arg0, %c1_i32 : i32
    %32 = arith.extui %31 : i1 to i32
    %c0_i32_24 = arith.constant 0 : i32
    %33 = arith.cmpi ne, %32, %c0_i32_24 : i32
    scf.if %33 {
      %c0_25 = arith.constant 0 : index
      %c0_26 = arith.constant 0 : index
      %34 = vector.load %arg27[%c0_25, %c0_26] : memref<16x128xf32, #tpu.memory_space<vmem>>, vector<16x128xf32>
      %c0_27 = arith.constant 0 : index
      %c0_28 = arith.constant 0 : index
      %35 = vector.load %arg14[%c0_27, %c0_28] : memref<1x128xf32, #tpu.memory_space<vmem>>, vector<1x128xf32>
      %36 = vector.broadcast %35 : vector<1x128xf32> to vector<16x128xf32>
      %37 = arith.mulf %34, %36 : vector<16x128xf32>
      %c0_29 = arith.constant 0 : index
      %c0_30 = arith.constant 0 : index
      %38 = vector.load %arg15[%c0_29, %c0_30] : memref<1x128xf32, #tpu.memory_space<vmem>>, vector<1x128xf32>
      %39 = vector.broadcast %38 : vector<1x128xf32> to vector<16x128xf32>
      %40 = arith.addf %37, %39 : vector<16x128xf32>
      %41 = vector.extract_strided_slice %40 {offsets = [0, 0], sizes = [8, 128], strides = [1, 1]} : vector<16x128xf32> to vector<8x128xf32>
      %c0_31 = arith.constant 0 : index
      %c0_32 = arith.constant 0 : index
      %42 = vector.load %arg16[%c0_31, %c0_32] : memref<1x128xf32, #tpu.memory_space<vmem>>, vector<1x128xf32>
      %c0_33 = arith.constant 0 : index
      %c0_34 = arith.constant 0 : index
      %43 = vector.load %arg17[%c0_33, %c0_34] : memref<1x128xf32, #tpu.memory_space<vmem>>, vector<1x128xf32>
      %44 = tpu.iota {dimensions = array<i32: 0>} : vector<8x1xi32>
      %c2_i32 = arith.constant 2 : i32
      %45 = vector.broadcast %c2_i32 : i32 to vector<8x1xi32>
      %46 = arith.cmpi slt, %44, %45 : vector<8x1xi32>
      %47 = arith.extui %46 : vector<8x1xi1> to vector<8x1xi32>
      %48 = arith.sitofp %47 : vector<8x1xi32> to vector<8x1xf32>
      %49 = vector.broadcast %48 : vector<8x1xf32> to vector<8x128xf32>
      %50 = arith.mulf %41, %49 : vector<8x128xf32>
      %cst_35 = arith.constant dense<0.000000e+00> : vector<128xf32>
      %51 = vector.multi_reduction <add>, %50, %cst_35 [0] : vector<8x128xf32> to vector<128xf32>
      %52 = vector.shape_cast %51 : vector<128xf32> to vector<1x128xf32>
      %cst_36 = arith.constant 5.000000e-01 : f32
      %53 = vector.broadcast %cst_36 : f32 to vector<1x128xf32>
      %54 = arith.mulf %52, %53 : vector<1x128xf32>
      %55 = vector.broadcast %54 : vector<1x128xf32> to vector<8x128xf32>
      %56 = arith.subf %41, %55 : vector<8x128xf32>
      %57 = vector.broadcast %48 : vector<8x1xf32> to vector<8x128xf32>
      %58 = arith.mulf %56, %57 : vector<8x128xf32>
      %59 = arith.mulf %58, %58 : vector<8x128xf32>
      %cst_37 = arith.constant dense<0.000000e+00> : vector<128xf32>
      %60 = vector.multi_reduction <add>, %59, %cst_37 [0] : vector<8x128xf32> to vector<128xf32>
      %61 = vector.shape_cast %60 : vector<128xf32> to vector<1x128xf32>
      %cst_38 = arith.constant 5.000000e-01 : f32
      %62 = vector.broadcast %cst_38 : f32 to vector<1x128xf32>
      %63 = arith.mulf %61, %62 : vector<1x128xf32>
      %64 = vector.broadcast %54 : vector<1x128xf32> to vector<8x128xf32>
      %65 = arith.subf %41, %64 : vector<8x128xf32>
      %cst_39 = arith.constant 9.99999974E-6 : f32
      %66 = vector.broadcast %cst_39 : f32 to vector<1x128xf32>
      %67 = arith.addf %63, %66 : vector<1x128xf32>
      %68 = math.rsqrt %67 : vector<1x128xf32>
      %69 = vector.broadcast %68 : vector<1x128xf32> to vector<8x128xf32>
      %70 = arith.mulf %65, %69 : vector<8x128xf32>
      %71 = vector.broadcast %42 : vector<1x128xf32> to vector<8x128xf32>
      %72 = arith.mulf %70, %71 : vector<8x128xf32>
      %73 = vector.broadcast %43 : vector<1x128xf32> to vector<8x128xf32>
      %74 = arith.addf %72, %73 : vector<8x128xf32>
      %75 = vector.extract_strided_slice %40 {offsets = [8, 0], sizes = [8, 128], strides = [1, 1]} : vector<16x128xf32> to vector<8x128xf32>
      %c0_40 = arith.constant 0 : index
      %c0_41 = arith.constant 0 : index
      %76 = vector.load %arg16[%c0_40, %c0_41] : memref<1x128xf32, #tpu.memory_space<vmem>>, vector<1x128xf32>
      %c0_42 = arith.constant 0 : index
      %c0_43 = arith.constant 0 : index
      %77 = vector.load %arg17[%c0_42, %c0_43] : memref<1x128xf32, #tpu.memory_space<vmem>>, vector<1x128xf32>
      %78 = tpu.iota {dimensions = array<i32: 0>} : vector<8x1xi32>
      %c2_i32_44 = arith.constant 2 : i32
      %79 = vector.broadcast %c2_i32_44 : i32 to vector<8x1xi32>
      %80 = arith.cmpi slt, %78, %79 : vector<8x1xi32>
      %81 = arith.extui %80 : vector<8x1xi1> to vector<8x1xi32>
      %82 = arith.sitofp %81 : vector<8x1xi32> to vector<8x1xf32>
      %83 = vector.broadcast %82 : vector<8x1xf32> to vector<8x128xf32>
      %84 = arith.mulf %75, %83 : vector<8x128xf32>
      %cst_45 = arith.constant dense<0.000000e+00> : vector<128xf32>
      %85 = vector.multi_reduction <add>, %84, %cst_45 [0] : vector<8x128xf32> to vector<128xf32>
      %86 = vector.shape_cast %85 : vector<128xf32> to vector<1x128xf32>
      %cst_46 = arith.constant 5.000000e-01 : f32
      %87 = vector.broadcast %cst_46 : f32 to vector<1x128xf32>
      %88 = arith.mulf %86, %87 : vector<1x128xf32>
      %89 = vector.broadcast %88 : vector<1x128xf32> to vector<8x128xf32>
      %90 = arith.subf %75, %89 : vector<8x128xf32>
      %91 = vector.broadcast %82 : vector<8x1xf32> to vector<8x128xf32>
      %92 = arith.mulf %90, %91 : vector<8x128xf32>
      %93 = arith.mulf %92, %92 : vector<8x128xf32>
      %cst_47 = arith.constant dense<0.000000e+00> : vector<128xf32>
      %94 = vector.multi_reduction <add>, %93, %cst_47 [0] : vector<8x128xf32> to vector<128xf32>
      %95 = vector.shape_cast %94 : vector<128xf32> to vector<1x128xf32>
      %cst_48 = arith.constant 5.000000e-01 : f32
      %96 = vector.broadcast %cst_48 : f32 to vector<1x128xf32>
      %97 = arith.mulf %95, %96 : vector<1x128xf32>
      %98 = vector.broadcast %88 : vector<1x128xf32> to vector<8x128xf32>
      %99 = arith.subf %75, %98 : vector<8x128xf32>
      %cst_49 = arith.constant 9.99999974E-6 : f32
      %100 = vector.broadcast %cst_49 : f32 to vector<1x128xf32>
      %101 = arith.addf %97, %100 : vector<1x128xf32>
      %102 = math.rsqrt %101 : vector<1x128xf32>
      %103 = vector.broadcast %102 : vector<1x128xf32> to vector<8x128xf32>
      %104 = arith.mulf %99, %103 : vector<8x128xf32>
      %105 = vector.broadcast %76 : vector<1x128xf32> to vector<8x128xf32>
      %106 = arith.mulf %104, %105 : vector<8x128xf32>
      %107 = vector.broadcast %77 : vector<1x128xf32> to vector<8x128xf32>
      %108 = arith.addf %106, %107 : vector<8x128xf32>
      %c0_50 = arith.constant 0 : index
      %c0_51 = arith.constant 0 : index
      %109 = vector.load %arg22[%c0_50, %c0_51] : memref<8x128xf32, #tpu.memory_space<vmem>>, vector<8x128xf32>
      tpu.vector_store %arg22[%c0_50, %c0_51], %74 {strides = array<i32>} : memref<8x128xf32, #tpu.memory_space<vmem>>, vector<8x128xf32>,
      %c0_52 = arith.constant 0 : index
      %c0_53 = arith.constant 0 : index
      %110 = vector.load %arg21[%c0_52, %c0_53] : memref<8x128xf32, #tpu.memory_space<vmem>>, vector<8x128xf32>
      tpu.vector_store %arg21[%c0_52, %c0_53], %108 {strides = array<i32>} : memref<8x128xf32, #tpu.memory_space<vmem>>, vector<8x128xf32>,
      %111 = tpu.concatenate %74, %108 in 0 : vector<8x128xf32>, vector<8x128xf32> -> vector<16x128xf32>
      %112 = arith.truncf %111 : vector<16x128xf32> to vector<16x128xbf16>
      %c0_54 = arith.constant 0 : index
      %c0_55 = arith.constant 0 : index
      %113 = vector.load %arg18[%c0_54, %c0_55] : memref<128x256xi8, #tpu.memory_space<vmem>>, vector<128x256xi8>
      %114 = arith.sitofp %113 : vector<128x256xi8> to vector<128x256xbf16>
      %cst_56 = arith.constant dense<0.000000e+00> : vector<16x256xf32>
      %115 = tpu.matmul %112, %114, %cst_56 {dimension_numbers = #tpu.dot_dimension_numbers<[1], [0], [0], [1], [0, 0, 1, 1], [], []>} : vector<16x128xbf16>, vector<128x256xbf16>, vector<16x256xf32> -> vector<16x256xf32>
      %c0_57 = arith.constant 0 : index
      %c0_58 = arith.constant 0 : index
      %116 = vector.load %arg19[%c0_57, %c0_58] : memref<1x256xf32, #tpu.memory_space<vmem>>, vector<1x256xf32>
      %117 = vector.broadcast %116 : vector<1x256xf32> to vector<16x256xf32>
      %118 = arith.mulf %115, %117 : vector<16x256xf32>
      %c0_59 = arith.constant 0 : index
      %c0_60 = arith.constant 0 : index
      %119 = vector.load %arg20[%c0_59, %c0_60] : memref<1x256xf32, #tpu.memory_space<vmem>>, vector<1x256xf32>
      %120 = vector.broadcast %119 : vector<1x256xf32> to vector<16x256xf32>
      %121 = arith.addf %118, %120 : vector<16x256xf32>
      %122 = vector.extract_strided_slice %121 {offsets = [0, 0], sizes = [8, 256], strides = [1, 1]} : vector<16x256xf32> to vector<8x256xf32>
      %c0_61 = arith.constant 0 : index
      %c0_62 = arith.constant 0 : index
      %123 = vector.load %arg24[%c0_61, %c0_62] : memref<8x256xf32, #tpu.memory_space<vmem>>, vector<8x256xf32>
      tpu.vector_store %arg24[%c0_61, %c0_62], %122 {strides = array<i32>} : memref<8x256xf32, #tpu.memory_space<vmem>>, vector<8x256xf32>,
      %124 = vector.extract_strided_slice %121 {offsets = [8, 0], sizes = [8, 256], strides = [1, 1]} : vector<16x256xf32> to vector<8x256xf32>
      %c0_63 = arith.constant 0 : index
      %c0_64 = arith.constant 0 : index
      %125 = vector.load %arg23[%c0_63, %c0_64] : memref<8x256xf32, #tpu.memory_space<vmem>>, vector<8x256xf32>
      tpu.vector_store %arg23[%c0_63, %c0_64], %124 {strides = array<i32>} : memref<8x256xf32, #tpu.memory_space<vmem>>, vector<8x256xf32>,
    } else {
    }
    return
  }
  func.func @transform_0(%arg0: i32) -> (i32, i32, i32) {
    %c0_i32 = arith.constant 0 : i32
    %c0_i32_0 = arith.constant 0 : i32
    %c0_i32_1 = arith.constant 0 : i32
    %c0_i32_2 = arith.constant 0 : i32
    return %c0_i32, %c0_i32_0, %c0_i32_1 : i32, i32, i32
  }
  func.func @transform_1(%arg0: i32) -> (i32, i32, i32) {
    %c0_i32 = arith.constant 0 : i32
    %c0_i32_0 = arith.constant 0 : i32
    %c0_i32_1 = arith.constant 0 : i32
    %c0_i32_2 = arith.constant 0 : i32
    return %c0_i32, %c0_i32_0, %c0_i32_1 : i32, i32, i32
  }
  func.func @transform_2(%arg0: i32) -> (i32, i32) {
    %c0_i32 = arith.constant 0 : i32
    %c0_i32_0 = arith.constant 0 : i32
    %c0_i32_1 = arith.constant 0 : i32
    return %c0_i32, %c0_i32_0 : i32, i32
  }
  func.func @transform_3(%arg0: i32) -> (i32, i32) {
    %c0_i32 = arith.constant 0 : i32
    %c0_i32_0 = arith.constant 0 : i32
    %c0_i32_1 = arith.constant 0 : i32
    return %c0_i32, %c0_i32_0 : i32, i32
  }
  func.func @transform_4(%arg0: i32) -> (i32, i32) {
    %c0_i32 = arith.constant 0 : i32
    %c0_i32_0 = arith.constant 0 : i32
    return %c0_i32, %arg0 : i32, i32
  }
  func.func @transform_5(%arg0: i32) -> (i32, i32) {
    %c0_i32 = arith.constant 0 : i32
    %c0_i32_0 = arith.constant 0 : i32
    return %c0_i32, %arg0 : i32, i32
  }
  func.func @transform_6(%arg0: i32) -> (i32, i32) {
    %c0_i32 = arith.constant 0 : i32
    %c0_i32_0 = arith.constant 0 : i32
    return %c0_i32, %arg0 : i32, i32
  }
  func.func @transform_7(%arg0: i32) -> (i32, i32) {
    %c0_i32 = arith.constant 0 : i32
    %c0_i32_0 = arith.constant 0 : i32
    %c0_i32_1 = arith.constant 0 : i32
    return %c0_i32, %c0_i32_0 : i32, i32
  }
  func.func @transform_8(%arg0: i32) -> (i32, i32) {
    %c0_i32 = arith.constant 0 : i32
    %c0_i32_0 = arith.constant 0 : i32
    %c0_i32_1 = arith.constant 0 : i32
    return %c0_i32, %c0_i32_0 : i32, i32
  }
  func.func @transform_9(%arg0: i32) -> (i32, i32) {
    %c0_i32 = arith.constant 0 : i32
    %c0_i32_0 = arith.constant 0 : i32
    return %c0_i32, %arg0 : i32, i32
  }
  func.func @transform_10(%arg0: i32) -> (i32, i32) {
    %c0_i32 = arith.constant 0 : i32
    %c0_i32_0 = arith.constant 0 : i32
    return %c0_i32, %arg0 : i32, i32
  }
  func.func @transform_11(%arg0: i32) -> (i32, i32) {
    %c0_i32 = arith.constant 0 : i32
    %c0_i32_0 = arith.constant 0 : i32
    return %c0_i32, %arg0 : i32, i32
  }
  func.func @transform_12(%arg0: i32) -> (i32, i32) {
    %c0_i32 = arith.constant 0 : i32
    %c0_i32_0 = arith.constant 0 : i32
    return %arg0, %c0_i32 : i32, i32
  }
  func.func @transform_13(%arg0: i32) -> (i32, i32) {
    %c0_i32 = arith.constant 0 : i32
    %c0_i32_0 = arith.constant 0 : i32
    %c0_i32_1 = arith.constant 0 : i32
    return %c0_i32, %c0_i32_0 : i32, i32
  }
  func.func @transform_14(%arg0: i32) -> (i32, i32) {
    %c0_i32 = arith.constant 0 : i32
    %c0_i32_0 = arith.constant 0 : i32
    %c0_i32_1 = arith.constant 0 : i32
    return %c0_i32, %c0_i32_0 : i32, i32
  }
  func.func @transform_15(%arg0: i32) -> (i32, i32) {
    %c0_i32 = arith.constant 0 : i32
    %c0_i32_0 = arith.constant 0 : i32
    %c0_i32_1 = arith.constant 0 : i32
    return %c0_i32, %c0_i32_0 : i32, i32
  }
  func.func @transform_16(%arg0: i32) -> (i32, i32) {
    %c0_i32 = arith.constant 0 : i32
    %c0_i32_0 = arith.constant 0 : i32
    %c0_i32_1 = arith.constant 0 : i32
    return %c0_i32, %c0_i32_0 : i32, i32
  }
  func.func @transform_17(%arg0: i32) -> (i32, i32) {
    %c0_i32 = arith.constant 0 : i32
    %c0_i32_0 = arith.constant 0 : i32
    %c0_i32_1 = arith.constant 0 : i32
    return %c0_i32, %c0_i32_0 : i32, i32
  }
  func.func @transform_18(%arg0: i32) -> (i32, i32) {
    %c0_i32 = arith.constant 0 : i32
    %c0_i32_0 = arith.constant 0 : i32
    %c0_i32_1 = arith.constant 0 : i32
    return %c0_i32, %c0_i32_0 : i32, i32
  }
  func.func @transform_19(%arg0: i32) -> (i32, i32) {
    %c0_i32 = arith.constant 0 : i32
    %c0_i32_0 = arith.constant 0 : i32
    %c0_i32_1 = arith.constant 0 : i32
    return %c0_i32, %c0_i32_0 : i32, i32
  }
  func.func @transform_20(%arg0: i32) -> (i32, i32) {
    %c0_i32 = arith.constant 0 : i32
    %c0_i32_0 = arith.constant 0 : i32
    %c0_i32_1 = arith.constant 0 : i32
    return %c0_i32, %c0_i32_0 : i32, i32
  }
  func.func @transform_21(%arg0: i32) -> (i32, i32) {
    %c0_i32 = arith.constant 0 : i32
    %c0_i32_0 = arith.constant 0 : i32
    %c0_i32_1 = arith.constant 0 : i32
    return %c0_i32, %c0_i32_0 : i32, i32
  }
  func.func @transform_22(%arg0: i32) -> (i32, i32) {
    %c0_i32 = arith.constant 0 : i32
    %c0_i32_0 = arith.constant 0 : i32
    %c0_i32_1 = arith.constant 0 : i32
    return %c0_i32, %c0_i32_0 : i32, i32
  }
  func.func @transform_23(%arg0: i32) -> (i32, i32) {
    %c0_i32 = arith.constant 0 : i32
    %c0_i32_0 = arith.constant 0 : i32
    %c0_i32_1 = arith.constant 0 : i32
    return %c0_i32, %c0_i32_0 : i32, i32
  }
}

</mosaic_0001>

<bundles_post_ra>
// kernel: tpu_custom_call.1
= control target key start
LH: loop header
LB: loop body
LE: loop exit
PB: predicated region body
PF: predicated region fallthrough
CT: control target
= control target key end

     0   :  { %s4492_s0 = inlined_call_operand.hbm [shape: bf16[8,8,64], index: 0, kind: input, shape index: {}]   ;;  %s4493_s1 = inlined_call_operand.hbm [shape: bf16[8,16,32], index: 1, kind: input, shape index: {}]   ;;  %s4494_s2 = inlined_call_operand.hbm [shape: f32[1,128], index: 2, kind: input, shape index: {}]   ;;  %s4495_s3 = inlined_call_operand.hbm [shape: f32[1,128], index: 3, kind: input, shape index: {}]   ;;  %s4496_s4 = inlined_call_operand.hbm [shape: s8[128,256], index: 4, kind: input, shape index: {}]   ;;  %s4497_s5 = inlined_call_operand.hbm [shape: f32[1,256], index: 5, kind: input, shape index: {}]   ;;  %s4498_s6 = inlined_call_operand.hbm [shape: f32[1,256], index: 6, kind: input, shape index: {}]   ;;  %s4499_s7 = inlined_call_operand.hbm [shape: f32[1,64], index: 7, kind: input, shape index: {}]   ;;  %s4500_s8 = inlined_call_operand.hbm [shape: f32[1,64], index: 8, kind: input, shape index: {}]   ;;  %s4501_s9 = inlined_call_operand.hbm [shape: s8[64,256], index: 9, kind: input, shape index: {}]   ;;  %s4502_s10 = inlined_call_operand.hbm [shape: f32[1,256], index: 10, kind: input, shape index: {}]   ;;  %s4503_s11 = inlined_call_operand.hbm [shape: f32[1,256], index: 11, kind: input, shape index: {}]   ;;  %s4504_s12 = inlined_call_operand.hbm [shape: s8[256,128], index: 12, kind: input, shape index: {}]   ;;  %s4505_s13 = inlined_call_operand.hbm [shape: f32[1,128], index: 13, kind: input, shape index: {}]   ;;  %s4506_s14 = inlined_call_operand.hbm [shape: f32[1,128], index: 14, kind: input, shape index: {}]   ;;  %s4507_s15 = inlined_call_operand.hbm [shape: f32[1,128], index: 15, kind: input, shape index: {}]   ;;  %s4508_s16 = inlined_call_operand.hbm [shape: f32[1,128], index: 16, kind: input, shape index: {}]   ;;  %s4509_s17 = inlined_call_operand.vmem [shape: s8[128,256], index: 17, kind: input, shape index: {}]   ;;  %s4510_s18 = inlined_call_operand.vmem [shape: f32[1,256], index: 18, kind: input, shape index: {}]   ;;  %s4511_s19 = inlined_call_operand.vmem [shape: f32[1,256], index: 19, kind: input, shape index: {}]   ;;  %s4512_s20 = inlined_call_operand.hbm [shape: f32[8,128], index: 20, kind: output, shape index: {0}]   ;;  %s4513_s21 = inlined_call_operand.hbm [shape: f32[8,128], index: 21, kind: output, shape index: {1}]   ;;  %s4514_s22 = inlined_call_operand.hbm [shape: f32[8,256], index: 22, kind: output, shape index: {2}]   ;;  %s4515_s23 = inlined_call_operand.hbm [shape: f32[8,256], index: 23, kind: output, shape index: {3}]  }
   0x1   :  { %4574 = sst [smem:[#allocation56_spill]] %s4492_s0 }
   0x2   :  { %4575 = sst [smem:[#allocation57_spill]] %s4493_s1 }
   0x3   :  { %4576 = sst [smem:[#allocation58_spill]] %s4494_s2 }
   0x4   :  { %4577 = sst [smem:[#allocation59_spill]] %s4495_s3 }
   0x5   :  { %4578 = sst [smem:[#allocation60_spill]] %s4496_s4 }
   0x6   :  { %4579 = sst [smem:[#allocation61_spill]] %s4497_s5 }
   0x7   :  { %4580 = sst [smem:[#allocation62_spill]] %s4498_s6 }
   0x8   :  { %4581 = sst [smem:[#allocation63_spill]] %s4499_s7 }
   0x9   :  { %4582 = sst [smem:[#allocation64_spill]] %s4501_s9 }
   0xa   :  { %4583 = sst [smem:[#allocation65_spill]] %s4502_s10 }
   0xb   :  { %4584 = sst [smem:[#allocation66_spill]] %s4504_s12 }
   0xc   :  { %4585 = sst [smem:[#allocation67_spill]] %s4505_s13 }
   0xd   :  { %4586 = sst [smem:[#allocation68_spill]] %s4507_s15 }
   0xe   :  { %4587 = sst [smem:[#allocation69_spill]] %s4509_s17 }
   0xf   :  { %4588 = sst [smem:[#allocation70_spill]] %s4510_s18 }
  0x10   :  { %4589 = sst [smem:[#allocation71_spill]] %s4511_s19 }
  0x11   :  { %4590 = sst [smem:[#allocation72_spill]] %s4512_s20 }
  0x12   :  { %4591 = sst [smem:[#allocation73_spill]] %s4513_s21 }
  0x13   :  { %4592 = sst [smem:[#allocation74_spill]] %s4514_s22 }
  0x14   :  { %4593 = sst [smem:[#allocation75_spill]] %s4515_s23 }
  0x15   :  { %29 = vsyncpa [#allocation6], 0 }
  0x16   :  { %30 = vsyncpa [#allocation9], 0 }
  0x17   :  { %31 = vsyncpa [#allocation12], 0 }
  0x18   :  { %32 = vsyncpa [#allocation19], 0 }
  0x19   :  { %34 = vsyncpa [#allocation19 + $0x1], 0 }
  0x1a   :  { %35 = vsyncpa [#allocation22], 0 }
  0x1b   :  { %37 = vsyncpa [#allocation22 + $0x1], 0 }
  0x1c   :  { %38 = vsyncpa [#allocation25], 0 }
  0x1d   :  { %39 = vsyncpa [#allocation28], 0 }
  0x1e   :  { %40 = vsyncpa [#allocation7], 0 }
  0x1f   :  { %41 = vsyncpa [#allocation32], 0 }
  0x20   :  { %42 = vsyncpa [#allocation35], 0  ;;  %s3503_s4 = smov 0   ;;  %s3505_s30 = smov 0  }
  0x21   :  { %s3507_s24 = smov 0   ;;  %s3509_s25 = smov 0  }
  0x22 LB: > { %4594 = sst [smem:[#allocation49_spill]] %s3340_s30  ;;  %s3350_s5 = smov [#allocation5]   ;;  %s3348_s25 = sphi %s3509_s25, %s4672_s25   ;;  %s3344_s24 = sphi %s3507_s24, %s4675_s24   ;;  %s3340_s30 = sphi %s3505_s30, %s4674_s30   ;;  %s3336_s4 = sphi %s3503_s4, %s4673_s4  }
  0x23   : > { %4595 = sst [smem:[#allocation50_spill]] %s3344_s24  ;;  %s604_s1 = sshll.u32 %s3350_s5, 4  ;;  %s3530_s1 = int_to_ptr.vmem [resolvable:$true] %s604_s1 }
  0x24   : > { %s3524_s26 = sadd.s32 4294967295, %s3348_s25   ;;  %p2256_p0 = scmp.ge.s32.totalorder %s3348_s25, 1 }
  0x25   : > { %4596 = sst [smem:[#allocation51_spill]] %s3524_s26  ;;  %p4534_p1 = scmp.eq.s32.totalorder %s3524_s26, 0 }
  0x26   : > { %p592_p2 = scmp.lt.s32.totalorder %s3348_s25, 3  ;;  %s3351_s6 = smov [#allocation8]  }
  0x27   : > { %s617_s27 = sshll.u32 %s3351_s6, 4  ;;  %s4600_s3 = sld [smem:[#allocation56_spill]]  ;;  %s3544_s27 = int_to_ptr.vmem [resolvable:$true] %s617_s27 }
  0x28   : > { %p3532_p4 = pnand %p2256_p0, %p592_p2 }
  0x2a   : > { %s4597_s2 = scalar_select %p3532_p4, 1, 0 }
  0x2b   : > { %p2524_p5 = pneg %p3532_p4 }
  0x2c   : > { %4598 = sst [smem:[#allocation52_spill]] %s4597_s2 }
  0x2d   : > { %p3540_p6 = pnand %p2524_p5, %p4534_p1  ;;  %s2672_s0 = scalar_lea.hbm %s4600_s3, 512 }
  0x2e   : > { %p2673_p7 = scmp.ne.s32.totalorder %s4600_s3, %s2672_s0  ;;  %p2679_p11 = scmp.lt.u32.totalorder %s2672_s0, %s4600_s3 }
  0x2f   : > { %s4599_s7 = scalar_select %p3540_p6, 1, 0 }
  0x30   : > { %p3554_p8 = pneg %p3540_p6 }
  0x32   : > { %s4601_s22 = scalar_select %p3554_p8, 1, 0 }
  0x33   : > { %p2675_p9 = pnand %p3554_p8, %p2673_p7 }
  0x35   : > { %p2676_p10 = pneg %p2675_p9 }
  0x37   : > { %p2681_p12 = pnand %p2679_p11, %p2676_p10 }
  0x39   : > { %2684 = shalt.err (!%p2681_p12)
}
  0x3a   : > { %s2685_s23 = scalar_lea.vmem %s3530_s1, 512  ;;  %p2693_p5 = scmp.lt.s32.totalorder %s3530_s1, %s3530_s1 }
  0x3b   : > { %p2686_p13 = scmp.ne.s32.totalorder %s3530_s1, %s2685_s23  ;;  %p2694_p3 = scmp.lt.s32.totalorder %s2685_s23, %s2685_s23 }
  0x3d   : > { %p2688_p0 = pnand %p2686_p13, %p3554_p8  ;;  %p2695_p7 = por %p2694_p3, %p2693_p5 }
  0x3f   : > { %p2689_p2 = pneg %p2688_p0 }
  0x41   : > { %p2696_p9 = pnand %p2695_p7, %p2689_p2 }
  0x43   : > { %2699 = shalt.err (!%p2696_p9)
}
  0x44   : > { %s3352_s28 = smov 64   ;;  %s3353_s20 = smov 4  }
  0x45   : > { %2527 = dma.hbm_to_vmem [thread:$0]  (!%p3540_p6), %s4600_s3, 512, %s3530_s1, [#allocation6], %s3352_s28, %s3352_s28, %s3353_s20  }
  0x46   : > { %s4602_s21 = sld [smem:[#allocation57_spill]] }
  0x4c   : > { %s2700_s19 = scalar_lea.hbm %s4602_s21, 1024 }
  0x4d   : > { %p2701_p3 = scmp.ne.s32.totalorder %s4602_s21, %s2700_s19  ;;  %p2707_p12 = scmp.lt.u32.totalorder %s2700_s19, %s4602_s21 }
  0x4f   : > { %p2703_p10 = pnand %p2701_p3, %p3554_p8 }
  0x51   : > { %p2704_p11 = pneg %p2703_p10 }
  0x53   : > { %p2709_p13 = pnand %p2707_p12, %p2704_p11 }
  0x55   : > { %2712 = shalt.err (!%p2709_p13)
}
  0x56   : > { %s2713_s1 = scalar_lea.vmem %s3544_s27, 1024  ;;  %p2721_p7 = scmp.lt.s32.totalorder %s3544_s27, %s3544_s27 }
  0x57   : > { %p2714_p0 = scmp.ne.s32.totalorder %s3544_s27, %s2713_s1  ;;  %p2722_p9 = scmp.lt.s32.totalorder %s2713_s1, %s2713_s1 }
  0x59   : > { %p2716_p2 = pnand %p2714_p0, %p3554_p8  ;;  %p2723_p3 = por %p2722_p9, %p2721_p7 }
  0x5b   : > { %p2717_p5 = pneg %p2716_p2 }
  0x5d   : > { %p2724_p10 = pnand %p2723_p3, %p2717_p5 }
  0x5f   : > { %2727 = shalt.err (!%p2724_p10)
}
  0x60   : > { %2530 = dma.hbm_to_vmem [thread:$0]  (!%p3540_p6), %s4602_s21, 1024, %s3544_s27, [#allocation9], %s3352_s28, %s3352_s28, %s3353_s20  }
  0x61   : > { %s3599_s19 = sadd.s32 1, %s3348_s25   ;;  %s139_s2 = sadd.s32 1, %s3344_s24 }
  0x62   : > { %4603 = sst [smem:[#allocation53_spill]] %s3599_s19  ;;  %s136_s29 = ssub.s32 %s3348_s25, %s3599_s19 }
  0x63   : > { %p146_p11 = scmp.ne.s32.totalorder %s3344_s24, %s3340_s30  ;;  %p137_p12 = scmp.eq.s32.totalorder %s136_s29, 0 }
  0x64   : > { %p147_p13 = scmp.eq.s32.totalorder %s3348_s25, 0  ;;  %p152_p0 = scmp.ne.s32.totalorder %s3340_s30, %s3336_s4 }
  0x65   : > { %p2587_p2 = scmp.lt.s32.totalorder %s3348_s25, 2  ;;  %s3620_s27 = sand.u32 1, %s3348_s25  }
  0x66   : > { %s3611_s0 = scalar_select %p137_p12, %s3344_s24, %s139_s2  }
  0x67   : > { %p148_p5 = por %p147_p13, %p146_p11  ;;  %p3615_p7 = por %p4534_p1, %p152_p0 }
  0x68   : > { %4604 = sst [smem:[#allocation54_spill]] %s3611_s0  ;;  %s3623_s28 = sand.u32 1, %s3344_s24  }
  0x69   : > { %s4605_s5 = scalar_select %p3615_p7, 1, 0 }
  0x6a   : > { %s4532_s20 = sshll.u32 %s3623_s28, 5  ;;  %s4533_s6 = sshll.u32 %s3348_s25, 7 }
  0x6b   : > { %4606 = sst [smem:[#allocation55_spill]] %s4605_s5  ;;  %s4607_s1 = sld [smem:[#allocation60_spill]] }
  0x6c   : > { %s732_s18 = scalar_lea.vmem [#allocation13], %s4532_s20  ;;  %p3638_p9 = pnand %p2587_p2, %p148_p5 }
  0x6d   : > { %s738_s2 = sshll.u32 %s732_s18, 4  ;;  %s3643_s3 = scalar_lea.sflag [#allocation6], %s3620_s27  ;;  %s3636_s2 = int_to_ptr.vmem [resolvable:$true] %s738_s2 }
  0x6e   : > { %s4608_s29 = scalar_select %p3638_p9, 1, 0 }
  0x6f   : > { %p3649_p10 = pneg %p3638_p9 }
  0x71   : > { %s3632_s17 = scalar_lea.hbm %s4607_s1, %s4533_s6  ;;  %s2733_s20 = scalar_lea.hbm %s4607_s1, 1024 }
  0x72   : > { %s2728_s21 = scalar_lea.hbm %s3632_s17, 512  ;;  %p2734_p13 = scmp.lt.u32.totalorder %s3632_s17, %s4607_s1 }
  0x73   : > { %p2729_p3 = scmp.ne.s32.totalorder %s3632_s17, %s2728_s21  ;;  %p2735_p0 = scmp.lt.u32.totalorder %s2733_s20, %s2728_s21 }
  0x74   : > { %s4609_s4 = scalar_select %p3649_p10, 1, 0 }
  0x75   : > { %p2731_p11 = pnand %p3649_p10, %p2729_p3  ;;  %p2736_p2 = por %p2735_p0, %p2734_p13 }
  0x76   : > { %p2737_p5 = scmp.lt.u32.totalorder %s2728_s21, %s3632_s17 }
  0x77   : > { %p2732_p12 = pneg %p2731_p11 }
  0x78   : > { %p2738_p1 = por %p2737_p5, %p2736_p2 }
  0x7a   : > { %p2739_p7 = pnand %p2738_p1, %p2732_p12 }
  0x7c   : > { %2742 = shalt.err (!%p2739_p7)
}
  0x7d   : > { %s2743_s24 = scalar_lea.vmem %s3636_s2, 512  ;;  %s3354_s23 = smov [#allocation13]  }
  0x7e   : > { %p2744_p3 = scmp.ne.s32.totalorder %s3636_s2, %s2743_s24  ;;  %s2748_s18 = sshll.u32 %s3354_s23, 4  ;;  %s2749_s18 = int_to_ptr.vmem [resolvable:$false] %s2748_s18 }
  0x7f   : > { %s2750_s0 = scalar_lea.vmem %s2749_s18, 1024  ;;  %p2751_p6 = scmp.lt.s32.totalorder %s3636_s2, %s2749_s18 }
  0x80   : > { %p2746_p11 = pnand %p2744_p3, %p3649_p10  ;;  %p2752_p8 = scmp.lt.s32.totalorder %s2750_s0, %s2743_s24 }
  0x82   : > { %p2747_p4 = pneg %p2746_p11  ;;  %p2753_p13 = por %p2752_p8, %p2751_p6 }
  0x84   : > { %p2754_p0 = pnand %p2753_p13, %p2747_p4 }
  0x86   : > { %2757 = shalt.err (!%p2754_p0)
}
  0x87   : > { %s4555_s21 = smov 256   ;;  %s4558_s20 = smov 128  }
  0x88   : > { %s4562_s6 = smov 8   ;;  %s3358_s23 = smov [#allocation10]  }
  0x89   : > { %2558 = dma.hbm_to_vmem [thread:$0]  (!%p3638_p9), %s3632_s17, 512, %s3636_s2, %s3643_s3, %s4555_s21, %s4558_s20, %s4562_s6  }
  0x8a   : > { %s631_s1 = sshll.u32 %s3358_s23, 4  ;;  %s3359_s18 = smov [#allocation11]   ;;  %s632_s1 = int_to_ptr.vmem [resolvable:$true] %s631_s1 }
  0x8b   : > { %s642_s24 = sshll.u32 %s3359_s18, 4  ;;  %s4610_s5 = sld [smem:[#allocation58_spill]]  ;;  %s3676_s24 = int_to_ptr.vmem [resolvable:$true] %s642_s24 }
  0x8c   : > { %p4611_p4 = scmp.ne.s32.totalorder %s4601_s22, 0 }
  0x91   : > { %s2758_s30 = scalar_lea.hbm %s4610_s5, 16 }
  0x92   : > { %p2759_p1 = scmp.ne.s32.totalorder %s4610_s5, %s2758_s30  ;;  %p2765_p7 = scmp.lt.u32.totalorder %s2758_s30, %s4610_s5 }
  0x94   : > { %p2761_p6 = pnand %p2759_p1, %p4611_p4 }
  0x96   : > { %p2762_p8 = pneg %p2761_p6 }
  0x98   : > { %p2767_p12 = pnand %p2765_p7, %p2762_p8 }
  0x9a   : > { %2770 = shalt.err (!%p2767_p12)
}
  0x9b   : > { %s2771_s2 = scalar_lea.vmem %s632_s1, 16  ;;  %s2778_s19 = scalar_lea.vmem %s632_s1, 32 }
  0x9c   : > { %p2772_p2 = scmp.ne.s32.totalorder %s632_s1, %s2771_s2  ;;  %p2779_p11 = scmp.lt.s32.totalorder %s632_s1, %s632_s1 }
  0x9d   : > { %p2780_p13 = scmp.lt.s32.totalorder %s2778_s19, %s2771_s2 }
  0x9e   : > { %p2774_p5 = pnand %p2772_p2, %p4611_p4 }
  0x9f   : > { %p2781_p0 = por %p2780_p13, %p2779_p11 }
  0xa0   : > { %p2775_p3 = pneg %p2774_p5 }
  0xa2   : > { %p2782_p9 = pnand %p2781_p0, %p2775_p3 }
  0xa4   : > { %2785 = shalt.err (!%p2782_p9)
}
  0xa5   : > { %p4612_p1 = scmp.ne.s32.totalorder %s4599_s7, 0  ;;  %s4613_s23 = sld [smem:[#allocation59_spill]] }
  0xa7   : > { %2533 = dma.hbm_to_vmem [thread:$0]  (!%p4612_p1), %s4610_s5, 16, %s632_s1, [#allocation9]  }
  0xab   : > { %s2786_s18 = scalar_lea.hbm %s4613_s23, 16 }
  0xac   : > { %p2787_p6 = scmp.ne.s32.totalorder %s4613_s23, %s2786_s18  ;;  %p2793_p9 = scmp.lt.u32.totalorder %s2786_s18, %s4613_s23 }
  0xae   : > { %p2789_p8 = pnand %p2787_p6, %p4611_p4 }
  0xb0   : > { %p2790_p7 = pneg %p2789_p8 }
  0xb2   : > { %p2795_p12 = pnand %p2793_p9, %p2790_p7 }
  0xb4   : > { %2798 = shalt.err (!%p2795_p12)
}
  0xb5   : > { %s2799_s1 = scalar_lea.vmem %s3676_s24, 16  ;;  %s2806_s12 = scalar_lea.vmem %s3676_s24, 32 }
  0xb6   : > { %p2800_p2 = scmp.ne.s32.totalorder %s3676_s24, %s2799_s1  ;;  %p2807_p11 = scmp.lt.s32.totalorder %s3676_s24, %s3676_s24 }
  0xb7   : > { %p2808_p13 = scmp.lt.s32.totalorder %s2806_s12, %s2799_s1 }
  0xb8   : > { %p2802_p5 = pnand %p2800_p2, %p4611_p4 }
  0xb9   : > { %p2809_p0 = por %p2808_p13, %p2807_p11 }
  0xba   : > { %p2803_p3 = pneg %p2802_p5 }
  0xbc   : > { %p2810_p6 = pnand %p2809_p0, %p2803_p3 }
  0xbe   : > { %2813 = shalt.err (!%p2810_p6)
}
  0xbf   : > { %2536 = dma.hbm_to_vmem [thread:$0]  (!%p4612_p1), %s4613_s23, 16, %s3676_s24, [#allocation12]  }
  0xc0   : > { %s3360_s30 = smov [#allocation24]   ;;  %s3361_s0 = smov [#allocation27]  }
  0xc1   : > { %s675_s18 = sshll.u32 %s3360_s30, 4  ;;  %s697_s17 = sshll.u32 %s3361_s0, 4  ;;  %s676_s18 = int_to_ptr.vmem [resolvable:$true] %s675_s18  ;;  %s3720_s17 = int_to_ptr.vmem [resolvable:$true] %s697_s17 }
  0xc2   : > { %s4614_s13 = sld [smem:[#allocation67_spill]] }
  0xc8   : > { %s2814_s1 = scalar_lea.hbm %s4614_s13, 16 }
  0xc9   : > { %p2815_p8 = scmp.ne.s32.totalorder %s4614_s13, %s2814_s1  ;;  %p2821_p12 = scmp.lt.u32.totalorder %s2814_s1, %s4614_s13 }
  0xcb   : > { %p2817_p7 = pnand %p2815_p8, %p4611_p4 }
  0xcd   : > { %p2818_p9 = pneg %p2817_p7 }
  0xcf   : > { %p2823_p2 = pnand %p2821_p12, %p2818_p9 }
  0xd1   : > { %2826 = shalt.err (!%p2823_p2)
}
  0xd2   : > { %s2827_s10 = scalar_lea.vmem %s676_s18, 16  ;;  %s2834_s30 = scalar_lea.vmem %s676_s18, 32 }
  0xd3   : > { %p2828_p5 = scmp.ne.s32.totalorder %s676_s18, %s2827_s10  ;;  %p2835_p13 = scmp.lt.s32.totalorder %s676_s18, %s676_s18 }
  0xd4   : > { %p2836_p0 = scmp.lt.s32.totalorder %s2834_s30, %s2827_s10 }
  0xd5   : > { %p2830_p3 = pnand %p2828_p5, %p4611_p4 }
  0xd6   : > { %p2837_p6 = por %p2836_p0, %p2835_p13 }
  0xd7   : > { %p2831_p11 = pneg %p2830_p3 }
  0xd9   : > { %p2838_p10 = pnand %p2837_p6, %p2831_p11 }
  0xdb   : > { %2841 = shalt.err (!%p2838_p10)
}
  0xdc   : > { %2545 = dma.hbm_to_vmem [thread:$0]  (!%p4612_p1), %s4614_s13, 16, %s676_s18, [#allocation25]  }
  0xdd   : > { %s4615_s15 = sld [smem:[#allocation68_spill]] }
  0xe3   : > { %s2842_s1 = scalar_lea.hbm %s4615_s15, 16 }
  0xe4   : > { %p2843_p8 = scmp.ne.s32.totalorder %s4615_s15, %s2842_s1  ;;  %p2849_p10 = scmp.lt.u32.totalorder %s2842_s1, %s4615_s15 }
  0xe6   : > { %p2845_p7 = pnand %p2843_p8, %p4611_p4 }
  0xe8   : > { %p2846_p9 = pneg %p2845_p7 }
  0xea   : > { %p2851_p12 = pnand %p2849_p10, %p2846_p9 }
  0xec   : > { %2854 = shalt.err (!%p2851_p12)
}
  0xed   : > { %s2855_s18 = scalar_lea.vmem %s3720_s17, 16  ;;  %s2862_s30 = scalar_lea.vmem %s3720_s17, 32 }
  0xee   : > { %p2856_p2 = scmp.ne.s32.totalorder %s3720_s17, %s2855_s18  ;;  %p2863_p11 = scmp.lt.s32.totalorder %s3720_s17, %s3720_s17 }
  0xef   : > { %p2864_p13 = scmp.lt.s32.totalorder %s2862_s30, %s2855_s18 }
  0xf0   : > { %p2858_p5 = pnand %p2856_p2, %p4611_p4 }
  0xf1   : > { %p2865_p0 = por %p2864_p13, %p2863_p11 }
  0xf2   : > { %p2859_p3 = pneg %p2858_p5 }
  0xf4   : > { %p2866_p6 = pnand %p2865_p0, %p2859_p3 }
  0xf6   : > { %2869 = shalt.err (!%p2866_p6)
}
  0xf7   : > { %2551 = dma.hbm_to_vmem [thread:$0]  (!%p4612_p1), %s4615_s15, 16, %s3720_s17, [#allocation28]  }
  0xf8   : > { %s3765_s2 = sshll.u32 %s3348_s25, 4  ;;  %s4616_s12 = sld [smem:[#allocation61_spill]] }
  0xf9   : > { %s751_s24 = scalar_lea.vmem [#allocation14], %s3623_s28  ;;  %p4617_p7 = scmp.ne.s32.totalorder %s4609_s4, 0 }
  0xfa   : > { %s758_s10 = sshll.u32 %s751_s24, 4  ;;  %s759_s10 = int_to_ptr.vmem [resolvable:$true] %s758_s10 }
  0xfe   : > { %s3771_s26 = scalar_lea.hbm %s4616_s12, %s3765_s2  ;;  %s2875_s21 = scalar_lea.hbm %s4616_s12, 32 }
  0xff   : > { %s2870_s18 = scalar_lea.hbm %s3771_s26, 16  ;;  %p2876_p12 = scmp.lt.u32.totalorder %s3771_s26, %s4616_s12 }
 0x100   : > { %p2871_p8 = scmp.ne.s32.totalorder %s3771_s26, %s2870_s18  ;;  %p2877_p2 = scmp.lt.u32.totalorder %s2875_s21, %s2870_s18 }
 0x101   : > { %p2879_p3 = scmp.lt.u32.totalorder %s2870_s18, %s3771_s26 }
 0x102   : > { %p2873_p9 = pnand %p2871_p8, %p4617_p7  ;;  %p2878_p5 = por %p2877_p2, %p2876_p12 }
 0x104   : > { %p2874_p10 = pneg %p2873_p9  ;;  %p2880_p11 = por %p2879_p3, %p2878_p5 }
 0x106   : > { %p2881_p13 = pnand %p2880_p11, %p2874_p10 }
 0x108   : > { %2884 = shalt.err (!%p2881_p13)
}
 0x109   : > { %s2885_s1 = scalar_lea.vmem %s759_s10, 16  ;;  %s3362_s24 = smov [#allocation14]  }
 0x10a   : > { %p2886_p0 = scmp.ne.s32.totalorder %s759_s10, %s2885_s1  ;;  %s2890_s20 = sshll.u32 %s3362_s24, 4  ;;  %s2891_s20 = int_to_ptr.vmem [resolvable:$false] %s2890_s20 }
 0x10b   : > { %s2892_s17 = scalar_lea.vmem %s2891_s20, 32  ;;  %p2893_p9 = scmp.lt.s32.totalorder %s759_s10, %s2891_s20 }
 0x10c   : > { %p2888_p6 = pnand %p2886_p0, %p4617_p7  ;;  %p2894_p1 = scmp.lt.s32.totalorder %s2892_s17, %s2885_s1 }
 0x10e   : > { %p2889_p8 = pneg %p2888_p6  ;;  %p2895_p4 = por %p2894_p1, %p2893_p9 }
 0x110   : > { %p2896_p2 = pnand %p2895_p4, %p2889_p8 }
 0x112   : > { %2899 = shalt.err (!%p2896_p2)
}
 0x113   : > { %p4618_p12 = scmp.ne.s32.totalorder %s4608_s29, 0  ;;  %s2272_s18 = sshll.u32 %s3623_s28, 4 }
 0x114   : > { %s4619_s30 = sshll.u32 %s3348_s25, 7  ;;  %s4620_s9 = sld [smem:[#allocation64_spill]] }
 0x115   : > { %2561 = dma.hbm_to_vmem [thread:$0]  (!%p4618_p12), %s3771_s26, 16, %s759_s10, %s3643_s3  }
 0x116   : > { %s786_s19 = scalar_lea.vmem [#allocation18], %s2272_s18  ;;  %s3806_s6 = scalar_lea.hbm %s4503_s11, %s3765_s2 }
 0x117   : > { %s792_s1 = sshll.u32 %s786_s19, 4  ;;  %s783_s26 = scalar_lea.sflag [#allocation19], %s3620_s27  ;;  %s3800_s1 = int_to_ptr.vmem [resolvable:$true] %s792_s1 }
 0x11a   : > { %s3798_s20 = scalar_lea.hbm %s4620_s9, %s4619_s30  ;;  %s2905_s0 = scalar_lea.hbm %s4620_s9, 512 }
 0x11b   : > { %s2900_s10 = scalar_lea.hbm %s3798_s20, 256  ;;  %p2906_p5 = scmp.lt.u32.totalorder %s3798_s20, %s4620_s9 }
 0x11c   : > { %p2901_p4 = scmp.ne.s32.totalorder %s3798_s20, %s2900_s10  ;;  %p2907_p3 = scmp.lt.u32.totalorder %s2905_s0, %s2900_s10 }
 0x11d   : > { %p2909_p13 = scmp.lt.u32.totalorder %s2900_s10, %s3798_s20 }
 0x11e   : > { %p2903_p1 = pnand %p2901_p4, %p4617_p7  ;;  %p2908_p11 = por %p2907_p3, %p2906_p5 }
 0x120   : > { %p2904_p10 = pneg %p2903_p1  ;;  %p2910_p0 = por %p2909_p13, %p2908_p11 }
 0x122   : > { %p2911_p6 = pnand %p2910_p0, %p2904_p10 }
 0x124   : > { %2914 = shalt.err (!%p2911_p6)
}
 0x125   : > { %s2915_s19 = scalar_lea.vmem %s3800_s1, 256  ;;  %s3363_s24 = smov [#allocation18]  }
 0x126   : > { %p2916_p8 = scmp.ne.s32.totalorder %s3800_s1, %s2915_s19  ;;  %s2920_s17 = sshll.u32 %s3363_s24, 4  ;;  %s2921_s17 = int_to_ptr.vmem [resolvable:$false] %s2920_s17 }
 0x127   : > { %s2922_s5 = scalar_lea.vmem %s2921_s17, 512  ;;  %p2923_p4 = scmp.lt.s32.totalorder %s3800_s1, %s2921_s17 }
 0x128   : > { %p2918_p9 = pnand %p2916_p8, %p4617_p7  ;;  %p2924_p1 = scmp.lt.s32.totalorder %s2922_s5, %s2915_s19 }
 0x12a   : > { %p2919_p2 = pneg %p2918_p9  ;;  %p2925_p5 = por %p2924_p1, %p2923_p4 }
 0x12c   : > { %p2926_p3 = pnand %p2925_p5, %p2919_p2 }
 0x12e   : > { %2929 = shalt.err (!%p2926_p3)
}
 0x12f   : > { %s4621_s10 = smov 8   ;;  %s4622_s30 = smov 128  }
 0x130   : > { %s4623_s21 = smov 256   ;;  %s822_s0 = scalar_lea.vmem [#allocation21], %s3623_s28 }
 0x131   : > { %2567 = dma.hbm_to_vmem [thread:$0]  (!%p4618_p12), %s3798_s20, 256, %s3800_s1, %s783_s26, %s4623_s21, %s4622_s30, %s4621_s10  }
 0x132   : > { %s829_s18 = sshll.u32 %s822_s0, 4  ;;  %s3364_s19 = smov [#allocation16]   ;;  %s3836_s18 = int_to_ptr.vmem [resolvable:$true] %s829_s18 }
 0x133   : > { %s3838_s24 = sshll.u32 %s3364_s19, 4  ;;  %s4569_s17 = scalar_lea.sflag [#allocation22], %s3620_s27  ;;  %s654_s24 = int_to_ptr.vmem [resolvable:$true] %s3838_s24 }
 0x134   : > { %s2930_s5 = scalar_lea.hbm %s3806_s6, 16  ;;  %s2935_s13 = scalar_lea.hbm %s4503_s11, 32 }
 0x135   : > { %p2931_p10 = scmp.ne.s32.totalorder %s3806_s6, %s2930_s5  ;;  %p2936_p0 = scmp.lt.u32.totalorder %s3806_s6, %s4503_s11 }
 0x136   : > { %p2937_p6 = scmp.lt.u32.totalorder %s2935_s13, %s2930_s5  ;;  %p2939_p9 = scmp.lt.u32.totalorder %s2930_s5, %s3806_s6 }
 0x137   : > { %p2933_p11 = pnand %p2931_p10, %p4617_p7 }
 0x138   : > { %p2938_p8 = por %p2937_p6, %p2936_p0 }
 0x139   : > { %p2934_p13 = pneg %p2933_p11 }
 0x13a   : > { %p2940_p2 = por %p2939_p9, %p2938_p8 }
 0x13c   : > { %p2941_p4 = pnand %p2940_p2, %p2934_p13 }
 0x13e   : > { %2944 = shalt.err (!%p2941_p4)
}
 0x13f   : > { %s2945_s20 = scalar_lea.vmem %s3836_s18, 16  ;;  %s3365_s9 = smov [#allocation21]  }
 0x140   : > { %p2946_p1 = scmp.ne.s32.totalorder %s3836_s18, %s2945_s20  ;;  %s2950_s12 = sshll.u32 %s3365_s9, 4  ;;  %s2951_s12 = int_to_ptr.vmem [resolvable:$false] %s2950_s12 }
 0x141   : > { %s2952_s15 = scalar_lea.vmem %s2951_s12, 32  ;;  %p2953_p10 = scmp.lt.s32.totalorder %s3836_s18, %s2951_s12 }
 0x142   : > { %p2948_p5 = pnand %p2946_p1, %p4617_p7  ;;  %p2954_p11 = scmp.lt.s32.totalorder %s2952_s15, %s2945_s20 }
 0x144   : > { %p2949_p3 = pneg %p2948_p5  ;;  %p2955_p0 = por %p2954_p11, %p2953_p10 }
 0x146   : > { %p2956_p6 = pnand %p2955_p0, %p2949_p3 }
 0x148   : > { %2959 = shalt.err (!%p2956_p6)
}
 0x149   : > { %2573 = dma.hbm_to_vmem [thread:$0]  (!%p4618_p12), %s3806_s6, 16, %s3836_s18, %s4569_s17  }
 0x14a   : > { %s4624_s1 = sld [smem:[#allocation63_spill]]  ;;  %p4625_p8 = scmp.ne.s32.totalorder %s4601_s22, 0 }
 0x150   : > { %s2960_s21 = scalar_lea.hbm %s4624_s1, 16 }
 0x151   : > { %p2961_p13 = scmp.ne.s32.totalorder %s4624_s1, %s2960_s21  ;;  %p2967_p4 = scmp.lt.u32.totalorder %s2960_s21, %s4624_s1 }
 0x153   : > { %p2963_p9 = pnand %p2961_p13, %p4625_p8 }
 0x155   : > { %p2964_p2 = pneg %p2963_p9 }
 0x157   : > { %p2969_p1 = pnand %p2967_p4, %p2964_p2 }
 0x159   : > { %2972 = shalt.err (!%p2969_p1)
}
 0x15a   : > { %s2973_s9 = scalar_lea.vmem %s654_s24, 16  ;;  %s2980_s6 = scalar_lea.vmem %s654_s24, 32 }
 0x15b   : > { %p2974_p5 = scmp.ne.s32.totalorder %s654_s24, %s2973_s9  ;;  %p2981_p11 = scmp.lt.s32.totalorder %s654_s24, %s654_s24 }
 0x15c   : > { %p2982_p0 = scmp.lt.s32.totalorder %s2980_s6, %s2973_s9 }
 0x15d   : > { %p2976_p3 = pnand %p2974_p5, %p4625_p8 }
 0x15e   : > { %p2983_p6 = por %p2982_p0, %p2981_p11 }
 0x15f   : > { %p2977_p10 = pneg %p2976_p3 }
 0x161   : > { %p2984_p12 = pnand %p2983_p6, %p2977_p10 }
 0x163   : > { %2987 = shalt.err (!%p2984_p12)
}
 0x164   : > { %p4626_p13 = scmp.ne.s32.totalorder %s4599_s7, 0  ;;  %s3366_s15 = smov [#allocation17]  }
 0x165   : > { %s664_s13 = sshll.u32 %s3366_s15, 4  ;;  %s3367_s23 = smov [#allocation26]   ;;  %s665_s13 = int_to_ptr.vmem [resolvable:$true] %s664_s13 }
 0x166   : > { %2539 = dma.hbm_to_vmem [thread:$0]  (!%p4626_p13), %s4624_s1, 16, %s654_s24, [#allocation9]  }
 0x167   : > { %s686_s21 = sshll.u32 %s3367_s23, 4  ;;  %s2988_s5 = scalar_lea.hbm %s4500_s8, 16  ;;  %s687_s21 = int_to_ptr.vmem [resolvable:$true] %s686_s21 }
 0x168   : > { %p2989_p12 = scmp.ne.s32.totalorder %s4500_s8, %s2988_s5  ;;  %p2995_p4 = scmp.lt.u32.totalorder %s2988_s5, %s4500_s8 }
 0x16a   : > { %p2991_p9 = pnand %p2989_p12, %p4625_p8 }
 0x16c   : > { %p2992_p2 = pneg %p2991_p9 }
 0x16e   : > { %p2997_p1 = pnand %p2995_p4, %p2992_p2 }
 0x170   : > { %3000 = shalt.err (!%p2997_p1)
}
 0x171   : > { %s3001_s24 = scalar_lea.vmem %s665_s13, 16  ;;  %s3008_s12 = scalar_lea.vmem %s665_s13, 32 }
 0x172   : > { %p3002_p5 = scmp.ne.s32.totalorder %s665_s13, %s3001_s24  ;;  %p3009_p11 = scmp.lt.s32.totalorder %s665_s13, %s665_s13 }
 0x173   : > { %p3010_p0 = scmp.lt.s32.totalorder %s3008_s12, %s3001_s24 }
 0x174   : > { %p3004_p3 = pnand %p3002_p5, %p4625_p8 }
 0x175   : > { %p3011_p6 = por %p3010_p0, %p3009_p11 }
 0x176   : > { %p3005_p10 = pneg %p3004_p3 }
 0x178   : > { %p3012_p7 = pnand %p3011_p6, %p3005_p10 }
 0x17a   : > { %3015 = shalt.err (!%p3012_p7)
}
 0x17b   : > { %2542 = dma.hbm_to_vmem [thread:$0]  (!%p4626_p13), %s4500_s8, 16, %s665_s13, [#allocation12]  }
 0x17c   : > { %s3016_s5 = scalar_lea.hbm %s4506_s14, 16 }
 0x17d   : > { %p3017_p12 = scmp.ne.s32.totalorder %s4506_s14, %s3016_s5  ;;  %p3023_p7 = scmp.lt.u32.totalorder %s3016_s5, %s4506_s14 }
 0x17f   : > { %p3019_p9 = pnand %p3017_p12, %p4625_p8 }
 0x181   : > { %p3020_p2 = pneg %p3019_p9 }
 0x183   : > { %p3025_p4 = pnand %p3023_p7, %p3020_p2 }
 0x185   : > { %3028 = shalt.err (!%p3025_p4)
}
 0x186   : > { %s3029_s24 = scalar_lea.vmem %s687_s21, 16  ;;  %s3036_s13 = scalar_lea.vmem %s687_s21, 32 }
 0x187   : > { %p3030_p1 = scmp.ne.s32.totalorder %s687_s21, %s3029_s24  ;;  %p3037_p10 = scmp.lt.s32.totalorder %s687_s21, %s687_s21 }
 0x188   : > { %p3038_p11 = scmp.lt.s32.totalorder %s3036_s13, %s3029_s24 }
 0x189   : > { %p3032_p5 = pnand %p3030_p1, %p4625_p8 }
 0x18a   : > { %p3039_p0 = por %p3038_p11, %p3037_p10 }
 0x18b   : > { %p3033_p3 = pneg %p3032_p5 }
 0x18d   : > { %p3040_p6 = pnand %p3039_p0, %p3033_p3 }
 0x18f   : > { %3043 = shalt.err (!%p3040_p6)
}
 0x190   : > { %2548 = dma.hbm_to_vmem [thread:$0]  (!%p4626_p13), %s4506_s14, 16, %s687_s21, [#allocation25]  }
 0x191   : > { %s3368_s23 = smov [#allocation29]   ;;  %s4627_s20 = sld [smem:[#allocation62_spill]] }
 0x192   : > { %s708_s0 = sshll.u32 %s3368_s23, 4  ;;  %s3044_s24 = scalar_lea.hbm %s4508_s16, 16  ;;  %s709_s0 = int_to_ptr.vmem [resolvable:$true] %s708_s0 }
 0x193   : > { %p3045_p12 = scmp.ne.s32.totalorder %s4508_s16, %s3044_s24  ;;  %p3051_p7 = scmp.lt.u32.totalorder %s3044_s24, %s4508_s16 }
 0x195   : > { %p3047_p9 = pnand %p3045_p12, %p4625_p8 }
 0x197   : > { %s3923_s9 = scalar_lea.hbm %s4627_s20, %s3765_s2  ;;  %p3048_p2 = pneg %p3047_p9 }
 0x199   : > { %p3053_p4 = pnand %p3051_p7, %p3048_p2 }
 0x19b   : > { %3056 = shalt.err (!%p3053_p4)
}
 0x19c   : > { %s3057_s15 = scalar_lea.vmem %s709_s0, 16  ;;  %s3064_s23 = scalar_lea.vmem %s709_s0, 32 }
 0x19d   : > { %p3058_p1 = scmp.ne.s32.totalorder %s709_s0, %s3057_s15  ;;  %p3065_p10 = scmp.lt.s32.totalorder %s709_s0, %s709_s0 }
 0x19e   : > { %p3066_p11 = scmp.lt.s32.totalorder %s3064_s23, %s3057_s15 }
 0x19f   : > { %p3060_p5 = pnand %p3058_p1, %p4625_p8 }
 0x1a0   : > { %p3067_p0 = por %p3066_p11, %p3065_p10 }
 0x1a1   : > { %p3061_p3 = pneg %p3060_p5 }
 0x1a3   : > { %p3068_p6 = pnand %p3067_p0, %p3061_p3 }
 0x1a5   : > { %3071 = shalt.err (!%p3068_p6)
}
 0x1a6   : > { %2554 = dma.hbm_to_vmem [thread:$0]  (!%p4626_p13), %s4508_s16, 16, %s709_s0, [#allocation28]  }
 0x1a7   : > { %s768_s22 = scalar_lea.vmem [#allocation15], %s3623_s28  ;;  %s4628_s24 = sld [smem:[#allocation65_spill]] }
 0x1a8   : > { %s775_s5 = sshll.u32 %s768_s22, 4  ;;  %s3072_s7 = scalar_lea.hbm %s3923_s9, 16  ;;  %s776_s5 = int_to_ptr.vmem [resolvable:$true] %s775_s5 }
 0x1a9   : > { %p3073_p8 = scmp.ne.s32.totalorder %s3923_s9, %s3072_s7  ;;  %p4630_p12 = scmp.ne.s32.totalorder %s4609_s4, 0 }
 0x1aa   : > { %s3077_s23 = scalar_lea.hbm %s4627_s20, 32  ;;  %p3078_p13 = scmp.lt.u32.totalorder %s3923_s9, %s4627_s20 }
 0x1ab   : > { %p3075_p9 = pnand %p3073_p8, %p4630_p12  ;;  %p3079_p7 = scmp.lt.u32.totalorder %s3077_s23, %s3072_s7 }
 0x1ac   : > { %p3081_p1 = scmp.lt.u32.totalorder %s3072_s7, %s3923_s9 }
 0x1ad   : > { %s4629_s13 = smov %s4628_s24  ;;  %s3948_s21 = scalar_lea.hbm %s4628_s24, %s3765_s2 }
 0x1ae   : > { %p3076_p2 = pneg %p3075_p9  ;;  %p3080_p4 = por %p3079_p7, %p3078_p13 }
 0x1b0   : > { %p3082_p5 = por %p3081_p1, %p3080_p4 }
 0x1b2   : > { %p3083_p3 = pnand %p3082_p5, %p3076_p2 }
 0x1b4   : > { %3086 = shalt.err (!%p3083_p3)
}
 0x1b5   : > { %s3087_s2 = scalar_lea.vmem %s776_s5, 16  ;;  %s3369_s0 = smov [#allocation15]  }
 0x1b6   : > { %p3088_p10 = scmp.ne.s32.totalorder %s776_s5, %s3087_s2  ;;  %s3092_s22 = sshll.u32 %s3369_s0, 4  ;;  %s3093_s22 = int_to_ptr.vmem [resolvable:$false] %s3092_s22 }
 0x1b7   : > { %s3094_s6 = scalar_lea.vmem %s3093_s22, 32  ;;  %p3095_p6 = scmp.lt.s32.totalorder %s776_s5, %s3093_s22 }
 0x1b8   : > { %p3090_p11 = pnand %p3088_p10, %p4630_p12  ;;  %p3096_p8 = scmp.lt.s32.totalorder %s3094_s6, %s3087_s2 }
 0x1ba   : > { %p3091_p0 = pneg %p3090_p11  ;;  %p3097_p9 = por %p3096_p8, %p3095_p6 }
 0x1bc   : > { %p3098_p7 = pnand %p3097_p9, %p3091_p0 }
 0x1be   : > { %3101 = shalt.err (!%p3098_p7)
}
 0x1bf   : > { %p4631_p13 = scmp.ne.s32.totalorder %s4608_s29, 0  ;;  %s805_s18 = scalar_lea.vmem [#allocation20], %s3623_s28 }
 0x1c0   : > { %s812_s24 = sshll.u32 %s805_s18, 4  ;;  %s2320_s7 = sshll.u32 %s3348_s25, 9  ;;  %s813_s24 = int_to_ptr.vmem [resolvable:$true] %s812_s24 }
 0x1c1   : > { %2564 = dma.hbm_to_vmem [thread:$0]  (!%p4631_p13), %s3923_s9, 16, %s776_s5, %s3643_s3  }
 0x1c2   : > { %s3102_s12 = scalar_lea.hbm %s3948_s21, 16  ;;  %s3107_s17 = scalar_lea.hbm %s4629_s13, 32 }
 0x1c3   : > { %p3103_p2 = scmp.ne.s32.totalorder %s3948_s21, %s3102_s12  ;;  %p3108_p5 = scmp.lt.u32.totalorder %s3948_s21, %s4629_s13 }
 0x1c4   : > { %p3109_p3 = scmp.lt.u32.totalorder %s3107_s17, %s3102_s12  ;;  %p3111_p11 = scmp.lt.u32.totalorder %s3102_s12, %s3948_s21 }
 0x1c5   : > { %p3105_p4 = pnand %p3103_p2, %p4630_p12 }
 0x1c6   : > { %p3110_p10 = por %p3109_p3, %p3108_p5 }
 0x1c7   : > { %p3106_p1 = pneg %p3105_p4 }
 0x1c8   : > { %p3112_p0 = por %p3111_p11, %p3110_p10 }
 0x1ca   : > { %p3113_p6 = pnand %p3112_p0, %p3106_p1 }
 0x1cc   : > { %3116 = shalt.err (!%p3113_p6)
}
 0x1cd   : > { %s3117_s25 = scalar_lea.vmem %s813_s24, 16  ;;  %s3370_s3 = smov [#allocation20]  }
 0x1ce   : > { %p3118_p8 = scmp.ne.s32.totalorder %s813_s24, %s3117_s25  ;;  %s3122_s9 = sshll.u32 %s3370_s3, 4  ;;  %s3123_s9 = int_to_ptr.vmem [resolvable:$false] %s3122_s9 }
 0x1cf   : > { %s3124_s5 = scalar_lea.vmem %s3123_s9, 32  ;;  %p3125_p2 = scmp.lt.s32.totalorder %s813_s24, %s3123_s9 }
 0x1d0   : > { %p3120_p9 = pnand %p3118_p8, %p4630_p12  ;;  %p3126_p4 = scmp.lt.s32.totalorder %s3124_s5, %s3117_s25 }
 0x1d2   : > { %p3121_p7 = pneg %p3120_p9  ;;  %p3127_p13 = por %p3126_p4, %p3125_p2 }
 0x1d4   : > { %p3128_p3 = pnand %p3127_p13, %p3121_p7 }
 0x1d6   : > { %3131 = shalt.err (!%p3128_p3)
}
 0x1d7   : > { %p4632_p5 = scmp.ne.s32.totalorder %s4608_s29, 0  ;;  %s4633_s6 = sld [smem:[#allocation66_spill]] }
 0x1d8   : > { %s4634_s12 = sshll.u32 %s3623_s28, 5 }
 0x1d9   : > { %2570 = dma.hbm_to_vmem [thread:$0]  (!%p4632_p5), %s3948_s21, 16, %s813_s24, %s783_s26  }
 0x1da   : > { %s840_s15 = scalar_lea.vmem [#allocation23], %s4634_s12 }
 0x1db   : > { %s847_s23 = sshll.u32 %s840_s15, 4  ;;  %s3996_s23 = int_to_ptr.vmem [resolvable:$true] %s847_s23 }
 0x1dd   : > { %s3992_s18 = scalar_lea.hbm %s4633_s6, %s2320_s7  ;;  %s3137_s24 = scalar_lea.hbm %s4633_s6, 1024 }
 0x1de   : > { %s3132_s17 = scalar_lea.hbm %s3992_s18, 512  ;;  %p3138_p11 = scmp.lt.u32.totalorder %s3992_s18, %s4633_s6 }
 0x1df   : > { %p3133_p13 = scmp.ne.s32.totalorder %s3992_s18, %s3132_s17  ;;  %p3139_p0 = scmp.lt.u32.totalorder %s3137_s24, %s3132_s17 }
 0x1e0   : > { %p3141_p8 = scmp.lt.u32.totalorder %s3132_s17, %s3992_s18 }
 0x1e1   : > { %p3135_p1 = pnand %p3133_p13, %p4630_p12  ;;  %p3140_p6 = por %p3139_p0, %p3138_p11 }
 0x1e3   : > { %p3136_p10 = pneg %p3135_p1  ;;  %p3142_p9 = por %p3141_p8, %p3140_p6 }
 0x1e5   : > { %p3143_p7 = pnand %p3142_p9, %p3136_p10 }
 0x1e7   : > { %3146 = shalt.err (!%p3143_p7)
}
 0x1e8   : > { %s3147_s28 = scalar_lea.vmem %s3996_s23, 512  ;;  %s3371_s2 = smov [#allocation23]  }
 0x1e9   : > { %p3148_p2 = scmp.ne.s32.totalorder %s3996_s23, %s3147_s28  ;;  %s3152_s25 = sshll.u32 %s3371_s2, 4  ;;  %s3153_s25 = int_to_ptr.vmem [resolvable:$false] %s3152_s25 }
 0x1ea   : > { %s3154_s3 = scalar_lea.vmem %s3153_s25, 1024  ;;  %p3155_p13 = scmp.lt.s32.totalorder %s3996_s23, %s3153_s25 }
 0x1eb   : > { %p3150_p4 = pnand %p3148_p2, %p4630_p12  ;;  %p3156_p1 = scmp.lt.s32.totalorder %s3154_s3, %s3147_s28 }
 0x1ed   : > { %p3151_p3 = pneg %p3150_p4  ;;  %p3157_p11 = por %p3156_p1, %p3155_p13 }
 0x1ef   : > { %p3158_p0 = pnand %p3157_p11, %p3151_p3 }
 0x1f1   : > { %3161 = shalt.err (!%p3158_p0)
}
 0x1f2   : > { %s4635_s9 = scalar_lea.sflag [#allocation22], %s3620_s27  ;;  %s4636_s4 = sld [smem:[#allocation52_spill]] }
 0x1f3   : > { %2576 = dma.hbm_to_vmem [thread:$0]  (!%p4632_p5), %s3992_s18, 512, %s3996_s23, %s4635_s9, %s4622_s30, %s4622_s30, %s4621_s10  }
 0x1f8   : > { %p4637_p12 = scmp.ne.s32.totalorder %s4636_s4, 0 }
 0x1f9   : > { %s4638_s5 = sld [smem:[#allocation51_spill]] (!%p4637_p12) }
 0x1fa   : > { %859 = sbr.rel (%p4637_p12) target bundleno = 1654 (0x676), region = 100 }
 0x1ff   : > { %p4639_p10 = scmp.eq.s32.totalorder (!%p4637_p12), %s4638_s5, 0 }
 0x201   : > { %3283 = dma.done.wait (%p4639_p10), [#allocation6], 512   ;;  %p4640_p6 = pmov %p4639_p10 }
 0x203   : > { %3285 = vsyncadd (%p4640_p6), [#allocation6], 4294966784  ;;  %p4641_p8 = pmov %p4640_p6 }
 0x204   : > { %p4642_p9 = pmov %p4640_p6 }
 0x205   : > { %3287 = dma.done.wait (%p4641_p8), [#allocation9], 1040  }
 0x206   : > { %3289 = vsyncadd (%p4642_p9), [#allocation9], 4294966256  ;;  %p4643_p7 = pmov %p4640_p6 }
 0x207   : > { %p4644_p5 = pmov %p4640_p6 }
 0x208   : > { %3291 = dma.done.wait (%p4643_p7), [#allocation12], 16  }
 0x209   : > { %3293 = vsyncadd (%p4644_p5), [#allocation12], 4294967280  ;;  %s4645_s27 = sld [smem:[#allocation49_spill]]  ;;  %s4646_s29 = sld [smem:[#allocation55_spill]] }
 0x20a   : > { %s877_s10 = sand.u32 1, %s4638_s5  }
 0x20b   : > { %s878_s22 = scalar_lea.sflag [#allocation6], %s877_s10 }
 0x20f   : > { %s4040_s30 = sand.u32 1, %s4645_s27   ;;  %p4647_p2 = scmp.ne.s32.totalorder %s4646_s29, 0 }
 0x210   : > { %s2284_s0 = sshll.u32 %s4040_s30, 5 }
 0x211   : > { %s4043_s18 = scalar_lea.vmem [#allocation13], %s2284_s0 }
 0x212   : > { %3295 = dma.done.wait (%p4647_p2), %s878_s22, 544  }
 0x213   : > { %3297 = vsyncadd (%p4647_p2), %s878_s22, 4294966752  ;;  %s889_s12 = scalar_lea.vmem [#allocation14], %s4040_s30  ;;  %s897_s15 = scalar_lea.vmem [#allocation15], %s4040_s30 }
 0x214   : > { %p4648_p4 = pmov %p4644_p5 }
 0x216   : > { %3299 = dma.done.wait (%p4648_p4), [#allocation9], 16   ;;  %p4649_p3 = pmov %p4648_p4 }
 0x218   : > { %3301 = vsyncadd (%p4649_p3), [#allocation9], 4294967280  ;;  %p4650_p13 = pmov %p4649_p3 }
 0x219   : > { %p4651_p1 = pmov %p4649_p3 }
 0x21a   : > { %3303 = dma.done.wait (%p4650_p13), [#allocation12], 16  }
 0x21b   : > { %3305 = vsyncadd (%p4651_p1), [#allocation12], 4294967280  ;;  %s2287_s23 = sshll.u32 %s4040_s30, 4  ;;  %s911_s17 = scalar_lea.sflag [#allocation19], %s877_s10 }
 0x21c   : > { %s4060_s26 = scalar_lea.vmem [#allocation18], %s2287_s23 }
 0x21d   : > { %3307 = dma.done.wait (%p4647_p2), %s911_s17, 272  }
 0x21e   : > { %3309 = vsyncadd (%p4647_p2), %s911_s17, 4294967024  ;;  %s922_s21 = scalar_lea.vmem [#allocation20], %s4040_s30  ;;  %s928_s24 = scalar_lea.sflag [#allocation22], %s877_s10 }
 0x21f   : > { %s930_s7 = scalar_lea.vmem [#allocation21], %s4040_s30 }
 0x220   : > { %3311 = dma.done.wait (%p4647_p2), %s928_s24, 528  }
 0x221   : > { %3313 = vsyncadd (%p4647_p2), %s928_s24, 4294966768  ;;  %s4072_s19 = scalar_lea.vmem [#allocation23], %s2284_s0  ;;  %p4652_p11 = pmov %p4651_p1 }
 0x222   : > { %p4653_p0 = pmov %p4651_p1 }
 0x223   : > { %3315 = dma.done.wait (%p4652_p11), [#allocation25], 32  }
 0x224   : > { %3317 = vsyncadd (%p4653_p0), [#allocation25], 4294967264  ;;  %p4654_p12 = pmov %p4653_p0 }
 0x225   : > { %p4655_p10 = pmov %p4653_p0 }
 0x226   : > { %3319 = dma.done.wait (%p4654_p12), [#allocation28], 32  }
 0x227   : > { %3321 = vsyncadd (%p4655_p10), [#allocation28], 4294967264  ;;  %p4656_p6 = scmp.ne.s32.totalorder %s4638_s5, 0 }
 0x228   : > { %v4084_v0 = vld [vmem:[#allocation8] sm:$0xff] (!%p4656_p6)   ;;  %v4086_v1 = vld [vmem:[#allocation8 + $0x8] sm:$0xff] (!%p4656_p6)   ;;  %v4089_v3 = vld [vmem:[#allocation8 + $0x10] sm:$0xff] (!%p4656_p6)   ;;  %vm1301_vm0 = vcmask (!%p4656_p6), 261120   ;;  %vm1191_vm1 = vcmask (!%p4656_p6), 1041409   ;;  %vm1193_vm2 = vcmask (!%p4656_p6), 1042434  }
 0x229   : > { %1044 = sbr.rel (%p4656_p6) target bundleno = 776 (0x308), region = 172  ;;  %v2339_v2 = vunpack.c.l.bf16 (!%p4656_p6), %v4084_v0  ;;  %v4091_v4 = vld [vmem:[#allocation8 + $0x18] sm:$0xff] (!%p4656_p6)   ;;  %v4093_v5 = vld [vmem:[#allocation8 + $0x20] sm:$0xff] (!%p4656_p6)   ;;  %v2340_v6 = vunpack.c.h.bf16 (!%p4656_p6), %v4084_v0  ;;  %v2343_v7 = vunpack.c.l.bf16 (!%p4656_p6), %v4086_v1  ;;  %v2344_v8 = vunpack.c.h.bf16 (!%p4656_p6), %v4086_v1  ;;  %v4099_v10 = vld [vmem:[#allocation8 + $0x28] sm:$0xff] (!%p4656_p6)   ;;  %s3372_s28 = smov (!%p4656_p6), 32  }
 0x22a   : > { %v2347_v9 = vunpack.c.l.bf16 (!%p4656_p6), %v4089_v3  ;;  %v4101_v11 = vld [vmem:[#allocation8 + $0x30] sm:$0xff] (!%p4656_p6)   ;;  %v4103_v12 = vld [vmem:[#allocation8 + $0x38] sm:$0xff] (!%p4656_p6)   ;;  %v2348_v13 = vunpack.c.h.bf16 (!%p4656_p6), %v4089_v3  ;;  %v2351_v14 = vunpack.c.l.bf16 (!%p4656_p6), %v4091_v4  ;;  %v2352_v15 = vunpack.c.h.bf16 (!%p4656_p6), %v4091_v4  ;;  %s3373_s2 = smov (!%p4656_p6), 64  }
 0x22b   : > { %v2355_v16 = vunpack.c.l.bf16 (!%p4656_p6), %v4093_v5  ;;  %v2356_v17 = vunpack.c.h.bf16 (!%p4656_p6), %v4093_v5  ;;  %v2359_v18 = vunpack.c.l.bf16 (!%p4656_p6), %v4099_v10  ;;  %v2360_v19 = vunpack.c.h.bf16 (!%p4656_p6), %v4099_v10 }
 0x22c   : > { %v4573_v20 = vunpack.c.l.bf16 (!%p4656_p6), %v4101_v11  ;;  %v4572_v21 = vunpack.c.h.bf16 (!%p4656_p6), %v4101_v11  ;;  %v4571_v22 = vunpack.c.l.bf16 (!%p4656_p6), %v4103_v12  ;;  %v4570_v23 = vunpack.c.h.bf16 (!%p4656_p6), %v4103_v12 }
 0x22d   : > { %v1383_v24 = vsel (!%p4656_p6), %vm1301_vm0, %v2339_v2, -inf  ;;  %v1384_v25 = vsel (!%p4656_p6), %vm1301_vm0, %v2340_v6, -inf  ;;  %v1392_v26 = vsel (!%p4656_p6), %vm1301_vm0, %v2343_v7, -inf  ;;  %v1393_v27 = vsel (!%p4656_p6), %vm1301_vm0, %v2344_v8, -inf }
 0x22e   : > { %v1385_v28 = vmax.f32 (!%p4656_p6), %v1383_v24, %v1384_v25  ;;  %v1394_v29 = vmax.f32 (!%p4656_p6), %v1392_v26, %v1393_v27  ;;  %v1401_v30 = vsel (!%p4656_p6), %vm1301_vm0, %v2347_v9, -inf  ;;  %v1402_v31 = vsel (!%p4656_p6), %vm1301_vm0, %v2348_v13, -inf }
 0x22f   : > { %v1403_v32 = vmax.f32 (!%p4656_p6), %v1401_v30, %v1402_v31  ;;  %v1410_v33 = vsel (!%p4656_p6), %vm1301_vm0, %v2351_v14, -inf  ;;  %v1411_v34 = vsel (!%p4656_p6), %vm1301_vm0, %v2352_v15, -inf  ;;  %v1419_v35 = vsel (!%p4656_p6), %vm1301_vm0, %v2355_v16, -inf }
 0x230   : > { %v1386_v36 = vrot.slane %v1385_v28, 4  ;;  %v1395_v37 = vrot.slane %v1394_v29, 4  ;;  %v1412_v38 = vmax.f32 %v1410_v33, %v1411_v34  ;;  %v1420_v39 = vsel %vm1301_vm0, %v2356_v17, -inf }
 0x231   : > { %v1404_v40 = vrot.slane %v1403_v32, 4  ;;  %v1421_v41 = vmax.f32 %v1419_v35, %v1420_v39  ;;  %v1428_v42 = vsel %vm1301_vm0, %v2359_v18, -inf  ;;  %v1429_v43 = vsel %vm1301_vm0, %v2360_v19, -inf }
 0x232   : > { %v1387_v44 = vmax.f32 %v1385_v28, %v1386_v36  ;;  %v1396_v45 = vmax.f32 %v1394_v29, %v1395_v37  ;;  %v1413_v46 = vrot.slane %v1412_v38, 4  ;;  %v1430_v47 = vmax.f32 %v1428_v42, %v1429_v43  ;;  %v4164_v36 = vld [vmem:[#allocation5] sm:$0xff]  }
 0x233   : > { %vm1195_vm3 = vcmask 1043459   ;;  %v1405_v48 = vmax.f32 %v1403_v32, %v1404_v40  ;;  %v1422_v49 = vrot.slane %v1421_v41, 4  ;;  %v1437_v50 = vsel %vm1301_vm0, %v4573_v20, -inf }
 0x234   : > { %v1438_v51 = vsel %vm1301_vm0, %v4572_v21, -inf  ;;  %vm1197_vm4 = vcmask 1044484   ;;  %v1388_v52 = vrot.slane %v1387_v44, 2  ;;  %v1397_v53 = vrot.slane %v1396_v45, 2 }
 0x235   : > { %v1414_v54 = vmax.f32 %v1412_v38, %v1413_v46  ;;  %v1431_v55 = vrot.slane %v1430_v47, 4  ;;  %vm1199_vm5 = vcmask 1045509   ;;  %v1406_v56 = vrot.slane %v1405_v48, 2 }
 0x236   : > { %v1423_v57 = vmax.f32 %v1421_v41, %v1422_v49  ;;  %v1439_v58 = vmax.f32 %v1437_v50, %v1438_v51  ;;  %v1446_v59 = vsel %vm1301_vm0, %v4571_v22, -inf  ;;  %v1389_v60 = vmax.f32 %v1387_v44, %v1388_v52 }
 0x237   : > { %v1398_v61 = vmax.f32 %v1396_v45, %v1397_v53  ;;  %v1415_v62 = vrot.slane %v1414_v54, 2  ;;  %v1432_v63 = vmax.f32 %v1430_v47, %v1431_v55  ;;  %v1407_v24 = vmax.f32 %v1405_v48, %v1406_v56  ;;  %v4166_v45 = vld [vmem:[#allocation5 + $0x8] sm:$0xff]   ;;  %v4173_v55 = vld [vmem:[#allocation5 + $0x18] sm:$0xff]  }
 0x238   : > { %v1424_v25 = vrot.slane %v1423_v57, 2  ;;  %v1440_v26 = vrot.slane %v1439_v58, 4  ;;  %v1447_v27 = vsel %vm1301_vm0, %v4570_v23, -inf  ;;  %vm1201_vm6 = vcmask 1046534  }
 0x239   : > { %v1390_v28 = vrot.slane %v1389_v60, 1  ;;  %v1399_v29 = vrot.slane %v1398_v61, 1  ;;  %v1416_v30 = vmax.f32 %v1414_v54, %v1415_v62  ;;  %v1433_v31 = vrot.slane %v1432_v63, 2  ;;  %v4171_v54 = vld [vmem:[#allocation5 + $0x10] sm:$0xff]  }
 0x23a   : > { %v1408_v32 = vrot.slane %v1407_v24, 1  ;;  %v1425_v33 = vmax.f32 %v1423_v57, %v1424_v25  ;;  %v1441_v34 = vmax.f32 %v1439_v58, %v1440_v26  ;;  %v1448_v35 = vmax.f32 %v1446_v59, %v1447_v27 }
 0x23b   : > { %v1391_v37 = vmax.f32 %v1389_v60, %v1390_v28  ;;  %v1400_v38 = vmax.f32 %v1398_v61, %v1399_v29  ;;  %v1417_v39 = vrot.slane %v1416_v30, 1  ;;  %v1434_v40 = vmax.f32 %v1432_v63, %v1433_v31 }
 0x23c   : > { %v1409_v41 = vmax.f32 %v1407_v24, %v1408_v32  ;;  %v1426_v42 = vrot.slane %v1425_v33, 1  ;;  %v1442_v43 = vrot.slane %v1441_v34, 2  ;;  %v1449_v44 = vrot.slane %v1448_v35, 4 }
 0x23d   : > { %vm1203_vm7 = vcmask 1047559   ;;  %v1418_v46 = vmax.f32 %v1416_v30, %v1417_v39  ;;  %v1435_v47 = vrot.slane %v1434_v40, 1  ;;  %v1479_v48 = vsel %vm1191_vm1, %v1400_v38, %v1391_v37 }
 0x23e   : > { %v2323_v49 = vunpack.c.l.bf16 %v4164_v36  ;;  %v1427_v50 = vmax.f32 %v1425_v33, %v1426_v42  ;;  %v1443_v51 = vmax.f32 %v1441_v34, %v1442_v43  ;;  %v1450_v52 = vmax.f32 %v1448_v35, %v1449_v44 }
 0x23f   : > { %v1480_v53 = vsel %vm1193_vm2, %v1409_v41, %v1479_v48  ;;  %v1436_v56 = vmax.f32 %v1434_v40, %v1435_v47  ;;  %v2324_v58 = vunpack.c.h.bf16 %v4164_v36  ;;  %v2327_v59 = vunpack.c.l.bf16 %v4166_v45 }
 0x240   : > { %v1481_v57 = vsel %vm1195_vm3, %v1418_v46, %v1480_v53  ;;  %v1444_v60 = vrot.slane %v1443_v51, 1  ;;  %v1451_v61 = vrot.slane %v1450_v52, 2  ;;  %v2328_v63 = vunpack.c.h.bf16 %v4166_v45 }
 0x241   : > { %v1482_v62 = vsel %vm1197_vm4, %v1427_v50, %v1481_v57  ;;  %v2331_v25 = vunpack.c.l.bf16 %v4171_v54  ;;  %v2332_v26 = vunpack.c.h.bf16 %v4171_v54  ;;  %v2335_v27 = vunpack.c.l.bf16 %v4173_v55 }
 0x242   : > { %v1483_v24 = vsel %vm1199_vm5, %v1436_v56, %v1482_v62  ;;  %v1445_v28 = vmax.f32 %v1443_v51, %v1444_v60  ;;  %v1452_v29 = vmax.f32 %v1450_v52, %v1451_v61  ;;  %v2336_v30 = vunpack.c.h.bf16 %v4173_v55 }
 0x243   : > { %vm1061_vm8 = vcmask 523264   ;;  %v1321_v0 = vsel %vm1301_vm0, %v2348_v13, 0.0  ;;  %v1338_v3 = vsel %vm1301_vm0, %v2355_v16, 0.0  ;;  %v1347_v4 = vsel %vm1301_vm0, %v2359_v18, 0.0 }
 0x244   : > { %v1127_v31 = vsel %vm1061_vm8, %v2323_v49, -inf  ;;  %v1134_v32 = vsel %vm1061_vm8, %v2324_v58, -inf  ;;  %v1141_v33 = vsel %vm1061_vm8, %v2327_v59, -inf  ;;  %v1148_v34 = vsel %vm1061_vm8, %v2328_v63, -inf }
 0x245   : > { %v1453_v35 = vrot.slane %v1452_v29, 1  ;;  %v1484_v37 = vsel %vm1201_vm6, %v1445_v28, %v1483_v24  ;;  %v1128_v38 = vrot.slane %v1127_v31, 4  ;;  %v1135_v39 = vrot.slane %v1134_v32, 4 }
 0x246   : > { %v1142_v40 = vrot.slane %v1141_v33, 4  ;;  %v1149_v41 = vrot.slane %v1148_v34, 4  ;;  %v1155_v42 = vsel %vm1061_vm8, %v2331_v25, -inf  ;;  %v1162_v43 = vsel %vm1061_vm8, %v2332_v26, -inf }
 0x247   : > { %v1454_v44 = vmax.f32 %v1452_v29, %v1453_v35  ;;  %v1129_v46 = vmax.f32 %v1127_v31, %v1128_v38  ;;  %v1136_v47 = vmax.f32 %v1134_v32, %v1135_v39  ;;  %v1156_v48 = vrot.slane %v1155_v42, 4 }
 0x248   : > { %v1143_v50 = vmax.f32 %v1141_v33, %v1142_v40  ;;  %v1150_v51 = vmax.f32 %v1148_v34, %v1149_v41  ;;  %v1163_v52 = vrot.slane %v1162_v43, 4  ;;  %v1169_v53 = vsel %vm1061_vm8, %v2335_v27, -inf }
 0x249   : > { %v1485_v56 = vsel %vm1203_vm7, %v1454_v44, %v1484_v37  ;;  %v1130_v57 = vrot.slane %v1129_v46, 2  ;;  %v1137_v60 = vrot.slane %v1136_v47, 2  ;;  %v1157_v61 = vmax.f32 %v1155_v42, %v1156_v48 }
 0x24a   : > { %1486 = vrot.lane.b32.xlu0 %v1485_v56, %s3372_s28  ;;  %v1144_v62 = vrot.slane %v1143_v50, 2  ;;  %v1151_v24 = vrot.slane %v1150_v51, 2  ;;  %v1164_v28 = vmax.f32 %v1162_v43, %v1163_v52  ;;  %v1170_v29 = vrot.slane %v1169_v53, 4 }
 0x24b   : > { %v1131_v31 = vmax.f32 %v1129_v46, %v1130_v57  ;;  %v1138_v32 = vmax.f32 %v1136_v47, %v1137_v60  ;;  %v1158_v33 = vrot.slane %v1157_v61, 2  ;;  %v1176_v34 = vsel %vm1061_vm8, %v2336_v30, -inf }
 0x24c   : > { %v1145_v35 = vmax.f32 %v1143_v50, %v1144_v62  ;;  %v1152_v38 = vmax.f32 %v1150_v51, %v1151_v24  ;;  %v1165_v39 = vrot.slane %v1164_v28, 2  ;;  %v1171_v37 = vmax.f32 %v1169_v53, %v1170_v29 }
 0x24d   : > { %v1132_v40 = vrot.slane %v1131_v31, 1  ;;  %v1139_v41 = vrot.slane %v1138_v32, 1  ;;  %v1159_v42 = vmax.f32 %v1157_v61, %v1158_v33  ;;  %v1177_v44 = vrot.slane %v1176_v34, 4 }
 0x24e   : > { %v1146_v48 = vrot.slane %v1145_v35, 1  ;;  %v1153_v56 = vrot.slane %v1152_v38, 1  ;;  %v1166_v23 = vmax.f32 %v1164_v28, %v1165_v39  ;;  %v1172_v43 = vrot.slane %v1171_v37, 2 }
 0x24f   : > { %v1133_v52 = vmax.f32 %v1131_v31, %v1132_v40  ;;  %v1140_v46 = vmax.f32 %v1138_v32, %v1139_v41  ;;  %v1160_v47 = vrot.slane %v1159_v42, 1  ;;  %v1178_v57 = vmax.f32 %v1176_v34, %v1177_v44 }
 0x250   : > { %v1147_v60 = vmax.f32 %v1145_v35, %v1146_v48  ;;  %v1154_v22 = vmax.f32 %v1152_v38, %v1153_v56  ;;  %v1167_v21 = vrot.slane %v1166_v23, 1  ;;  %v1173_v20 = vmax.f32 %v1171_v37, %v1172_v43 }
 0x251   : > { %v1161_v50 = vmax.f32 %v1159_v42, %v1160_v47  ;;  %v1179_v51 = vrot.slane %v1178_v57, 2  ;;  %v1214_v53 = vsel %vm1191_vm1, %v1140_v46, %v1133_v52  ;;  %v1062_v61 = vsel %vm1061_vm8, %v2323_v49, 0.0 }
 0x252   : > { %v1168_v62 = vmax.f32 %v1166_v23, %v1167_v21  ;;  %v1174_v24 = vrot.slane %v1173_v20, 1  ;;  %v1215_v28 = vsel %vm1193_vm2, %v1147_v60, %v1214_v53  ;;  %v1063_v29 = vrot.slane %v1062_v61, 4 }
 0x253   : > { %v1180_v31 = vmax.f32 %v1178_v57, %v1179_v51  ;;  %v1216_v32 = vsel %vm1195_vm3, %v1154_v22, %v1215_v28  ;;  %v1069_v33 = vsel %vm1061_vm8, %v2324_v58, 0.0  ;;  %v1076_v34 = vsel %vm1061_vm8, %v2327_v59, 0.0 }
 0x254   : > { %v1175_v35 = vmax.f32 %v1173_v20, %v1174_v24  ;;  %v1217_v38 = vsel %vm1197_vm4, %v1161_v50, %v1216_v32  ;;  %v1064_v49 = vadd.f32 %v1063_v29, %v1062_v61  ;;  %v1070_v21 = vrot.slane %v1069_v33, 4 }
 0x255   : > { %v1181_v23 = vrot.slane %v1180_v31, 1  ;;  %v1218_v39 = vsel %vm1199_vm5, %v1168_v62, %v1217_v38  ;;  %v1077_v37 = vrot.slane %v1076_v34, 4  ;;  %v1083_v22 = vsel %vm1061_vm8, %v2328_v63, 0.0 }
 0x256   : > { %v1219_v36 = vsel %vm1201_vm6, %v1175_v35, %v1218_v39  ;;  %v1065_v58 = vrot.slane %v1064_v49, 2  ;;  %v1071_v40 = vadd.f32 %v1070_v21, %v1069_v33  ;;  %v1084_v41 = vrot.slane %v1083_v22, 4 }
 0x257   : > { %v1182_v42 = vmax.f32 %v1180_v31, %v1181_v23  ;;  %v1078_v59 = vadd.f32 %v1077_v37, %v1076_v34  ;;  %v1090_v20 = vsel %vm1061_vm8, %v2331_v25, 0.0  ;;  %v1097_v44 = vsel %vm1061_vm8, %v2332_v26, 0.0 }
 0x258   : > { %v1066_v48 = vadd.f32 %v1065_v58, %v1064_v49  ;;  %v1072_v56 = vrot.slane %v1071_v40, 2  ;;  %v1085_v45 = vadd.f32 %v1084_v41, %v1083_v22  ;;  %v1091_v43 = vrot.slane %v1090_v20, 4 }
 0x259   : > { %v1220_v63 = vsel %vm1203_vm7, %v1182_v42, %v1219_v36  ;;  %v1079_v52 = vrot.slane %v1078_v59, 2  ;;  %v1098_v46 = vrot.slane %v1097_v44, 4  ;;  %v1104_v47 = vsel %vm1061_vm8, %v2335_v27, 0.0 }
 0x25a   : > { %1221 = vrot.lane.b32.xlu0 %v1220_v63, %s3373_s2  ;;  %v1067_v57 = vrot.slane %v1066_v48, 1  ;;  %v1073_v25 = vadd.f32 %v1072_v56, %v1071_v40  ;;  %v1086_v60 = vrot.slane %v1085_v45, 2  ;;  %v1092_v54 = vadd.f32 %v1091_v43, %v1090_v20 }
 0x25b   : > { %v1080_v50 = vadd.f32 %v1079_v52, %v1078_v59  ;;  %v1099_v26 = vadd.f32 %v1098_v46, %v1097_v44  ;;  %v1105_v51 = vrot.slane %v1104_v47, 4  ;;  %v1111_v53 = vsel %vm1061_vm8, %v2336_v30, 0.0 }
 0x25c   : > { %v1068_v61 = vadd.f32 %v1067_v57, %v1066_v48  ;;  %v1074_v62 = vrot.slane %v1073_v25, 1  ;;  %v1087_v24 = vadd.f32 %v1086_v60, %v1085_v45  ;;  %v1093_v28 = vrot.slane %v1092_v54, 2 }
 0x25d   : > { %v1081_v29 = vrot.slane %v1080_v50, 1  ;;  %v1100_v31 = vrot.slane %v1099_v26, 2  ;;  %v1106_v27 = vadd.f32 %v1105_v51, %v1104_v47  ;;  %v1112_v32 = vrot.slane %v1111_v53, 4 }
 0x25e   : > { %v1075_v33 = vadd.f32 %v1074_v62, %v1073_v25  ;;  %v1088_v34 = vrot.slane %v1087_v24, 1  ;;  %v1094_v35 = vadd.f32 %v1093_v28, %v1092_v54  ;;  %v1119_v38 = vmul.f32 0.125, %v1068_v61 }
 0x25f   : > { %v1082_v49 = vadd.f32 %v1081_v29, %v1080_v50  ;;  %v1101_v21 = vadd.f32 %v1100_v31, %v1099_v26  ;;  %v1107_v23 = vrot.slane %v1106_v27, 2  ;;  %v1113_v39 = vadd.f32 %v1112_v32, %v1111_v53 }
 0x260   : > { %v1089_v37 = vadd.f32 %v1088_v34, %v1087_v24  ;;  %v1095_v55 = vrot.slane %v1094_v35, 1  ;;  %v1120_v22 = vmul.f32 0.125, %v1075_v33  ;;  %v3374_v47 = vmov 0.0  }
 0x261   : > { %v1102_v30 = vrot.slane %v1101_v21, 1  ;;  %v1108_v36 = vadd.f32 %v1107_v23, %v1106_v27  ;;  %v1114_v58 = vrot.slane %v1113_v39, 2  ;;  %v1121_v40 = vmul.f32 0.125, %v1082_v49  ;;  %1532 = vst [vmem:[#allocation4] sm:$0xff] %v3374_v47  ;;  %1533 = vst [vmem:[#allocation4 + $0x8] sm:$0xff] %v3374_v47 }
 0x262   : > { %v1096_v41 = vadd.f32 %v1095_v55, %v1094_v35  ;;  %v1122_v42 = vmul.f32 0.125, %v1089_v37  ;;  %v1192_v59 = vsel %vm1191_vm1, %v1120_v22, %v1119_v38  ;;  %v1302_v25 = vsel %vm1301_vm0, %v2339_v2, 0.0 }
 0x263   : > { %v1103_v20 = vadd.f32 %v1102_v30, %v1101_v21  ;;  %v1109_v44 = vrot.slane %v1108_v36, 1  ;;  %v1115_v48 = vadd.f32 %v1114_v58, %v1113_v39  ;;  %v1194_v56 = vsel %vm1193_vm2, %v1121_v40, %v1192_v59 }
 0x264   : > { %v1123_v45 = vmul.f32 0.125, %v1096_v41  ;;  %v1196_v43 = vsel %vm1195_vm3, %v1122_v42, %v1194_v56  ;;  %v1303_v60 = vsel %vm1301_vm0, %v2340_v6, 0.0  ;;  %v1311_v54 = vsel %vm1301_vm0, %v2343_v7, 0.0 }
 0x265   : > { %v1110_v63 = vadd.f32 %v1109_v44, %v1108_v36  ;;  %v1116_v52 = vrot.slane %v1115_v48, 1  ;;  %v1124_v46 = vmul.f32 0.125, %v1103_v20  ;;  %v1304_v53 = vadd.f32 %v1303_v60, %v1302_v25 }
 0x266   : > { %v1198_v57 = vsel %vm1197_vm4, %v1123_v45, %v1196_v43  ;;  %v1312_v61 = vsel %vm1301_vm0, %v2344_v8, 0.0  ;;  %v1320_v2 = vsel %vm1301_vm0, %v2347_v9, 0.0  ;;  %v1329_v6 = vsel %vm1301_vm0, %v2351_v14, 0.0 }
 0x267   : > { %v1117_v50 = vadd.f32 %v1116_v52, %v1115_v48  ;;  %v1125_v26 = vmul.f32 0.125, %v1110_v63  ;;  %v1200_v51 = vsel %vm1199_vm5, %v1124_v46, %v1198_v57  ;;  %v1305_v24 = vrot.slane %v1304_v53, 4 }
 0x268   : > { %v1313_v28 = vadd.f32 %v1312_v61, %v1311_v54  ;;  %v1322_v1 = vadd.f32 %v1321_v0, %v1320_v2  ;;  %v1330_v8 = vsel %vm1301_vm0, %v2352_v15, 0.0  ;;  %v1339_v9 = vsel %vm1301_vm0, %v2356_v17, 0.0 }
 0x269   : > { %v1126_v7 = vmul.f32 0.125, %v1117_v50  ;;  %v1202_v62 = vsel %vm1201_vm6, %v1125_v26, %v1200_v51  ;;  %v1306_v14 = vadd.f32 %v1305_v24, %v1304_v53  ;;  %v1331_v31 = vadd.f32 %v1330_v8, %v1329_v6 }
 0x26a   : > { %v1314_v29 = vrot.slane %v1313_v28, 4  ;;  %v1323_v27 = vrot.slane %v1322_v1, 4  ;;  %v1340_v32 = vadd.f32 %v1339_v9, %v1338_v3  ;;  %v1348_v15 = vsel %vm1301_vm0, %v2360_v19, 0.0 }
 0x26b   : > { %v4281_v13 = vsel %vm1203_vm7, %v1126_v7, %v1202_v62  ;;  %v1307_v16 = vrot.slane %v1306_v14, 2  ;;  %v1332_v33 = vrot.slane %v1331_v31, 4  ;;  %v1349_v17 = vadd.f32 %v1348_v15, %v1347_v4 }
 0x26c   : > { %v1315_v5 = vadd.f32 %v1314_v29, %v1313_v28  ;;  %v1324_v34 = vadd.f32 %v1323_v27, %v1322_v1  ;;  %v1341_v35 = vrot.slane %v1340_v32, 4  ;;  %v4657_v38 = vunpack.c.l.bf16 %v4101_v11 }
 0x26d   : > { %v4658_v21 = vunpack.c.h.bf16 %v4101_v11  ;;  %v1308_v39 = vadd.f32 %v1307_v16, %v1306_v14  ;;  %v1333_v37 = vadd.f32 %v1332_v33, %v1331_v31  ;;  %v1350_v10 = vrot.slane %v1349_v17, 4 }
 0x26e   : > { %v1356_v49 = vsel %vm1301_vm0, %v4657_v38, 0.0  ;;  %v1316_v18 = vrot.slane %v1315_v5, 2  ;;  %v1325_v55 = vrot.slane %v1324_v34, 2  ;;  %v1342_v19 = vadd.f32 %v1341_v35, %v1340_v32 }
 0x26f   : > { %v1357_v23 = vsel %vm1301_vm0, %v4658_v21, 0.0  ;;  %v4659_v30 = vunpack.c.l.bf16 %v4103_v12  ;;  %v1309_v58 = vrot.slane %v1308_v39, 1  ;;  %v1334_v41 = vrot.slane %v1333_v37, 2 }
 0x270   : > { %v1358_v22 = vadd.f32 %v1357_v23, %v1356_v49  ;;  %v1317_v40 = vadd.f32 %v1316_v18, %v1315_v5  ;;  %v1351_v42 = vadd.f32 %v1350_v10, %v1349_v17  ;;  %v1326_v59 = vadd.f32 %v1325_v55, %v1324_v34 }
 0x271   : > { %v1365_v36 = vsel %vm1301_vm0, %v4659_v30, 0.0  ;;  %v1343_v20 = vrot.slane %v1342_v19, 2  ;;  %v4660_v44 = vunpack.c.h.bf16 %v4103_v12  ;;  %v1310_v56 = vadd.f32 %v1309_v58, %v1308_v39 }
 0x272   : > { %v1359_v11 = vrot.slane %v1358_v22, 4  ;;  %v1318_v45 = vrot.slane %v1317_v40, 1  ;;  %v1335_v43 = vadd.f32 %v1334_v41, %v1333_v37  ;;  %v1352_v63 = vrot.slane %v1351_v42, 2 }
 0x273   : > { %v1366_v48 = vsel %vm1301_vm0, %v4660_v44, 0.0  ;;  %v1327_v52 = vrot.slane %v1326_v59, 1  ;;  %v1344_v46 = vadd.f32 %v1343_v20, %v1342_v19  ;;  %v1375_v26 = vmul.f32 0.0625, %v1310_v56 }
 0x274   : > { %v1360_v57 = vadd.f32 %v1359_v11, %v1358_v22  ;;  %v1367_v25 = vadd.f32 %v1366_v48, %v1365_v36  ;;  %v1319_v60 = vadd.f32 %v1318_v45, %v1317_v40  ;;  %v1336_v54 = vrot.slane %v1335_v43, 1 }
 0x275   : > { %v1353_v50 = vadd.f32 %v1352_v63, %v1351_v42  ;;  %v1328_v51 = vadd.f32 %v1327_v52, %v1326_v59  ;;  %v1345_v53 = vrot.slane %v1344_v46, 1  ;;  %v1227_v21 = vlaneseq }
 0x276   : > { %v1361_v61 = vrot.slane %v1360_v57, 2  ;;  %v1368_v2 = vrot.slane %v1367_v25, 4  ;;  %v1337_v0 = vadd.f32 %v1336_v54, %v1335_v43  ;;  %v1376_v6 = vmul.f32 0.0625, %v1319_v60 }
 0x277   : > { %v1354_v12 = vrot.slane %v1353_v50, 1  ;;  %v1346_v7 = vadd.f32 %v1345_v53, %v1344_v46  ;;  %v1377_v28 = vmul.f32 0.0625, %v1328_v51  ;;  %v1228_v23 = vshrl.u32 %v1227_v21, 7 }
 0x278   : > { %v1362_v62 = vadd.f32 %v1361_v61, %v1360_v57  ;;  %v1369_v24 = vadd.f32 %v1368_v2, %v1367_v25  ;;  %v1378_v8 = vmul.f32 0.0625, %v1337_v0  ;;  %v1463_v3 = vsel %vm1191_vm1, %v1376_v6, %v1375_v26 }
 0x279   : > { %v1355_v1 = vadd.f32 %v1354_v12, %v1353_v50  ;;  %v1379_v29 = vmul.f32 0.0625, %v1346_v7  ;;  %v1464_v31 = vsel %vm1193_vm2, %v1377_v28, %v1463_v3  ;;  %vm1229_vm9 = vcmp.lt.s32.totalorder %v1228_v23, 2  ;;  %v2297_v3 = vld [vmem:[#allocation16] ss:$0 sm:$0xff] }
 0x27a   : > { %v1363_v9 = vrot.slane %v1362_v62, 1  ;;  %v1370_v14 = vrot.slane %v1369_v24, 2  ;;  %v1465_v32 = vsel %vm1195_vm3, %v1378_v8, %v1464_v31  ;;  %v2294_v39 = vsel %vm1229_vm9, 1.0, %v3374_v47 }
 0x27b   : > { %v1380_v27 = vmul.f32 0.0625, %v1355_v1  ;;  %v1466_v16 = vsel %vm1197_vm4, %v1379_v29, %v1465_v32  ;;  %v2298_v29 = vld [vmem:[#allocation17] ss:$0 sm:$0xff]  ;;  %vm1530_vm10 = vcmask 519168  }
 0x27c   : > { %v1364_v4 = vadd.f32 %v1363_v9, %v1362_v62  ;;  %v1371_v15 = vadd.f32 %v1370_v14, %v1369_v24 }
 0x27d   : > { %v1467_v5 = vsel %vm1199_vm5, %v1380_v27, %v1466_v16 }
 0x27e   : > { %v1372_v33 = vrot.slane %v1371_v15, 1  ;;  %v1381_v17 = vmul.f32 0.0625, %v1364_v4 }
 0x280   : > { %v1373_v34 = vadd.f32 %v1372_v33, %v1371_v15  ;;  %v1468_v35 = vsel %vm1201_vm6, %v1381_v17, %v1467_v5  ;;  %v2295_v15 = vld [vmem:[#allocation10] ss:$0 sm:$0xff]  ;;  %v2296_v5 = vld [vmem:[#allocation11] ss:$0 sm:$0xff] }
 0x282   : > { %v1382_v38 = vmul.f32 0.0625, %v1373_v34 }
 0x284   : > { %v1469_v49 = vsel %vm1203_vm7, %v1382_v38, %v1468_v35 }
 0x2bc   : > { %v1487_v18 = vpop.permute.xlu0 %1486 }
 0x2bd   : > { %v1489_v37 = vsel %vm1301_vm0, %v1469_v49, %v1487_v18 }
 0x2be   : > { %v1492_v10 = vmul.f32 %v2294_v39, %v1489_v37 }
 0x2c0   : > { %v1493_v55 = vsel %vm1061_vm8, %v1492_v10, 0.0 }
 0x2c1   : > { %v1494_v19 = vrot.slane %v1493_v55, 4 }
 0x2c3   : > { %v1495_v22 = vadd.f32 %v1494_v19, %v1493_v55 }
 0x2c5   : > { %v1496_v30 = vrot.slane %v1495_v22, 2 }
 0x2c7   : > { %v1497_v36 = vadd.f32 %v1496_v30, %v1495_v22 }
 0x2c9   : > { %v1498_v58 = vrot.slane %v1497_v36, 1 }
 0x2cb   : > { %v1499_v40 = vadd.f32 %v1498_v58, %v1497_v36 }
 0x2cc   : > { %v1222_v41 = vpop.permute.xlu0 %1221 }
 0x2cd   : > { %v1224_v42 = vsel %vm1061_vm8, %v4281_v13, %v1222_v41  ;;  %v1500_v59 = vmul.f32 0.5, %v1499_v40 }
 0x2ce   : > { %v1232_v20 = vmul.f32 %v2294_v39, %v1224_v42 }
 0x2cf   : > { %v1501_v11 = vsub.f32 %v1489_v37, %v1500_v59 }
 0x2d0   : > { %v1233_v47 = vrot.slane %v1232_v20, 4 }
 0x2d1   : > { %v1502_v44 = vmul.f32 %v2294_v39, %v1501_v11 }
 0x2d2   : > { %v1234_v48 = vadd.f32 %v1233_v47, %v1232_v20 }
 0x2d3   : > { %v1503_v56 = vmul.f32 %v1502_v44, %v1502_v44 }
 0x2d4   : > { %v1235_v45 = vrot.slane %v1234_v48, 2 }
 0x2d5   : > { %v1504_v43 = vsel %vm1061_vm8, %v1503_v56, 0.0 }
 0x2d6   : > { %v1236_v63 = vadd.f32 %v1235_v45, %v1234_v48  ;;  %v1505_v52 = vrot.slane %v1504_v43, 4 }
 0x2d8   : > { %v1237_v46 = vrot.slane %v1236_v63, 1  ;;  %v1506_v57 = vadd.f32 %v1505_v52, %v1504_v43 }
 0x2da   : > { %v1238_v25 = vadd.f32 %v1237_v46, %v1236_v63  ;;  %v1507_v60 = vrot.slane %v1506_v57, 2 }
 0x2dc   : > { %v1239_v54 = vmul.f32 0.5, %v1238_v25  ;;  %v1508_v50 = vadd.f32 %v1507_v60, %v1506_v57 }
 0x2de   : > { %v1240_v26 = vsub.f32 %v1224_v42, %v1239_v54  ;;  %v1509_v13 = vrot.slane %v1508_v50, 1 }
 0x2e0   : > { %v1241_v51 = vmul.f32 %v2294_v39, %v1240_v26  ;;  %v1510_v53 = vadd.f32 %v1509_v13, %v1508_v50 }
 0x2e2   : > { %v1242_v61 = vmul.f32 %v1241_v51, %v1241_v51  ;;  %v1511_v2 = vmul.f32 0.5, %v1510_v53 }
 0x2e4   : > { %v1243_v0 = vrot.slane %v1242_v61, 4  ;;  %v1512_v12 = vadd.f32 1e-05, %v1511_v2 }
 0x2e6   : > { %v1244_v6 = vadd.f32 %v1243_v0, %v1242_v61  ;;  %2664 = vrsqrt.f32 %v1512_v12 }
 0x2e8   : > { %v1245_v7 = vrot.slane %v1244_v6, 2 }
 0x2ea   : > { %v1246_v62 = vadd.f32 %v1245_v7, %v1244_v6 }
 0x2ec   : > { %v1247_v24 = vrot.slane %v1246_v62, 1 }
 0x2ee   : > { %v1248_v28 = vadd.f32 %v1247_v24, %v1246_v62 }
 0x2f0   : > { %v2665_v1 = vpop.eup %2664  ;;  %v1249_v8 = vmul.f32 0.5, %v1248_v28 }
 0x2f1   : > { %v1514_v9 = vmul.f32 %v2665_v1, %v1501_v11 }
 0x2f2   : > { %v1250_v14 = vadd.f32 1e-05, %v1249_v8 }
 0x2f3   : > { %v1521_v31 = vmul.f32 %v2297_v3, %v1514_v9 }
 0x2f4   : > { %2666 = vrsqrt.f32 %v1250_v14 }
 0x2f5   : > { %v1528_v27 = vadd.f32 %v2298_v29, %v1521_v31 }
 0x2f7   : > { %v1529_v32 = vpack.c.bf16 %v1528_v27, %v1528_v27 }
 0x2f9   : > { %1531 = vst.msk [vmem:[#allocation3] sm:$0xf] %vm1530_vm10, %v1529_v32 }
 0x2fe   : > { %v2667_v4 = vpop.eup %2666 }
 0x2ff   : > { %v1252_v16 = vmul.f32 %v2667_v4, %v1240_v26 }
 0x301   : > { %v1259_v33 = vmul.f32 %v2295_v15, %v1252_v16 }
 0x303   : > { %v1266_v17 = vadd.f32 %v2296_v5, %v1259_v33 }
 0x305   : > { %v1267_v34 = vpack.c.bf16 %v1266_v17, %v1266_v17 }
 0x307   : > { %1268 = vst [vmem:[#allocation2] sm:$0xf] %v1267_v34 }
 0x308 PF: > { %v1535_v35 = vld [vmem:[%s4043_s18] sm:$0xff]  ;;  %v1604_v38 = vld [vmem:[%s4060_s26] sm:$0xff]  ;;  %v3375_v49 = vmov 0.0   ;;  %vm3376_vm11 = vmmov 0   ;;  %v1537_v30 = vld [vmem:[%s4043_s18 + $0x10] sm:$0xff]  ;;  %vm1610_vm12 = vcmask 523264  }
 0x309   : > { %2402 = vmatprep.subr.bf16.mxu0 %v3375_v49  ;;  %v1539_v21 = vunpack.c.l.s8.bf16 %v1535_v35  ;;  %2422 = vmatprep.subr.bf16.mxu1 %v3375_v49  ;;  %v1606_v23 = vunpack.c.l.s8.bf16 %v1604_v38  ;;  %v1540_v39 = vunpack.c.h.s8.bf16 %v1535_v35  ;;  %v1536_v18 = vld [vmem:[%s4043_s18 + $0x8] sm:$0xff]  ;;  %v1607_v37 = vunpack.c.h.s8.bf16 %v1604_v38  ;;  %v1605_v10 = vld [vmem:[%s4060_s26 + $0x8] sm:$0xff]  ;;  %v1538_v20 = vld [vmem:[%s4043_s18 + $0x18] sm:$0xff]  ;;  %s4661_s25 = sld [smem:[#allocation51_spill]] }
 0x30a   : > { %2430 = vmatprep.mubr.msk.bf16.mxu1 %vm3376_vm11, %v3375_v49  ;;  %2418 = vmatprep.mubr.msk.bf16.mxu0 %vm3376_vm11, %v3375_v49  ;;  %v1541_v55 = vunpack.c.l.s8.bf16 %v1536_v18  ;;  %v1608_v19 = vunpack.c.l.s8.bf16 %v1605_v10  ;;  %v1542_v22 = vunpack.c.h.s8.bf16 %v1536_v18  ;;  %v1609_v36 = vunpack.c.h.s8.bf16 %v1605_v10  ;;  %v1673_v58 = vld [vmem:[%s4072_s19] sm:$0xff]  ;;  %v1603_v41 = vld [vmem:[#allocation3] sm:$0xf]  ;;  %v1674_v47 = vld [vmem:[%s4072_s19 + $0x8] sm:$0xff] }
 0x30b   : > { %2403 = vmatpush3.bf16.msra.mxu0 %v1539_v21  ;;  %2423 = vmatpush3.bf16.msra.mxu1 %v1606_v23  ;;  %v1543_v40 = vunpack.c.l.s8.bf16 %v1537_v30  ;;  %v1677_v42 = vunpack.c.l.s8.bf16 %v1673_v58  ;;  %v1544_v59 = vunpack.c.h.s8.bf16 %v1537_v30  ;;  %v1678_v11 = vunpack.c.h.s8.bf16 %v1673_v58  ;;  %v1675_v43 = vld [vmem:[%s4072_s19 + $0x10] sm:$0xff]  ;;  %v1676_v57 = vld [vmem:[%s4072_s19 + $0x18] sm:$0xff]  ;;  %v1671_v3 = vld [vmem:[#allocation4] sm:$0xff] }
 0x30c   : > { %2404 = vmatprep.subr.bf16.mxu0 %v3375_v49  ;;  %2424 = vmatprep.subr.bf16.mxu1 %v3375_v49  ;;  %v1545_v44 = vunpack.c.l.s8.bf16 %v1538_v20  ;;  %v1679_v48 = vunpack.c.l.s8.bf16 %v1674_v47  ;;  %v1546_v56 = vunpack.c.h.s8.bf16 %v1538_v20  ;;  %v1680_v45 = vunpack.c.h.s8.bf16 %v1674_v47  ;;  %v2302_v51 = vld [vmem:[%s922_s21] ss:$0 sm:$0xff]  ;;  %v1672_v14 = vld [vmem:[#allocation4 + $0x8] sm:$0xff] }
 0x30d   : > { %v1681_v52 = vunpack.c.l.s8.bf16 %v1675_v43  ;;  %v1682_v46 = vunpack.c.h.s8.bf16 %v1675_v43  ;;  %v1683_v25 = vunpack.c.l.s8.bf16 %v1676_v57  ;;  %v1684_v60 = vunpack.c.h.s8.bf16 %v1676_v57  ;;  %v2303_v61 = vld [vmem:[%s930_s7] ss:$0 sm:$0xff] }
 0x30e   : > { %v1534_v63 = vld [vmem:[#allocation2] sm:$0xf] }
 0x30f   : > { %2405 = vmatpush3.bf16.msra.mxu0 %v1540_v39  ;;  %2425 = vmatpush3.bf16.msra.mxu1 %v1607_v37  ;;  %v2299_v2 = vld [vmem:[%s889_s12] ss:$0 sm:$0xff]  ;;  %p2304_p8 = scmp.ne.s32.totalorder %s4661_s25, 1 }
 0x310   : > { %2406 = vmatprep.subr.bf16.mxu0 %v3375_v49  ;;  %2426 = vmatprep.subr.bf16.mxu1 %v3375_v49  ;;  %v2300_v12 = vld [vmem:[%s897_s15] ss:$0 sm:$0xff]  ;;  %s4662_s4 = sld [smem:[#allocation69_spill]] (!%p2304_p8)  ;;  %v3377_v34 = vmov (!%p2304_p8), 0   ;;  %v1756_v35 = vlaneseq (!%p2304_p8)  ;;  %v2305_v23 = vld [vmem:[#allocation24] ss:$0 sm:$0xff] (!%p2304_p8) }
 0x311   : > { %v2306_v18 = vld [vmem:[#allocation26] ss:$0 sm:$0xff] (!%p2304_p8)  ;;  %s4664_s28 = sld [smem:[#allocation70_spill]] (!%p2304_p8)  ;;  %s4665_s3 = sld [smem:[#allocation71_spill]] (!%p2304_p8) }
 0x313   : > { %2407 = vmatpush3.bf16.msra.mxu0 %v1541_v55  ;;  %2427 = vmatpush3.bf16.msra.mxu1 %v1608_v19 }
 0x314   : > { %2408 = vmatprep.subr.bf16.mxu0 %v3375_v49  ;;  %2428 = vmatprep.subr.bf16.mxu1 %v3375_v49 }
 0x316   : > { %s4663_s5 = smov (!%p2304_p8), %s4662_s4  ;;  %v1823_v15 = vld [vmem:[%s4662_s4 + $0x8] sm:$0xff] (!%p2304_p8) }
 0x317   : > { %2409 = vmatpush3.bf16.msra.mxu0 %v1542_v22  ;;  %2429 = vmatpush3.bf16.msra.mxu1 %v1609_v36  ;;  %v1822_v16 = vld [vmem:[%s4663_s5] sm:$0xff] (!%p2304_p8)  ;;  %v1831_v5 = vunpack.c.l.s8.bf16 (!%p2304_p8), %v1823_v15  ;;  %v1833_v33 = vunpack.c.h.s8.bf16 (!%p2304_p8), %v1823_v15  ;;  %v1825_v38 = vld [vmem:[%s4663_s5 + $0x18] sm:$0xff] (!%p2304_p8)  ;;  %v1824_v10 = vld [vmem:[%s4663_s5 + $0x10] sm:$0xff] (!%p2304_p8)  ;;  %v4371_v22 = vshrl.u32 (!%p2304_p8), %v1756_v35, 7 }
 0x318   : > { %2410 = vmatprep.subr.bf16.mxu0 %v3375_v49  ;;  %2434 = vmatprep.subr.bf16.mxu1 %v3375_v49  ;;  %v1830_v17 = vunpack.c.l.s8.bf16 (!%p2304_p8), %v1822_v16  ;;  %v1832_v39 = vunpack.c.h.s8.bf16 (!%p2304_p8), %v1822_v16  ;;  %v1835_v37 = vunpack.c.l.s8.bf16 (!%p2304_p8), %v1825_v38  ;;  %v1834_v58 = vunpack.c.l.s8.bf16 (!%p2304_p8), %v1824_v10 }
 0x319   : > { %vm1758_vm13 = vcmp.lt.s32.totalorder (!%p2304_p8), %v4371_v22, 2 }
 0x31a   : > { %2431 = vmatmul.mubr.msk.bf16.vlgmr.msra.gmra.mrb[0].mxu1 %vm1610_vm12, %v1603_v41 }
 0x31b   : > { %2411 = vmatpush3.bf16.msra.mxu0 %v1543_v40  ;;  %2435 = vmatpush3.bf16.msra.mxu1 %v1677_v42  ;;  %v3378_v40 = vmov (!%p2304_p8), 0.0   ;;  %v1837_v42 = vunpack.c.h.s8.bf16 (!%p2304_p8), %v1825_v38 }
 0x31c   : > { %2412 = vmatprep.subr.bf16.mxu0 %v3375_v49  ;;  %2436 = vmatprep.subr.bf16.mxu1 %v3375_v49  ;;  %v2307_v41 = vsel (!%p2304_p8), %vm1758_vm13, 1.0, %v3378_v40 }
 0x31d   : > { %2450 = vmatprep.mubr.msk.bf16.mxu1 %vm3376_vm11, %v3375_v49 }
 0x31f   : > { %2413 = vmatpush3.bf16.msra.mxu0 %v1544_v59  ;;  %2437 = vmatpush3.bf16.msra.mxu1 %v1678_v11  ;;  %v1827_v11 = vld [vmem:[%s4663_s5 + $0x28] sm:$0xff] (!%p2304_p8) }
 0x320   : > { %2414 = vmatprep.subr.bf16.mxu0 %v3375_v49  ;;  %2438 = vmatprep.subr.bf16.mxu1 %v3375_v49 }
 0x323   : > { %2415 = vmatpush3.bf16.msra.mxu0 %v1545_v44  ;;  %2439 = vmatpush3.bf16.msra.mxu1 %v1679_v48  ;;  %v1836_v48 = vunpack.c.h.s8.bf16 (!%p2304_p8), %v1824_v10 }
 0x324   : > { %2416 = vmatprep.subr.bf16.mxu0 %v3375_v49  ;;  %2440 = vmatprep.subr.bf16.mxu1 %v3375_v49 }
 0x327   : > { %2417 = vmatpush3.bf16.msra.mxu0 %v1546_v56  ;;  %2441 = vmatpush3.bf16.msra.mxu1 %v1680_v45  ;;  %v1839_v56 = vunpack.c.l.s8.bf16 (!%p2304_p8), %v1827_v11  ;;  %v1826_v45 = vld [vmem:[%s4663_s5 + $0x20] sm:$0xff] (!%p2304_p8) }
 0x328   : > { %2442 = vmatprep.subr.bf16.mxu1 %v3375_v49  ;;  %1846 = vmatprep.subr.bf16.mxu0 (!%p2304_p8), %v1831_v5  ;;  %v1838_v57 = vunpack.c.l.s8.bf16 (!%p2304_p8), %v1826_v45 }
 0x32a   : > { %2419 = vmatmul.mubr.bf16.vlgmr.msra.gmra.mrb[0].mxu0 %v1534_v63 }
 0x32b   : > { %2443 = vmatpush3.bf16.msra.mxu1 %v1681_v52  ;;  %1878 = vmatprep.mubr.bf16.mxu0 (!%p2304_p8), %v3377_v34 }
 0x32c   : > { %2444 = vmatprep.subr.bf16.mxu1 %v3375_v49  ;;  %1847 = vmatpush1.bf16.msra.mxu0 (!%p2304_p8), %v1830_v17 }
 0x32d   : > { %1848 = vmatprep.subr.bf16.mxu0 (!%p2304_p8), %v1833_v33 }
 0x32f   : > { %2445 = vmatpush3.bf16.msra.mxu1 %v1682_v46 }
 0x330   : > { %2446 = vmatprep.subr.bf16.mxu1 %v3375_v49  ;;  %1849 = vmatpush1.bf16.msra.mxu0 (!%p2304_p8), %v1832_v39 }
 0x331   : > { %1850 = vmatprep.subr.bf16.mxu0 (!%p2304_p8), %v1835_v37 }
 0x333   : > { %2447 = vmatpush3.bf16.msra.mxu1 %v1683_v25  ;;  %v1841_v25 = vunpack.c.h.s8.bf16 (!%p2304_p8), %v1827_v11  ;;  %v1905_v11 = vld [vmem:[%s4665_s3] sm:$0x3] (!%p2304_p8) }
 0x334   : > { %2448 = vmatprep.subr.bf16.mxu1 %v3375_v49  ;;  %1851 = vmatpush1.bf16.msra.mxu0 (!%p2304_p8), %v1834_v58 }
 0x335   : > { %1852 = vmatprep.subr.bf16.mxu0 (!%p2304_p8), %v1837_v42  ;;  %v1893_v42 = vsub.s32 (!%p2304_p8), 0, %v4371_v22 }
 0x337   : > { %2449 = vmatpush3.bf16.msra.mxu1 %v1684_v60 }
 0x338   : > { %1853 = vmatpush1.bf16.msra.mxu0 (!%p2304_p8), %v1836_v48  ;;  %v1910_v48 = vrot.slane (!%p2304_p8), %v1905_v11, %v1893_v42 }
 0x339   : > { %1854 = vmatprep.subr.bf16.mxu0 (!%p2304_p8), %v1839_v56 }
 0x33c   : > { %1855 = vmatpush1.bf16.msra.mxu0 (!%p2304_p8), %v1838_v57 }
 0x33d   : > { %1856 = vmatprep.subr.bf16.mxu0 (!%p2304_p8), %v1841_v25 }
 0x3ed   : > { %v1648_v54 = vpop.f32.mrb[0].mxu1 }
 0x3ee   : > { %v2432_v50 = vpop.f32.mrb[1].mxu1  ;;  %v1661_v53 = vmul.f32 %v2302_v51, %v1648_v54  ;;  %v1840_v51 = vunpack.c.h.s8.bf16 (!%p2304_p8), %v1826_v45 }
 0x3ef   : > { %v1651_v26 = vpop.f32.mrb[2].mxu1  ;;  %v1829_v50 = vld [vmem:[%s4663_s5 + $0x38] sm:$0xff] (!%p2304_p8) }
 0x3f0   : > { %v2433_v13 = vpop.f32.mrb[3].mxu1  ;;  %v1669_v6 = vadd.f32 %v2303_v61, %v1661_v53  ;;  %v1843_v53 = vunpack.c.l.s8.bf16 (!%p2304_p8), %v1829_v50  ;;  %v1828_v61 = vld [vmem:[%s4663_s5 + $0x30] sm:$0xff] (!%p2304_p8)  ;;  %1857 = vmatpush1.bf16.msra.mxu0 (!%p2304_p8), %v1840_v51 }
 0x3f2   : > { %1858 = vmatprep.subr.bf16.mxu0 (!%p2304_p8), %v1843_v53 }
 0x3fd   : > { %v1581_v0 = vpop.f32.mrb[0].mxu0 }
 0x3fe   : > { %v1594_v7 = vmul.f32 %v2299_v2, %v1581_v0  ;;  %v2420_v62 = vpop.f32.mrb[1].mxu0 }
 0x3ff   : > { %v1584_v24 = vpop.f32.mrb[2].mxu0  ;;  %v1845_v62 = vunpack.c.h.s8.bf16 (!%p2304_p8), %v1829_v50 }
 0x400   : > { %v1602_v28 = vadd.f32 %v2300_v12, %v1594_v7  ;;  %v2421_v1 = vpop.f32.mrb[3].mxu0  ;;  %v1842_v7 = vunpack.c.l.s8.bf16 (!%p2304_p8), %v1828_v61 }
 0x402   : > { %v1670_v8 = vpack.c.bf16 %v1669_v6, %v1602_v28  ;;  %1859 = vmatpush1.bf16.msra.mxu0 (!%p2304_p8), %v1842_v7 }
 0x403   : > { %1860 = vmatprep.subr.bf16.mxu0 (!%p2304_p8), %v1845_v62 }
 0x404   : > { %2451 = vmatmul.mubr.bf16.vlgmr.msra.gmra.mrb[4].mxu1 %v1670_v8 }
 0x4d6   : > { %1733 = sbr.rel (%p2304_p8) target bundleno = 1533 (0x5fd), region = 176 }
 0x4d7   : > { %v1719_v9 = vpop.f32.mrb[4].mxu1 }
 0x4d8   : > { %v1726_v29 = vadd.f32 %v1719_v9, %v1671_v3  ;;  %v2452_v31 = vpop.f32.mrb[5].mxu1  ;;  %v1844_v3 = vunpack.c.h.s8.bf16 (!%p2304_p8), %v1828_v61 }
 0x4d9   : > { %v1722_v27 = vpop.f32.mrb[6].mxu1 }
 0x4da   : > { %1728 = vst [vmem:[#allocation4] sm:$0xff] %v1726_v29  ;;  %v1727_v32 = vadd.f32 %v1722_v27, %v1672_v14  ;;  %v2453_v4 = vpop.f32.mrb[7].mxu1  ;;  %1861 = vmatpush1.bf16.msra.mxu0 (!%p2304_p8), %v1844_v3 }
 0x4dc   : > { %1729 = vst [vmem:[#allocation4 + $0x8] sm:$0xff] %v1727_v32 }
 0x4e1   : > { %v1734_v49 = vld [vmem:[#allocation4] sm:$0xff] }
 0x4e2   : > { %v1743_v55 = vmul.f32 %v2305_v23, %v1734_v49 }
 0x4e3   : > { %v1735_v21 = vld [vmem:[#allocation4 + $0x8] sm:$0xff] }
 0x4e4   : > { %v1744_v19 = vmul.f32 %v2305_v23, %v1735_v21  ;;  %v1752_v30 = vadd.f32 %v2306_v18, %v1743_v55  ;;  %v2309_v55 = vld [vmem:[#allocation29] ss:$0 sm:$0xff] }
 0x4e6   : > { %v1753_v36 = vadd.f32 %v2306_v18, %v1744_v19  ;;  %v1761_v59 = vmul.f32 %v2307_v41, %v1752_v30  ;;  %v2308_v18 = vld [vmem:[#allocation27] ss:$0 sm:$0xff] }
 0x4e8   : > { %v1796_v20 = vmul.f32 %v2307_v41, %v1753_v36  ;;  %v1762_v47 = vrot.slane %v1761_v59, 4 }
 0x4ea   : > { %v1797_v44 = vrot.slane %v1796_v20, 4  ;;  %v1763_v43 = vadd.f32 %v1762_v47, %v1761_v59  ;;  %v1889_v59 = vld [vmem:[%s4664_s28] sm:$0x3] }
 0x4eb   : > { %v1894_v47 = vrot.slane %v1889_v59, %v1893_v42 }
 0x4ec   : > { %v1798_v63 = vadd.f32 %v1797_v44, %v1796_v20  ;;  %v1764_v52 = vrot.slane %v1763_v43, 2  ;;  %v1897_v20 = vsub.s32 1, %v4371_v22 }
 0x4ee   : > { %v1799_v46 = vrot.slane %v1798_v63, 2  ;;  %v1765_v60 = vadd.f32 %v1764_v52, %v1763_v43  ;;  %v1898_v44 = vrot.slane %v1889_v59, %v1897_v20  ;;  %v1914_v45 = vrot.slane %v1905_v11, %v1897_v20 }
 0x4f0   : > { %v1800_v54 = vadd.f32 %v1799_v46, %v1798_v63  ;;  %v1766_v26 = vrot.slane %v1765_v60, 1 }
 0x4f2   : > { %v1801_v13 = vrot.slane %v1800_v54, 1  ;;  %v1767_v2 = vadd.f32 %v1766_v26, %v1765_v60 }
 0x4f4   : > { %v1802_v0 = vadd.f32 %v1801_v13, %v1800_v54  ;;  %v1768_v12 = vmul.f32 0.5, %v1767_v2 }
 0x4f6   : > { %v1803_v6 = vmul.f32 0.5, %v1802_v0  ;;  %v1769_v24 = vsub.f32 %v1752_v30, %v1768_v12 }
 0x4f8   : > { %v1804_v28 = vsub.f32 %v1753_v36, %v1803_v6  ;;  %v1770_v1 = vmul.f32 %v2307_v41, %v1769_v24 }
 0x4fa   : > { %v1805_v8 = vmul.f32 %v2307_v41, %v1804_v28  ;;  %v1771_v9 = vmul.f32 %v1770_v1, %v1770_v1 }
 0x4fc   : > { %v1806_v14 = vmul.f32 %v1805_v8, %v1805_v8  ;;  %v1772_v29 = vrot.slane %v1771_v9, 4 }
 0x4fe   : > { %v1807_v31 = vrot.slane %v1806_v14, 4  ;;  %v1773_v27 = vadd.f32 %v1772_v29, %v1771_v9 }
 0x500   : > { %v1808_v32 = vadd.f32 %v1807_v31, %v1806_v14  ;;  %v1774_v4 = vrot.slane %v1773_v27, 2 }
 0x502   : > { %v1809_v15 = vrot.slane %v1808_v32, 2  ;;  %v1775_v16 = vadd.f32 %v1774_v4, %v1773_v27 }
 0x504   : > { %v1810_v5 = vadd.f32 %v1809_v15, %v1808_v32  ;;  %v1776_v33 = vrot.slane %v1775_v16, 1 }
 0x506   : > { %v1811_v17 = vrot.slane %v1810_v5, 1  ;;  %v1777_v34 = vadd.f32 %v1776_v33, %v1775_v16 }
 0x508   : > { %v1812_v35 = vadd.f32 %v1811_v17, %v1810_v5  ;;  %v1778_v38 = vmul.f32 0.5, %v1777_v34 }
 0x50a   : > { %v1813_v49 = vmul.f32 0.5, %v1812_v35  ;;  %v1779_v21 = vadd.f32 1e-05, %v1778_v38 }
 0x50c   : > { %v1814_v23 = vadd.f32 1e-05, %v1813_v49  ;;  %2668 = vrsqrt.f32 %v1779_v21 }
 0x50e   : > { %2670 = vrsqrt.f32 %v1814_v23 }
 0x516   : > { %v2669_v39 = vpop.eup %2668 }
 0x517   : > { %v1781_v10 = vmul.f32 %v2669_v39, %v1769_v24 }
 0x518   : > { %v2671_v37 = vpop.eup %2670 }
 0x519   : > { %v1816_v19 = vmul.f32 %v2671_v37, %v1804_v28  ;;  %v1788_v30 = vmul.f32 %v2308_v18, %v1781_v10 }
 0x51b   : > { %v1817_v36 = vmul.f32 %v2308_v18, %v1816_v19  ;;  %v1795_v58 = vadd.f32 %v2309_v55, %v1788_v30 }
 0x51d   : > { %v1818_v40 = vadd.f32 %v2309_v55, %v1817_v36  ;;  %1819 = vst [vmem:[#allocation31] sm:$0xff] %v1795_v58 }
 0x51f   : > { %1820 = vst [vmem:[#allocation30] sm:$0xff] %v1818_v40  ;;  %v1821_v41 = vpack.c.bf16 %v1818_v40, %v1795_v58 }
 0x521   : > { %1879 = vmatmul.mubr.bf16.vlgmr.msra.gmra.mrb[0].mxu0 %v1821_v41 }
 0x5f4   : > { %v1880_v56 = vpop.f32.mrb[0].mxu0 }
 0x5f5   : > { %v1901_v43 = vmul.f32 %v1894_v47, %v1880_v56  ;;  %v1882_v63 = vpop.f32.mrb[1].mxu0 }
 0x5f6   : > { %v1902_v52 = vmul.f32 %v1898_v44, %v1882_v63  ;;  %v1884_v46 = vpop.f32.mrb[2].mxu0 }
 0x5f7   : > { %v1917_v57 = vadd.f32 %v1910_v48, %v1901_v43  ;;  %v1903_v25 = vmul.f32 %v1894_v47, %v1884_v46  ;;  %v1886_v60 = vpop.f32.mrb[3].mxu0 }
 0x5f8   : > { %v1918_v54 = vadd.f32 %v1914_v45, %v1902_v52  ;;  %v1904_v50 = vmul.f32 %v1898_v44, %v1886_v60 }
 0x5f9   : > { %1921 = vst [vmem:[#allocation34] sm:$0xff] %v1917_v57  ;;  %v1919_v22 = vadd.f32 %v1910_v48, %v1903_v25 }
 0x5fa   : > { %1922 = vst [vmem:[#allocation34 + $0x8] sm:$0xff] %v1918_v54  ;;  %v1920_v26 = vadd.f32 %v1914_v45, %v1904_v50 }
 0x5fb   : > { %1923 = vst [vmem:[#allocation33] sm:$0xff] %v1919_v22 }
 0x5fc   : > { %1924 = vst [vmem:[#allocation33 + $0x8] sm:$0xff] %v1920_v26 }
 0x5fd PF: > { %s4666_s9 = sld [smem:[#allocation51_spill]]  ;;  %s3379_s4 = smov [#allocation31]  }
 0x5fe   : > { %s1943_s27 = sshll.u32 %s3379_s4, 4  ;;  %s3380_s29 = smov [#allocation30]   ;;  %s1944_s27 = int_to_ptr.vmem [resolvable:$true] %s1943_s27 }
 0x5ff   : > { %s1932_s10 = sshll.u32 %s3380_s29, 4  ;;  %s3162_s30 = scalar_lea.vmem %s1944_s27, 128  ;;  %s1933_s10 = int_to_ptr.vmem [resolvable:$true] %s1932_s10 }
 0x600   : > { %p3163_p7 = scmp.ne.s32.totalorder %s1944_s27, %s3162_s30  ;;  %p3169_p4 = scmp.lt.s32.totalorder %s1944_s27, %s1944_s27 }
 0x601   : > { %p3170_p3 = scmp.lt.s32.totalorder %s3162_s30, %s3162_s30 }
 0x603   : > { %p2598_p9 = scmp.eq.s32.totalorder %s4666_s9, 1  ;;  %p3171_p13 = por %p3170_p3, %p3169_p4 }
 0x605   : > { %p3164_p5 = pnand %p3163_p7, %p2598_p9 }
 0x607   : > { %p3165_p2 = pneg %p3164_p5 }
 0x609   : > { %p3172_p1 = pnand %p3171_p13, %p3165_p2 }
 0x60b   : > { %3175 = shalt.err (!%p3172_p1)
}
 0x60c   : > { %s4667_s18 = sld [smem:[#allocation73_spill]] }
 0x612   : > { %s3176_s12 = scalar_lea.hbm %s4667_s18, 128 }
 0x613   : > { %p3177_p11 = scmp.ne.s32.totalorder %s4667_s18, %s3176_s12  ;;  %p3182_p10 = scmp.lt.u32.totalorder %s3176_s12, %s4667_s18 }
 0x615   : > { %p3178_p0 = pnand %p3177_p11, %p2598_p9 }
 0x617   : > { %p3179_p12 = pneg %p3178_p0 }
 0x619   : > { %p3184_p6 = pnand %p3182_p10, %p3179_p12 }
 0x61b   : > { %3187 = shalt.err (!%p3184_p6)
}
 0x61c   : > { %2511 = dma.vmem_to_hbm [thread:$0]  (%p2598_p9), %s1944_s27, 128, %s4667_s18, [#allocation32]  }
 0x61d   : > { %s3188_s7 = scalar_lea.vmem %s1933_s10, 128  ;;  %p3195_p2 = scmp.lt.s32.totalorder %s1933_s10, %s1933_s10 }
 0x61e   : > { %p3189_p8 = scmp.ne.s32.totalorder %s1933_s10, %s3188_s7  ;;  %p3196_p4 = scmp.lt.s32.totalorder %s3188_s7, %s3188_s7 }
 0x620   : > { %p3190_p7 = pnand %p3189_p8, %p2598_p9  ;;  %p3197_p3 = por %p3196_p4, %p3195_p2 }
 0x622   : > { %p3191_p5 = pneg %p3190_p7 }
 0x624   : > { %p3198_p13 = pnand %p3197_p3, %p3191_p5 }
 0x626   : > { %3201 = shalt.err (!%p3198_p13)
}
 0x627   : > { %s4668_s2 = sld [smem:[#allocation72_spill]] }
 0x62d   : > { %s3202_s25 = scalar_lea.hbm %s4668_s2, 128 }
 0x62e   : > { %p3203_p1 = scmp.ne.s32.totalorder %s4668_s2, %s3202_s25  ;;  %p3208_p12 = scmp.lt.u32.totalorder %s3202_s25, %s4668_s2 }
 0x630   : > { %p3204_p11 = pnand %p3203_p1, %p2598_p9 }
 0x632   : > { %p3205_p0 = pneg %p3204_p11 }
 0x634   : > { %p3210_p10 = pnand %p3208_p12, %p3205_p0 }
 0x636   : > { %3213 = shalt.err (!%p3210_p10)
}
 0x637   : > { %2509 = dma.vmem_to_hbm [thread:$0]  (%p2598_p9), %s1933_s10, 128, %s4668_s2, [#allocation7]  }
 0x638   : > { %s3381_s22 = smov [#allocation33]   ;;  %s3382_s15 = smov [#allocation34]  }
 0x639   : > { %s1954_s12 = sshll.u32 %s3381_s22, 4  ;;  %s1965_s23 = sshll.u32 %s3382_s15, 4  ;;  %s1955_s12 = int_to_ptr.vmem [resolvable:$true] %s1954_s12  ;;  %s1966_s23 = int_to_ptr.vmem [resolvable:$true] %s1965_s23 }
 0x63a   : > { %s3214_s17 = scalar_lea.vmem %s1955_s12, 256  ;;  %p3221_p5 = scmp.lt.s32.totalorder %s1955_s12, %s1955_s12 }
 0x63b   : > { %p3215_p6 = scmp.ne.s32.totalorder %s1955_s12, %s3214_s17  ;;  %p3222_p2 = scmp.lt.s32.totalorder %s3214_s17, %s3214_s17 }
 0x63d   : > { %p3216_p8 = pnand %p3215_p6, %p2598_p9  ;;  %p3223_p4 = por %p3222_p2, %p3221_p5 }
 0x63f   : > { %p3217_p7 = pneg %p3216_p8 }
 0x641   : > { %p3224_p3 = pnand %p3223_p4, %p3217_p7 }
 0x643   : > { %3227 = shalt.err (!%p3224_p3)
}
 0x644   : > { %s4669_s24 = sld [smem:[#allocation74_spill]] }
 0x64a   : > { %s4670_s7 = smov %s4669_s24  ;;  %s3228_s10 = scalar_lea.hbm %s4669_s24, 256 }
 0x64b   : > { %p3229_p13 = scmp.ne.s32.totalorder %s4670_s7, %s3228_s10  ;;  %p3234_p0 = scmp.lt.u32.totalorder %s3228_s10, %s4670_s7 }
 0x64d   : > { %p3230_p1 = pnand %p3229_p13, %p2598_p9 }
 0x64f   : > { %p3231_p11 = pneg %p3230_p1 }
 0x651   : > { %p3236_p12 = pnand %p3234_p0, %p3231_p11 }
 0x653   : > { %3239 = shalt.err (!%p3236_p12)
}
 0x654   : > { %2513 = dma.vmem_to_hbm [thread:$0]  (%p2598_p9), %s1955_s12, 256, %s4670_s7, [#allocation32]  }
 0x655   : > { %s3240_s29 = scalar_lea.vmem %s1966_s23, 256  ;;  %p3247_p7 = scmp.lt.s32.totalorder %s1966_s23, %s1966_s23 }
 0x656   : > { %p3241_p10 = scmp.ne.s32.totalorder %s1966_s23, %s3240_s29  ;;  %p3248_p5 = scmp.lt.s32.totalorder %s3240_s29, %s3240_s29 }
 0x658   : > { %p3242_p6 = pnand %p3241_p10, %p2598_p9  ;;  %p3249_p2 = por %p3248_p5, %p3247_p7 }
 0x65a   : > { %p3243_p8 = pneg %p3242_p6 }
 0x65c   : > { %p3250_p4 = pnand %p3249_p2, %p3243_p8 }
 0x65e   : > { %3253 = shalt.err (!%p3250_p4)
}
 0x65f   : > { %s4671_s22 = sld [smem:[#allocation75_spill]] }
 0x665   : > { %s3254_s15 = scalar_lea.hbm %s4671_s22, 256 }
 0x666   : > { %p3255_p3 = scmp.ne.s32.totalorder %s4671_s22, %s3254_s15  ;;  %p3260_p11 = scmp.lt.u32.totalorder %s3254_s15, %s4671_s22 }
 0x668   : > { %p3256_p13 = pnand %p3255_p3, %p2598_p9 }
 0x66a   : > { %p3257_p1 = pneg %p3256_p13 }
 0x66c   : > { %p3262_p0 = pnand %p3260_p11, %p3257_p1 }
 0x66e   : > { %3265 = shalt.err (!%p3262_p0)
}
 0x66f   : > { %2515 = dma.vmem_to_hbm [thread:$0]  (%p2598_p9), %s1966_s23, 256, %s4671_s22, [#allocation35]  }
 0x670   : > { %3323 = dma.done.wait (%p2598_p9), [#allocation7], 128  }
 0x671   : > { %3325 = vsyncadd (%p2598_p9), [#allocation7], 4294967168 }
 0x672   : > { %3327 = dma.done.wait (%p2598_p9), [#allocation32], 384  }
 0x673   : > { %3329 = vsyncadd (%p2598_p9), [#allocation32], 4294966912 }
 0x674   : > { %3331 = dma.done.wait (%p2598_p9), [#allocation35], 256  }
 0x675   : > { %3333 = vsyncadd (%p2598_p9), [#allocation35], 4294967040 }
 0x676 PF: > { %s4672_s25 = sld [smem:[#allocation53_spill]]  ;;  %s4673_s4 = sld [smem:[#allocation49_spill]] }
 0x677   : > { %s4674_s30 = sld [smem:[#allocation50_spill]]  ;;  %s4675_s24 = sld [smem:[#allocation54_spill]] }
 0x67c   : > { %p45_p12 = scmp.ge.s32.totalorder %s4672_s25, 4  }
 0x67e   :  { %47 = sbr.rel (!%p45_p12) target bundleno = 34 (0x22), region = 278 }
 0x685   :  { %1990 = vsyncpa [#allocation6], 1 }
 0x686   :  { %1992 = vsyncpa [#allocation6 + $0x1], 1 }
 0x687   :  { %1993 = vsyncpa [#allocation9], 1 }
 0x688   :  { %1994 = vsyncpa [#allocation12], 1 }
 0x689   :  { %1995 = vsyncpa [#allocation19], 1 }
 0x68a   :  { %1997 = vsyncpa [#allocation19 + $0x1], 1 }
 0x68b   :  { %1998 = vsyncpa [#allocation22], 1 }
 0x68c   :  { %2000 = vsyncpa [#allocation22 + $0x1], 1 }
 0x68d   :  { %2001 = vsyncpa [#allocation25], 1 }
 0x68e   :  { %2002 = vsyncpa [#allocation28], 1 }
 0x68f   :  { %2003 = vsyncpa [#allocation7], 1 }
 0x690   :  { %2005 = vsyncpa [#allocation7 + $0x1], 1 }
 0x691   :  { %2006 = vsyncpa [#allocation32], 1 }
 0x692   :  { %2007 = vsyncpa [#allocation35], 1 }

// kernel: tpu_custom_call.1
= control target key start
LH: loop header
LB: loop body
LE: loop exit
PB: predicated region body
PF: predicated region fallthrough
CT: control target
= control target key end

     0   :  { %s4492_s0 = inlined_call_operand.hbm [shape: bf16[8,8,64], index: 0, kind: input, shape index: {}]   ;;  %s4493_s1 = inlined_call_operand.hbm [shape: bf16[8,16,32], index: 1, kind: input, shape index: {}]   ;;  %s4494_s2 = inlined_call_operand.hbm [shape: f32[1,128], index: 2, kind: input, shape index: {}]   ;;  %s4495_s3 = inlined_call_operand.hbm [shape: f32[1,128], index: 3, kind: input, shape index: {}]   ;;  %s4496_s4 = inlined_call_operand.hbm [shape: s8[128,256], index: 4, kind: input, shape index: {}]   ;;  %s4497_s5 = inlined_call_operand.hbm [shape: f32[1,256], index: 5, kind: input, shape index: {}]   ;;  %s4498_s6 = inlined_call_operand.hbm [shape: f32[1,256], index: 6, kind: input, shape index: {}]   ;;  %s4499_s7 = inlined_call_operand.hbm [shape: f32[1,64], index: 7, kind: input, shape index: {}]   ;;  %s4500_s8 = inlined_call_operand.hbm [shape: f32[1,64], index: 8, kind: input, shape index: {}]   ;;  %s4501_s9 = inlined_call_operand.hbm [shape: s8[64,256], index: 9, kind: input, shape index: {}]   ;;  %s4502_s10 = inlined_call_operand.hbm [shape: f32[1,256], index: 10, kind: input, shape index: {}]   ;;  %s4503_s11 = inlined_call_operand.hbm [shape: f32[1,256], index: 11, kind: input, shape index: {}]   ;;  %s4504_s12 = inlined_call_operand.hbm [shape: s8[256,128], index: 12, kind: input, shape index: {}]   ;;  %s4505_s13 = inlined_call_operand.hbm [shape: f32[1,128], index: 13, kind: input, shape index: {}]   ;;  %s4506_s14 = inlined_call_operand.hbm [shape: f32[1,128], index: 14, kind: input, shape index: {}]   ;;  %s4507_s15 = inlined_call_operand.hbm [shape: f32[1,128], index: 15, kind: input, shape index: {}]   ;;  %s4508_s16 = inlined_call_operand.hbm [shape: f32[1,128], index: 16, kind: input, shape index: {}]   ;;  %s4509_s17 = inlined_call_operand.vmem [shape: s8[128,256], index: 17, kind: input, shape index: {}]   ;;  %s4510_s18 = inlined_call_operand.vmem [shape: f32[1,256], index: 18, kind: input, shape index: {}]   ;;  %s4511_s19 = inlined_call_operand.vmem [shape: f32[1,256], index: 19, kind: input, shape index: {}]   ;;  %s4512_s20 = inlined_call_operand.hbm [shape: f32[8,128], index: 20, kind: output, shape index: {0}]   ;;  %s4513_s21 = inlined_call_operand.hbm [shape: f32[8,128], index: 21, kind: output, shape index: {1}]   ;;  %s4514_s22 = inlined_call_operand.hbm [shape: f32[8,256], index: 22, kind: output, shape index: {2}]   ;;  %s4515_s23 = inlined_call_operand.hbm [shape: f32[8,256], index: 23, kind: output, shape index: {3}]  }
   0x1   :  { %4574 = sst [smem:[#allocation56_spill]] %s4492_s0 }
   0x2   :  { %4575 = sst [smem:[#allocation57_spill]] %s4493_s1 }
   0x3   :  { %4576 = sst [smem:[#allocation58_spill]] %s4494_s2 }
   0x4   :  { %4577 = sst [smem:[#allocation59_spill]] %s4495_s3 }
   0x5   :  { %4578 = sst [smem:[#allocation60_spill]] %s4496_s4 }
   0x6   :  { %4579 = sst [smem:[#allocation61_spill]] %s4497_s5 }
   0x7   :  { %4580 = sst [smem:[#allocation62_spill]] %s4498_s6 }
   0x8   :  { %4581 = sst [smem:[#allocation63_spill]] %s4499_s7 }
   0x9   :  { %4582 = sst [smem:[#allocation64_spill]] %s4501_s9 }
   0xa   :  { %4583 = sst [smem:[#allocation65_spill]] %s4502_s10 }
   0xb   :  { %4584 = sst [smem:[#allocation66_spill]] %s4504_s12 }
   0xc   :  { %4585 = sst [smem:[#allocation67_spill]] %s4505_s13 }
   0xd   :  { %4586 = sst [smem:[#allocation68_spill]] %s4507_s15 }
   0xe   :  { %4587 = sst [smem:[#allocation69_spill]] %s4509_s17 }
   0xf   :  { %4588 = sst [smem:[#allocation70_spill]] %s4510_s18 }
  0x10   :  { %4589 = sst [smem:[#allocation71_spill]] %s4511_s19 }
  0x11   :  { %4590 = sst [smem:[#allocation72_spill]] %s4512_s20 }
  0x12   :  { %4591 = sst [smem:[#allocation73_spill]] %s4513_s21 }
  0x13   :  { %4592 = sst [smem:[#allocation74_spill]] %s4514_s22 }
  0x14   :  { %4593 = sst [smem:[#allocation75_spill]] %s4515_s23 }
  0x15   :  { %29 = vsyncpa [#allocation6], 0 }
  0x16   :  { %30 = vsyncpa [#allocation9], 0 }
  0x17   :  { %31 = vsyncpa [#allocation12], 0 }
  0x18   :  { %32 = vsyncpa [#allocation19], 0 }
  0x19   :  { %34 = vsyncpa [#allocation19 + $0x1], 0 }
  0x1a   :  { %35 = vsyncpa [#allocation22], 0 }
  0x1b   :  { %37 = vsyncpa [#allocation22 + $0x1], 0 }
  0x1c   :  { %38 = vsyncpa [#allocation25], 0 }
  0x1d   :  { %39 = vsyncpa [#allocation28], 0 }
  0x1e   :  { %40 = vsyncpa [#allocation7], 0 }
  0x1f   :  { %41 = vsyncpa [#allocation32], 0 }
  0x20   :  { %42 = vsyncpa [#allocation35], 0  ;;  %s3503_s4 = smov 0   ;;  %s3505_s30 = smov 0  }
  0x21   :  { %s3507_s24 = smov 0   ;;  %s3509_s25 = smov 0  }
  0x22 LB: > { %4594 = sst [smem:[#allocation49_spill]] %s3340_s30  ;;  %s3350_s5 = smov [#allocation5]   ;;  %s3348_s25 = sphi %s3509_s25, %s4672_s25   ;;  %s3344_s24 = sphi %s3507_s24, %s4675_s24   ;;  %s3340_s30 = sphi %s3505_s30, %s4674_s30   ;;  %s3336_s4 = sphi %s3503_s4, %s4673_s4  }
  0x23   : > { %4595 = sst [smem:[#allocation50_spill]] %s3344_s24  ;;  %s604_s1 = sshll.u32 %s3350_s5, 4  ;;  %s3530_s1 = int_to_ptr.vmem [resolvable:$true] %s604_s1 }
  0x24   : > { %s3524_s26 = sadd.s32 4294967295, %s3348_s25   ;;  %p2256_p0 = scmp.ge.s32.totalorder %s3348_s25, 1 }
  0x25   : > { %4596 = sst [smem:[#allocation51_spill]] %s3524_s26  ;;  %p4534_p1 = scmp.eq.s32.totalorder %s3524_s26, 0 }
  0x26   : > { %p592_p2 = scmp.lt.s32.totalorder %s3348_s25, 3  ;;  %s3351_s6 = smov [#allocation8]  }
  0x27   : > { %s617_s27 = sshll.u32 %s3351_s6, 4  ;;  %s4600_s3 = sld [smem:[#allocation56_spill]]  ;;  %s3544_s27 = int_to_ptr.vmem [resolvable:$true] %s617_s27 }
  0x28   : > { %p3532_p4 = pnand %p2256_p0, %p592_p2 }
  0x2a   : > { %s4597_s2 = scalar_select %p3532_p4, 1, 0 }
  0x2b   : > { %p2524_p5 = pneg %p3532_p4 }
  0x2c   : > { %4598 = sst [smem:[#allocation52_spill]] %s4597_s2 }
  0x2d   : > { %p3540_p6 = pnand %p2524_p5, %p4534_p1  ;;  %s2672_s0 = scalar_lea.hbm %s4600_s3, 512 }
  0x2e   : > { %p2673_p7 = scmp.ne.s32.totalorder %s4600_s3, %s2672_s0  ;;  %p2679_p11 = scmp.lt.u32.totalorder %s2672_s0, %s4600_s3 }
  0x2f   : > { %s4599_s7 = scalar_select %p3540_p6, 1, 0 }
  0x30   : > { %p3554_p8 = pneg %p3540_p6 }
  0x32   : > { %s4601_s22 = scalar_select %p3554_p8, 1, 0 }
  0x33   : > { %p2675_p9 = pnand %p3554_p8, %p2673_p7 }
  0x35   : > { %p2676_p10 = pneg %p2675_p9 }
  0x37   : > { %p2681_p12 = pnand %p2679_p11, %p2676_p10 }
  0x39   : > { %2684 = shalt.err (!%p2681_p12)
}
  0x3a   : > { %s2685_s23 = scalar_lea.vmem %s3530_s1, 512  ;;  %p2693_p5 = scmp.lt.s32.totalorder %s3530_s1, %s3530_s1 }
  0x3b   : > { %p2686_p13 = scmp.ne.s32.totalorder %s3530_s1, %s2685_s23  ;;  %p2694_p3 = scmp.lt.s32.totalorder %s2685_s23, %s2685_s23 }
  0x3d   : > { %p2688_p0 = pnand %p2686_p13, %p3554_p8  ;;  %p2695_p7 = por %p2694_p3, %p2693_p5 }
  0x3f   : > { %p2689_p2 = pneg %p2688_p0 }
  0x41   : > { %p2696_p9 = pnand %p2695_p7, %p2689_p2 }
  0x43   : > { %2699 = shalt.err (!%p2696_p9)
}
  0x44   : > { %s3352_s28 = smov 64   ;;  %s3353_s20 = smov 4  }
  0x45   : > { %2527 = dma.hbm_to_vmem [thread:$0]  (!%p3540_p6), %s4600_s3, 512, %s3530_s1, [#allocation6], %s3352_s28, %s3352_s28, %s3353_s20  }
  0x46   : > { %s4602_s21 = sld [smem:[#allocation57_spill]] }
  0x4c   : > { %s2700_s19 = scalar_lea.hbm %s4602_s21, 1024 }
  0x4d   : > { %p2701_p3 = scmp.ne.s32.totalorder %s4602_s21, %s2700_s19  ;;  %p2707_p12 = scmp.lt.u32.totalorder %s2700_s19, %s4602_s21 }
  0x4f   : > { %p2703_p10 = pnand %p2701_p3, %p3554_p8 }
  0x51   : > { %p2704_p11 = pneg %p2703_p10 }
  0x53   : > { %p2709_p13 = pnand %p2707_p12, %p2704_p11 }
  0x55   : > { %2712 = shalt.err (!%p2709_p13)
}
  0x56   : > { %s2713_s1 = scalar_lea.vmem %s3544_s27, 1024  ;;  %p2721_p7 = scmp.lt.s32.totalorder %s3544_s27, %s3544_s27 }
  0x57   : > { %p2714_p0 = scmp.ne.s32.totalorder %s3544_s27, %s2713_s1  ;;  %p2722_p9 = scmp.lt.s32.totalorder %s2713_s1, %s2713_s1 }
  0x59   : > { %p2716_p2 = pnand %p2714_p0, %p3554_p8  ;;  %p2723_p3 = por %p2722_p9, %p2721_p7 }
  0x5b   : > { %p2717_p5 = pneg %p2716_p2 }
  0x5d   : > { %p2724_p10 = pnand %p2723_p3, %p2717_p5 }
  0x5f   : > { %2727 = shalt.err (!%p2724_p10)
}
  0x60   : > { %2530 = dma.hbm_to_vmem [thread:$0]  (!%p3540_p6), %s4602_s21, 1024, %s3544_s27, [#allocation9], %s3352_s28, %s3352_s28, %s3353_s20  }
  0x61   : > { %s3599_s19 = sadd.s32 1, %s3348_s25   ;;  %s139_s2 = sadd.s32 1, %s3344_s24 }
  0x62   : > { %4603 = sst [smem:[#allocation53_spill]] %s3599_s19  ;;  %s136_s29 = ssub.s32 %s3348_s25, %s3599_s19 }
  0x63   : > { %p146_p11 = scmp.ne.s32.totalorder %s3344_s24, %s3340_s30  ;;  %p137_p12 = scmp.eq.s32.totalorder %s136_s29, 0 }
  0x64   : > { %p147_p13 = scmp.eq.s32.totalorder %s3348_s25, 0  ;;  %p152_p0 = scmp.ne.s32.totalorder %s3340_s30, %s3336_s4 }
  0x65   : > { %p2587_p2 = scmp.lt.s32.totalorder %s3348_s25, 2  ;;  %s3620_s27 = sand.u32 1, %s3348_s25  }
  0x66   : > { %s3611_s0 = scalar_select %p137_p12, %s3344_s24, %s139_s2  }
  0x67   : > { %p148_p5 = por %p147_p13, %p146_p11  ;;  %p3615_p7 = por %p4534_p1, %p152_p0 }
  0x68   : > { %4604 = sst [smem:[#allocation54_spill]] %s3611_s0  ;;  %s3623_s28 = sand.u32 1, %s3344_s24  }
  0x69   : > { %s4605_s5 = scalar_select %p3615_p7, 1, 0 }
  0x6a   : > { %s4532_s20 = sshll.u32 %s3623_s28, 5  ;;  %s4533_s6 = sshll.u32 %s3348_s25, 7 }
  0x6b   : > { %4606 = sst [smem:[#allocation55_spill]] %s4605_s5  ;;  %s4607_s1 = sld [smem:[#allocation60_spill]] }
  0x6c   : > { %s732_s18 = scalar_lea.vmem [#allocation13], %s4532_s20  ;;  %p3638_p9 = pnand %p2587_p2, %p148_p5 }
  0x6d   : > { %s738_s2 = sshll.u32 %s732_s18, 4  ;;  %s3643_s3 = scalar_lea.sflag [#allocation6], %s3620_s27  ;;  %s3636_s2 = int_to_ptr.vmem [resolvable:$true] %s738_s2 }
  0x6e   : > { %s4608_s29 = scalar_select %p3638_p9, 1, 0 }
  0x6f   : > { %p3649_p10 = pneg %p3638_p9 }
  0x71   : > { %s3632_s17 = scalar_lea.hbm %s4607_s1, %s4533_s6  ;;  %s2733_s20 = scalar_lea.hbm %s4607_s1, 1024 }
  0x72   : > { %s2728_s21 = scalar_lea.hbm %s3632_s17, 512  ;;  %p2734_p13 = scmp.lt.u32.totalorder %s3632_s17, %s4607_s1 }
  0x73   : > { %p2729_p3 = scmp.ne.s32.totalorder %s3632_s17, %s2728_s21  ;;  %p2735_p0 = scmp.lt.u32.totalorder %s2733_s20, %s2728_s21 }
  0x74   : > { %s4609_s4 = scalar_select %p3649_p10, 1, 0 }
  0x75   : > { %p2731_p11 = pnand %p3649_p10, %p2729_p3  ;;  %p2736_p2 = por %p2735_p0, %p2734_p13 }
  0x76   : > { %p2737_p5 = scmp.lt.u32.totalorder %s2728_s21, %s3632_s17 }
  0x77   : > { %p2732_p12 = pneg %p2731_p11 }
  0x78   : > { %p2738_p1 = por %p2737_p5, %p2736_p2 }
  0x7a   : > { %p2739_p7 = pnand %p2738_p1, %p2732_p12 }
  0x7c   : > { %2742 = shalt.err (!%p2739_p7)
}
  0x7d   : > { %s2743_s24 = scalar_lea.vmem %s3636_s2, 512  ;;  %s3354_s23 = smov [#allocation13]  }
  0x7e   : > { %p2744_p3 = scmp.ne.s32.totalorder %s3636_s2, %s2743_s24  ;;  %s2748_s18 = sshll.u32 %s3354_s23, 4  ;;  %s2749_s18 = int_to_ptr.vmem [resolvable:$false] %s2748_s18 }
  0x7f   : > { %s2750_s0 = scalar_lea.vmem %s2749_s18, 1024  ;;  %p2751_p6 = scmp.lt.s32.totalorder %s3636_s2, %s2749_s18 }
  0x80   : > { %p2746_p11 = pnand %p2744_p3, %p3649_p10  ;;  %p2752_p8 = scmp.lt.s32.totalorder %s2750_s0, %s2743_s24 }
  0x82   : > { %p2747_p4 = pneg %p2746_p11  ;;  %p2753_p13 = por %p2752_p8, %p2751_p6 }
  0x84   : > { %p2754_p0 = pnand %p2753_p13, %p2747_p4 }
  0x86   : > { %2757 = shalt.err (!%p2754_p0)
}
  0x87   : > { %s4555_s21 = smov 256   ;;  %s4558_s20 = smov 128  }
  0x88   : > { %s4562_s6 = smov 8   ;;  %s3358_s23 = smov [#allocation10]  }
  0x89   : > { %2558 = dma.hbm_to_vmem [thread:$0]  (!%p3638_p9), %s3632_s17, 512, %s3636_s2, %s3643_s3, %s4555_s21, %s4558_s20, %s4562_s6  }
  0x8a   : > { %s631_s1 = sshll.u32 %s3358_s23, 4  ;;  %s3359_s18 = smov [#allocation11]   ;;  %s632_s1 = int_to_ptr.vmem [resolvable:$true] %s631_s1 }
  0x8b   : > { %s642_s24 = sshll.u32 %s3359_s18, 4  ;;  %s4610_s5 = sld [smem:[#allocation58_spill]]  ;;  %s3676_s24 = int_to_ptr.vmem [resolvable:$true] %s642_s24 }
  0x8c   : > { %p4611_p4 = scmp.ne.s32.totalorder %s4601_s22, 0 }
  0x91   : > { %s2758_s30 = scalar_lea.hbm %s4610_s5, 16 }
  0x92   : > { %p2759_p1 = scmp.ne.s32.totalorder %s4610_s5, %s2758_s30  ;;  %p2765_p7 = scmp.lt.u32.totalorder %s2758_s30, %s4610_s5 }
  0x94   : > { %p2761_p6 = pnand %p2759_p1, %p4611_p4 }
  0x96   : > { %p2762_p8 = pneg %p2761_p6 }
  0x98   : > { %p2767_p12 = pnand %p2765_p7, %p2762_p8 }
  0x9a   : > { %2770 = shalt.err (!%p2767_p12)
}
  0x9b   : > { %s2771_s2 = scalar_lea.vmem %s632_s1, 16  ;;  %s2778_s19 = scalar_lea.vmem %s632_s1, 32 }
  0x9c   : > { %p2772_p2 = scmp.ne.s32.totalorder %s632_s1, %s2771_s2  ;;  %p2779_p11 = scmp.lt.s32.totalorder %s632_s1, %s632_s1 }
  0x9d   : > { %p2780_p13 = scmp.lt.s32.totalorder %s2778_s19, %s2771_s2 }
  0x9e   : > { %p2774_p5 = pnand %p2772_p2, %p4611_p4 }
  0x9f   : > { %p2781_p0 = por %p2780_p13, %p2779_p11 }
  0xa0   : > { %p2775_p3 = pneg %p2774_p5 }
  0xa2   : > { %p2782_p9 = pnand %p2781_p0, %p2775_p3 }
  0xa4   : > { %2785 = shalt.err (!%p2782_p9)
}
  0xa5   : > { %p4612_p1 = scmp.ne.s32.totalorder %s4599_s7, 0  ;;  %s4613_s23 = sld [smem:[#allocation59_spill]] }
  0xa7   : > { %2533 = dma.hbm_to_vmem [thread:$0]  (!%p4612_p1), %s4610_s5, 16, %s632_s1, [#allocation9]  }
  0xab   : > { %s2786_s18 = scalar_lea.hbm %s4613_s23, 16 }
  0xac   : > { %p2787_p6 = scmp.ne.s32.totalorder %s4613_s23, %s2786_s18  ;;  %p2793_p9 = scmp.lt.u32.totalorder %s2786_s18, %s4613_s23 }
  0xae   : > { %p2789_p8 = pnand %p2787_p6, %p4611_p4 }
  0xb0   : > { %p2790_p7 = pneg %p2789_p8 }
  0xb2   : > { %p2795_p12 = pnand %p2793_p9, %p2790_p7 }
  0xb4   : > { %2798 = shalt.err (!%p2795_p12)
}
  0xb5   : > { %s2799_s1 = scalar_lea.vmem %s3676_s24, 16  ;;  %s2806_s12 = scalar_lea.vmem %s3676_s24, 32 }
  0xb6   : > { %p2800_p2 = scmp.ne.s32.totalorder %s3676_s24, %s2799_s1  ;;  %p2807_p11 = scmp.lt.s32.totalorder %s3676_s24, %s3676_s24 }
  0xb7   : > { %p2808_p13 = scmp.lt.s32.totalorder %s2806_s12, %s2799_s1 }
  0xb8   : > { %p2802_p5 = pnand %p2800_p2, %p4611_p4 }
  0xb9   : > { %p2809_p0 = por %p2808_p13, %p2807_p11 }
  0xba   : > { %p2803_p3 = pneg %p2802_p5 }
  0xbc   : > { %p2810_p6 = pnand %p2809_p0, %p2803_p3 }
  0xbe   : > { %2813 = shalt.err (!%p2810_p6)
}
  0xbf   : > { %2536 = dma.hbm_to_vmem [thread:$0]  (!%p4612_p1), %s4613_s23, 16, %s3676_s24, [#allocation12]  }
  0xc0   : > { %s3360_s30 = smov [#allocation24]   ;;  %s3361_s0 = smov [#allocation27]  }
  0xc1   : > { %s675_s18 = sshll.u32 %s3360_s30, 4  ;;  %s697_s17 = sshll.u32 %s3361_s0, 4  ;;  %s676_s18 = int_to_ptr.vmem [resolvable:$true] %s675_s18  ;;  %s3720_s17 = int_to_ptr.vmem [resolvable:$true] %s697_s17 }
  0xc2   : > { %s4614_s13 = sld [smem:[#allocation67_spill]] }
  0xc8   : > { %s2814_s1 = scalar_lea.hbm %s4614_s13, 16 }
  0xc9   : > { %p2815_p8 = scmp.ne.s32.totalorder %s4614_s13, %s2814_s1  ;;  %p2821_p12 = scmp.lt.u32.totalorder %s2814_s1, %s4614_s13 }
  0xcb   : > { %p2817_p7 = pnand %p2815_p8, %p4611_p4 }
  0xcd   : > { %p2818_p9 = pneg %p2817_p7 }
  0xcf   : > { %p2823_p2 = pnand %p2821_p12, %p2818_p9 }
  0xd1   : > { %2826 = shalt.err (!%p2823_p2)
}
  0xd2   : > { %s2827_s10 = scalar_lea.vmem %s676_s18, 16  ;;  %s2834_s30 = scalar_lea.vmem %s676_s18, 32 }
  0xd3   : > { %p2828_p5 = scmp.ne.s32.totalorder %s676_s18, %s2827_s10  ;;  %p2835_p13 = scmp.lt.s32.totalorder %s676_s18, %s676_s18 }
  0xd4   : > { %p2836_p0 = scmp.lt.s32.totalorder %s2834_s30, %s2827_s10 }
  0xd5   : > { %p2830_p3 = pnand %p2828_p5, %p4611_p4 }
  0xd6   : > { %p2837_p6 = por %p2836_p0, %p2835_p13 }
  0xd7   : > { %p2831_p11 = pneg %p2830_p3 }
  0xd9   : > { %p2838_p10 = pnand %p2837_p6, %p2831_p11 }
  0xdb   : > { %2841 = shalt.err (!%p2838_p10)
}
  0xdc   : > { %2545 = dma.hbm_to_vmem [thread:$0]  (!%p4612_p1), %s4614_s13, 16, %s676_s18, [#allocation25]  }
  0xdd   : > { %s4615_s15 = sld [smem:[#allocation68_spill]] }
  0xe3   : > { %s2842_s1 = scalar_lea.hbm %s4615_s15, 16 }
  0xe4   : > { %p2843_p8 = scmp.ne.s32.totalorder %s4615_s15, %s2842_s1  ;;  %p2849_p10 = scmp.lt.u32.totalorder %s2842_s1, %s4615_s15 }
  0xe6   : > { %p2845_p7 = pnand %p2843_p8, %p4611_p4 }
  0xe8   : > { %p2846_p9 = pneg %p2845_p7 }
  0xea   : > { %p2851_p12 = pnand %p2849_p10, %p2846_p9 }
  0xec   : > { %2854 = shalt.err (!%p2851_p12)
}
  0xed   : > { %s2855_s18 = scalar_lea.vmem %s3720_s17, 16  ;;  %s2862_s30 = scalar_lea.vmem %s3720_s17, 32 }
  0xee   : > { %p2856_p2 = scmp.ne.s32.totalorder %s3720_s17, %s2855_s18  ;;  %p2863_p11 = scmp.lt.s32.totalorder %s3720_s17, %s3720_s17 }
  0xef   : > { %p2864_p13 = scmp.lt.s32.totalorder %s2862_s30, %s2855_s18 }
  0xf0   : > { %p2858_p5 = pnand %p2856_p2, %p4611_p4 }
  0xf1   : > { %p2865_p0 = por %p2864_p13, %p2863_p11 }
  0xf2   : > { %p2859_p3 = pneg %p2858_p5 }
  0xf4   : > { %p2866_p6 = pnand %p2865_p0, %p2859_p3 }
  0xf6   : > { %2869 = shalt.err (!%p2866_p6)
}
  0xf7   : > { %2551 = dma.hbm_to_vmem [thread:$0]  (!%p4612_p1), %s4615_s15, 16, %s3720_s17, [#allocation28]  }
  0xf8   : > { %s3765_s2 = sshll.u32 %s3348_s25, 4  ;;  %s4616_s12 = sld [smem:[#allocation61_spill]] }
  0xf9   : > { %s751_s24 = scalar_lea.vmem [#allocation14], %s3623_s28  ;;  %p4617_p7 = scmp.ne.s32.totalorder %s4609_s4, 0 }
  0xfa   : > { %s758_s10 = sshll.u32 %s751_s24, 4  ;;  %s759_s10 = int_to_ptr.vmem [resolvable:$true] %s758_s10 }
  0xfe   : > { %s3771_s26 = scalar_lea.hbm %s4616_s12, %s3765_s2  ;;  %s2875_s21 = scalar_lea.hbm %s4616_s12, 32 }
  0xff   : > { %s2870_s18 = scalar_lea.hbm %s3771_s26, 16  ;;  %p2876_p12 = scmp.lt.u32.totalorder %s3771_s26, %s4616_s12 }
 0x100   : > { %p2871_p8 = scmp.ne.s32.totalorder %s3771_s26, %s2870_s18  ;;  %p2877_p2 = scmp.lt.u32.totalorder %s2875_s21, %s2870_s18 }
 0x101   : > { %p2879_p3 = scmp.lt.u32.totalorder %s2870_s18, %s3771_s26 }
 0x102   : > { %p2873_p9 = pnand %p2871_p8, %p4617_p7  ;;  %p2878_p5 = por %p2877_p2, %p2876_p12 }
 0x104   : > { %p2874_p10 = pneg %p2873_p9  ;;  %p2880_p11 = por %p2879_p3, %p2878_p5 }
 0x106   : > { %p2881_p13 = pnand %p2880_p11, %p2874_p10 }
 0x108   : > { %2884 = shalt.err (!%p2881_p13)
}
 0x109   : > { %s2885_s1 = scalar_lea.vmem %s759_s10, 16  ;;  %s3362_s24 = smov [#allocation14]  }
 0x10a   : > { %p2886_p0 = scmp.ne.s32.totalorder %s759_s10, %s2885_s1  ;;  %s2890_s20 = sshll.u32 %s3362_s24, 4  ;;  %s2891_s20 = int_to_ptr.vmem [resolvable:$false] %s2890_s20 }
 0x10b   : > { %s2892_s17 = scalar_lea.vmem %s2891_s20, 32  ;;  %p2893_p9 = scmp.lt.s32.totalorder %s759_s10, %s2891_s20 }
 0x10c   : > { %p2888_p6 = pnand %p2886_p0, %p4617_p7  ;;  %p2894_p1 = scmp.lt.s32.totalorder %s2892_s17, %s2885_s1 }
 0x10e   : > { %p2889_p8 = pneg %p2888_p6  ;;  %p2895_p4 = por %p2894_p1, %p2893_p9 }
 0x110   : > { %p2896_p2 = pnand %p2895_p4, %p2889_p8 }
 0x112   : > { %2899 = shalt.err (!%p2896_p2)
}
 0x113   : > { %p4618_p12 = scmp.ne.s32.totalorder %s4608_s29, 0  ;;  %s2272_s18 = sshll.u32 %s3623_s28, 4 }
 0x114   : > { %s4619_s30 = sshll.u32 %s3348_s25, 7  ;;  %s4620_s9 = sld [smem:[#allocation64_spill]] }
 0x115   : > { %2561 = dma.hbm_to_vmem [thread:$0]  (!%p4618_p12), %s3771_s26, 16, %s759_s10, %s3643_s3  }
 0x116   : > { %s786_s19 = scalar_lea.vmem [#allocation18], %s2272_s18  ;;  %s3806_s6 = scalar_lea.hbm %s4503_s11, %s3765_s2 }
 0x117   : > { %s792_s1 = sshll.u32 %s786_s19, 4  ;;  %s783_s26 = scalar_lea.sflag [#allocation19], %s3620_s27  ;;  %s3800_s1 = int_to_ptr.vmem [resolvable:$true] %s792_s1 }
 0x11a   : > { %s3798_s20 = scalar_lea.hbm %s4620_s9, %s4619_s30  ;;  %s2905_s0 = scalar_lea.hbm %s4620_s9, 512 }
 0x11b   : > { %s2900_s10 = scalar_lea.hbm %s3798_s20, 256  ;;  %p2906_p5 = scmp.lt.u32.totalorder %s3798_s20, %s4620_s9 }
 0x11c   : > { %p2901_p4 = scmp.ne.s32.totalorder %s3798_s20, %s2900_s10  ;;  %p2907_p3 = scmp.lt.u32.totalorder %s2905_s0, %s2900_s10 }
 0x11d   : > { %p2909_p13 = scmp.lt.u32.totalorder %s2900_s10, %s3798_s20 }
 0x11e   : > { %p2903_p1 = pnand %p2901_p4, %p4617_p7  ;;  %p2908_p11 = por %p2907_p3, %p2906_p5 }
 0x120   : > { %p2904_p10 = pneg %p2903_p1  ;;  %p2910_p0 = por %p2909_p13, %p2908_p11 }
 0x122   : > { %p2911_p6 = pnand %p2910_p0, %p2904_p10 }
 0x124   : > { %2914 = shalt.err (!%p2911_p6)
}
 0x125   : > { %s2915_s19 = scalar_lea.vmem %s3800_s1, 256  ;;  %s3363_s24 = smov [#allocation18]  }
 0x126   : > { %p2916_p8 = scmp.ne.s32.totalorder %s3800_s1, %s2915_s19  ;;  %s2920_s17 = sshll.u32 %s3363_s24, 4  ;;  %s2921_s17 = int_to_ptr.vmem [resolvable:$false] %s2920_s17 }
 0x127   : > { %s2922_s5 = scalar_lea.vmem %s2921_s17, 512  ;;  %p2923_p4 = scmp.lt.s32.totalorder %s3800_s1, %s2921_s17 }
 0x128   : > { %p2918_p9 = pnand %p2916_p8, %p4617_p7  ;;  %p2924_p1 = scmp.lt.s32.totalorder %s2922_s5, %s2915_s19 }
 0x12a   : > { %p2919_p2 = pneg %p2918_p9  ;;  %p2925_p5 = por %p2924_p1, %p2923_p4 }
 0x12c   : > { %p2926_p3 = pnand %p2925_p5, %p2919_p2 }
 0x12e   : > { %2929 = shalt.err (!%p2926_p3)
}
 0x12f   : > { %s4621_s10 = smov 8   ;;  %s4622_s30 = smov 128  }
 0x130   : > { %s4623_s21 = smov 256   ;;  %s822_s0 = scalar_lea.vmem [#allocation21], %s3623_s28 }
 0x131   : > { %2567 = dma.hbm_to_vmem [thread:$0]  (!%p4618_p12), %s3798_s20, 256, %s3800_s1, %s783_s26, %s4623_s21, %s4622_s30, %s4621_s10  }
 0x132   : > { %s829_s18 = sshll.u32 %s822_s0, 4  ;;  %s3364_s19 = smov [#allocation16]   ;;  %s3836_s18 = int_to_ptr.vmem [resolvable:$true] %s829_s18 }
 0x133   : > { %s3838_s24 = sshll.u32 %s3364_s19, 4  ;;  %s4569_s17 = scalar_lea.sflag [#allocation22], %s3620_s27  ;;  %s654_s24 = int_to_ptr.vmem [resolvable:$true] %s3838_s24 }
 0x134   : > { %s2930_s5 = scalar_lea.hbm %s3806_s6, 16  ;;  %s2935_s13 = scalar_lea.hbm %s4503_s11, 32 }
 0x135   : > { %p2931_p10 = scmp.ne.s32.totalorder %s3806_s6, %s2930_s5  ;;  %p2936_p0 = scmp.lt.u32.totalorder %s3806_s6, %s4503_s11 }
 0x136   : > { %p2937_p6 = scmp.lt.u32.totalorder %s2935_s13, %s2930_s5  ;;  %p2939_p9 = scmp.lt.u32.totalorder %s2930_s5, %s3806_s6 }
 0x137   : > { %p2933_p11 = pnand %p2931_p10, %p4617_p7 }
 0x138   : > { %p2938_p8 = por %p2937_p6, %p2936_p0 }
 0x139   : > { %p2934_p13 = pneg %p2933_p11 }
 0x13a   : > { %p2940_p2 = por %p2939_p9, %p2938_p8 }
 0x13c   : > { %p2941_p4 = pnand %p2940_p2, %p2934_p13 }
 0x13e   : > { %2944 = shalt.err (!%p2941_p4)
}
 0x13f   : > { %s2945_s20 = scalar_lea.vmem %s3836_s18, 16  ;;  %s3365_s9 = smov [#allocation21]  }
 0x140   : > { %p2946_p1 = scmp.ne.s32.totalorder %s3836_s18, %s2945_s20  ;;  %s2950_s12 = sshll.u32 %s3365_s9, 4  ;;  %s2951_s12 = int_to_ptr.vmem [resolvable:$false] %s2950_s12 }
 0x141   : > { %s2952_s15 = scalar_lea.vmem %s2951_s12, 32  ;;  %p2953_p10 = scmp.lt.s32.totalorder %s3836_s18, %s2951_s12 }
 0x142   : > { %p2948_p5 = pnand %p2946_p1, %p4617_p7  ;;  %p2954_p11 = scmp.lt.s32.totalorder %s2952_s15, %s2945_s20 }
 0x144   : > { %p2949_p3 = pneg %p2948_p5  ;;  %p2955_p0 = por %p2954_p11, %p2953_p10 }
 0x146   : > { %p2956_p6 = pnand %p2955_p0, %p2949_p3 }
 0x148   : > { %2959 = shalt.err (!%p2956_p6)
}
 0x149   : > { %2573 = dma.hbm_to_vmem [thread:$0]  (!%p4618_p12), %s3806_s6, 16, %s3836_s18, %s4569_s17  }
 0x14a   : > { %s4624_s1 = sld [smem:[#allocation63_spill]]  ;;  %p4625_p8 = scmp.ne.s32.totalorder %s4601_s22, 0 }
 0x150   : > { %s2960_s21 = scalar_lea.hbm %s4624_s1, 16 }
 0x151   : > { %p2961_p13 = scmp.ne.s32.totalorder %s4624_s1, %s2960_s21  ;;  %p2967_p4 = scmp.lt.u32.totalorder %s2960_s21, %s4624_s1 }
 0x153   : > { %p2963_p9 = pnand %p2961_p13, %p4625_p8 }
 0x155   : > { %p2964_p2 = pneg %p2963_p9 }
 0x157   : > { %p2969_p1 = pnand %p2967_p4, %p2964_p2 }
 0x159   : > { %2972 = shalt.err (!%p2969_p1)
}
 0x15a   : > { %s2973_s9 = scalar_lea.vmem %s654_s24, 16  ;;  %s2980_s6 = scalar_lea.vmem %s654_s24, 32 }
 0x15b   : > { %p2974_p5 = scmp.ne.s32.totalorder %s654_s24, %s2973_s9  ;;  %p2981_p11 = scmp.lt.s32.totalorder %s654_s24, %s654_s24 }
 0x15c   : > { %p2982_p0 = scmp.lt.s32.totalorder %s2980_s6, %s2973_s9 }
 0x15d   : > { %p2976_p3 = pnand %p2974_p5, %p4625_p8 }
 0x15e   : > { %p2983_p6 = por %p2982_p0, %p2981_p11 }
 0x15f   : > { %p2977_p10 = pneg %p2976_p3 }
 0x161   : > { %p2984_p12 = pnand %p2983_p6, %p2977_p10 }
 0x163   : > { %2987 = shalt.err (!%p2984_p12)
}
 0x164   : > { %p4626_p13 = scmp.ne.s32.totalorder %s4599_s7, 0  ;;  %s3366_s15 = smov [#allocation17]  }
 0x165   : > { %s664_s13 = sshll.u32 %s3366_s15, 4  ;;  %s3367_s23 = smov [#allocation26]   ;;  %s665_s13 = int_to_ptr.vmem [resolvable:$true] %s664_s13 }
 0x166   : > { %2539 = dma.hbm_to_vmem [thread:$0]  (!%p4626_p13), %s4624_s1, 16, %s654_s24, [#allocation9]  }
 0x167   : > { %s686_s21 = sshll.u32 %s3367_s23, 4  ;;  %s2988_s5 = scalar_lea.hbm %s4500_s8, 16  ;;  %s687_s21 = int_to_ptr.vmem [resolvable:$true] %s686_s21 }
 0x168   : > { %p2989_p12 = scmp.ne.s32.totalorder %s4500_s8, %s2988_s5  ;;  %p2995_p4 = scmp.lt.u32.totalorder %s2988_s5, %s4500_s8 }
 0x16a   : > { %p2991_p9 = pnand %p2989_p12, %p4625_p8 }
 0x16c   : > { %p2992_p2 = pneg %p2991_p9 }
 0x16e   : > { %p2997_p1 = pnand %p2995_p4, %p2992_p2 }
 0x170   : > { %3000 = shalt.err (!%p2997_p1)
}
 0x171   : > { %s3001_s24 = scalar_lea.vmem %s665_s13, 16  ;;  %s3008_s12 = scalar_lea.vmem %s665_s13, 32 }
 0x172   : > { %p3002_p5 = scmp.ne.s32.totalorder %s665_s13, %s3001_s24  ;;  %p3009_p11 = scmp.lt.s32.totalorder %s665_s13, %s665_s13 }
 0x173   : > { %p3010_p0 = scmp.lt.s32.totalorder %s3008_s12, %s3001_s24 }
 0x174   : > { %p3004_p3 = pnand %p3002_p5, %p4625_p8 }
 0x175   : > { %p3011_p6 = por %p3010_p0, %p3009_p11 }
 0x176   : > { %p3005_p10 = pneg %p3004_p3 }
 0x178   : > { %p3012_p7 = pnand %p3011_p6, %p3005_p10 }
 0x17a   : > { %3015 = shalt.err (!%p3012_p7)
}
 0x17b   : > { %2542 = dma.hbm_to_vmem [thread:$0]  (!%p4626_p13), %s4500_s8, 16, %s665_s13, [#allocation12]  }
 0x17c   : > { %s3016_s5 = scalar_lea.hbm %s4506_s14, 16 }
 0x17d   : > { %p3017_p12 = scmp.ne.s32.totalorder %s4506_s14, %s3016_s5  ;;  %p3023_p7 = scmp.lt.u32.totalorder %s3016_s5, %s4506_s14 }
 0x17f   : > { %p3019_p9 = pnand %p3017_p12, %p4625_p8 }
 0x181   : > { %p3020_p2 = pneg %p3019_p9 }
 0x183   : > { %p3025_p4 = pnand %p3023_p7, %p3020_p2 }
 0x185   : > { %3028 = shalt.err (!%p3025_p4)
}
 0x186   : > { %s3029_s24 = scalar_lea.vmem %s687_s21, 16  ;;  %s3036_s13 = scalar_lea.vmem %s687_s21, 32 }
 0x187   : > { %p3030_p1 = scmp.ne.s32.totalorder %s687_s21, %s3029_s24  ;;  %p3037_p10 = scmp.lt.s32.totalorder %s687_s21, %s687_s21 }
 0x188   : > { %p3038_p11 = scmp.lt.s32.totalorder %s3036_s13, %s3029_s24 }
 0x189   : > { %p3032_p5 = pnand %p3030_p1, %p4625_p8 }
 0x18a   : > { %p3039_p0 = por %p3038_p11, %p3037_p10 }
 0x18b   : > { %p3033_p3 = pneg %p3032_p5 }
 0x18d   : > { %p3040_p6 = pnand %p3039_p0, %p3033_p3 }
 0x18f   : > { %3043 = shalt.err (!%p3040_p6)
}
 0x190   : > { %2548 = dma.hbm_to_vmem [thread:$0]  (!%p4626_p13), %s4506_s14, 16, %s687_s21, [#allocation25]  }
 0x191   : > { %s3368_s23 = smov [#allocation29]   ;;  %s4627_s20 = sld [smem:[#allocation62_spill]] }
 0x192   : > { %s708_s0 = sshll.u32 %s3368_s23, 4  ;;  %s3044_s24 = scalar_lea.hbm %s4508_s16, 16  ;;  %s709_s0 = int_to_ptr.vmem [resolvable:$true] %s708_s0 }
 0x193   : > { %p3045_p12 = scmp.ne.s32.totalorder %s4508_s16, %s3044_s24  ;;  %p3051_p7 = scmp.lt.u32.totalorder %s3044_s24, %s4508_s16 }
 0x195   : > { %p3047_p9 = pnand %p3045_p12, %p4625_p8 }
 0x197   : > { %s3923_s9 = scalar_lea.hbm %s4627_s20, %s3765_s2  ;;  %p3048_p2 = pneg %p3047_p9 }
 0x199   : > { %p3053_p4 = pnand %p3051_p7, %p3048_p2 }
 0x19b   : > { %3056 = shalt.err (!%p3053_p4)
}
 0x19c   : > { %s3057_s15 = scalar_lea.vmem %s709_s0, 16  ;;  %s3064_s23 = scalar_lea.vmem %s709_s0, 32 }
 0x19d   : > { %p3058_p1 = scmp.ne.s32.totalorder %s709_s0, %s3057_s15  ;;  %p3065_p10 = scmp.lt.s32.totalorder %s709_s0, %s709_s0 }
 0x19e   : > { %p3066_p11 = scmp.lt.s32.totalorder %s3064_s23, %s3057_s15 }
 0x19f   : > { %p3060_p5 = pnand %p3058_p1, %p4625_p8 }
 0x1a0   : > { %p3067_p0 = por %p3066_p11, %p3065_p10 }
 0x1a1   : > { %p3061_p3 = pneg %p3060_p5 }
 0x1a3   : > { %p3068_p6 = pnand %p3067_p0, %p3061_p3 }
 0x1a5   : > { %3071 = shalt.err (!%p3068_p6)
}
 0x1a6   : > { %2554 = dma.hbm_to_vmem [thread:$0]  (!%p4626_p13), %s4508_s16, 16, %s709_s0, [#allocation28]  }
 0x1a7   : > { %s768_s22 = scalar_lea.vmem [#allocation15], %s3623_s28  ;;  %s4628_s24 = sld [smem:[#allocation65_spill]] }
 0x1a8   : > { %s775_s5 = sshll.u32 %s768_s22, 4  ;;  %s3072_s7 = scalar_lea.hbm %s3923_s9, 16  ;;  %s776_s5 = int_to_ptr.vmem [resolvable:$true] %s775_s5 }
 0x1a9   : > { %p3073_p8 = scmp.ne.s32.totalorder %s3923_s9, %s3072_s7  ;;  %p4630_p12 = scmp.ne.s32.totalorder %s4609_s4, 0 }
 0x1aa   : > { %s3077_s23 = scalar_lea.hbm %s4627_s20, 32  ;;  %p3078_p13 = scmp.lt.u32.totalorder %s3923_s9, %s4627_s20 }
 0x1ab   : > { %p3075_p9 = pnand %p3073_p8, %p4630_p12  ;;  %p3079_p7 = scmp.lt.u32.totalorder %s3077_s23, %s3072_s7 }
 0x1ac   : > { %p3081_p1 = scmp.lt.u32.totalorder %s3072_s7, %s3923_s9 }
 0x1ad   : > { %s4629_s13 = smov %s4628_s24  ;;  %s3948_s21 = scalar_lea.hbm %s4628_s24, %s3765_s2 }
 0x1ae   : > { %p3076_p2 = pneg %p3075_p9  ;;  %p3080_p4 = por %p3079_p7, %p3078_p13 }
 0x1b0   : > { %p3082_p5 = por %p3081_p1, %p3080_p4 }
 0x1b2   : > { %p3083_p3 = pnand %p3082_p5, %p3076_p2 }
 0x1b4   : > { %3086 = shalt.err (!%p3083_p3)
}
 0x1b5   : > { %s3087_s2 = scalar_lea.vmem %s776_s5, 16  ;;  %s3369_s0 = smov [#allocation15]  }
 0x1b6   : > { %p3088_p10 = scmp.ne.s32.totalorder %s776_s5, %s3087_s2  ;;  %s3092_s22 = sshll.u32 %s3369_s0, 4  ;;  %s3093_s22 = int_to_ptr.vmem [resolvable:$false] %s3092_s22 }
 0x1b7   : > { %s3094_s6 = scalar_lea.vmem %s3093_s22, 32  ;;  %p3095_p6 = scmp.lt.s32.totalorder %s776_s5, %s3093_s22 }
 0x1b8   : > { %p3090_p11 = pnand %p3088_p10, %p4630_p12  ;;  %p3096_p8 = scmp.lt.s32.totalorder %s3094_s6, %s3087_s2 }
 0x1ba   : > { %p3091_p0 = pneg %p3090_p11  ;;  %p3097_p9 = por %p3096_p8, %p3095_p6 }
 0x1bc   : > { %p3098_p7 = pnand %p3097_p9, %p3091_p0 }
 0x1be   : > { %3101 = shalt.err (!%p3098_p7)
}
 0x1bf   : > { %p4631_p13 = scmp.ne.s32.totalorder %s4608_s29, 0  ;;  %s805_s18 = scalar_lea.vmem [#allocation20], %s3623_s28 }
 0x1c0   : > { %s812_s24 = sshll.u32 %s805_s18, 4  ;;  %s2320_s7 = sshll.u32 %s3348_s25, 9  ;;  %s813_s24 = int_to_ptr.vmem [resolvable:$true] %s812_s24 }
 0x1c1   : > { %2564 = dma.hbm_to_vmem [thread:$0]  (!%p4631_p13), %s3923_s9, 16, %s776_s5, %s3643_s3  }
 0x1c2   : > { %s3102_s12 = scalar_lea.hbm %s3948_s21, 16  ;;  %s3107_s17 = scalar_lea.hbm %s4629_s13, 32 }
 0x1c3   : > { %p3103_p2 = scmp.ne.s32.totalorder %s3948_s21, %s3102_s12  ;;  %p3108_p5 = scmp.lt.u32.totalorder %s3948_s21, %s4629_s13 }
 0x1c4   : > { %p3109_p3 = scmp.lt.u32.totalorder %s3107_s17, %s3102_s12  ;;  %p3111_p11 = scmp.lt.u32.totalorder %s3102_s12, %s3948_s21 }
 0x1c5   : > { %p3105_p4 = pnand %p3103_p2, %p4630_p12 }
 0x1c6   : > { %p3110_p10 = por %p3109_p3, %p3108_p5 }
 0x1c7   : > { %p3106_p1 = pneg %p3105_p4 }
 0x1c8   : > { %p3112_p0 = por %p3111_p11, %p3110_p10 }
 0x1ca   : > { %p3113_p6 = pnand %p3112_p0, %p3106_p1 }
 0x1cc   : > { %3116 = shalt.err (!%p3113_p6)
}
 0x1cd   : > { %s3117_s25 = scalar_lea.vmem %s813_s24, 16  ;;  %s3370_s3 = smov [#allocation20]  }
 0x1ce   : > { %p3118_p8 = scmp.ne.s32.totalorder %s813_s24, %s3117_s25  ;;  %s3122_s9 = sshll.u32 %s3370_s3, 4  ;;  %s3123_s9 = int_to_ptr.vmem [resolvable:$false] %s3122_s9 }
 0x1cf   : > { %s3124_s5 = scalar_lea.vmem %s3123_s9, 32  ;;  %p3125_p2 = scmp.lt.s32.totalorder %s813_s24, %s3123_s9 }
 0x1d0   : > { %p3120_p9 = pnand %p3118_p8, %p4630_p12  ;;  %p3126_p4 = scmp.lt.s32.totalorder %s3124_s5, %s3117_s25 }
 0x1d2   : > { %p3121_p7 = pneg %p3120_p9  ;;  %p3127_p13 = por %p3126_p4, %p3125_p2 }
 0x1d4   : > { %p3128_p3 = pnand %p3127_p13, %p3121_p7 }
 0x1d6   : > { %3131 = shalt.err (!%p3128_p3)
}
 0x1d7   : > { %p4632_p5 = scmp.ne.s32.totalorder %s4608_s29, 0  ;;  %s4633_s6 = sld [smem:[#allocation66_spill]] }
 0x1d8   : > { %s4634_s12 = sshll.u32 %s3623_s28, 5 }
 0x1d9   : > { %2570 = dma.hbm_to_vmem [thread:$0]  (!%p4632_p5), %s3948_s21, 16, %s813_s24, %s783_s26  }
 0x1da   : > { %s840_s15 = scalar_lea.vmem [#allocation23], %s4634_s12 }
 0x1db   : > { %s847_s23 = sshll.u32 %s840_s15, 4  ;;  %s3996_s23 = int_to_ptr.vmem [resolvable:$true] %s847_s23 }
 0x1dd   : > { %s3992_s18 = scalar_lea.hbm %s4633_s6, %s2320_s7  ;;  %s3137_s24 = scalar_lea.hbm %s4633_s6, 1024 }
 0x1de   : > { %s3132_s17 = scalar_lea.hbm %s3992_s18, 512  ;;  %p3138_p11 = scmp.lt.u32.totalorder %s3992_s18, %s4633_s6 }
 0x1df   : > { %p3133_p13 = scmp.ne.s32.totalorder %s3992_s18, %s3132_s17  ;;  %p3139_p0 = scmp.lt.u32.totalorder %s3137_s24, %s3132_s17 }
 0x1e0   : > { %p3141_p8 = scmp.lt.u32.totalorder %s3132_s17, %s3992_s18 }
 0x1e1   : > { %p3135_p1 = pnand %p3133_p13, %p4630_p12  ;;  %p3140_p6 = por %p3139_p0, %p3138_p11 }
 0x1e3   : > { %p3136_p10 = pneg %p3135_p1  ;;  %p3142_p9 = por %p3141_p8, %p3140_p6 }
 0x1e5   : > { %p3143_p7 = pnand %p3142_p9, %p3136_p10 }
 0x1e7   : > { %3146 = shalt.err (!%p3143_p7)
}
 0x1e8   : > { %s3147_s28 = scalar_lea.vmem %s3996_s23, 512  ;;  %s3371_s2 = smov [#allocation23]  }
 0x1e9   : > { %p3148_p2 = scmp.ne.s32.totalorder %s3996_s23, %s3147_s28  ;;  %s3152_s25 = sshll.u32 %s3371_s2, 4  ;;  %s3153_s25 = int_to_ptr.vmem [resolvable:$false] %s3152_s25 }
 0x1ea   : > { %s3154_s3 = scalar_lea.vmem %s3153_s25, 1024  ;;  %p3155_p13 = scmp.lt.s32.totalorder %s3996_s23, %s3153_s25 }
 0x1eb   : > { %p3150_p4 = pnand %p3148_p2, %p4630_p12  ;;  %p3156_p1 = scmp.lt.s32.totalorder %s3154_s3, %s3147_s28 }
 0x1ed   : > { %p3151_p3 = pneg %p3150_p4  ;;  %p3157_p11 = por %p3156_p1, %p3155_p13 }
 0x1ef   : > { %p3158_p0 = pnand %p3157_p11, %p3151_p3 }
 0x1f1   : > { %3161 = shalt.err (!%p3158_p0)
}
 0x1f2   : > { %s4635_s9 = scalar_lea.sflag [#allocation22], %s3620_s27  ;;  %s4636_s4 = sld [smem:[#allocation52_spill]] }
 0x1f3   : > { %2576 = dma.hbm_to_vmem [thread:$0]  (!%p4632_p5), %s3992_s18, 512, %s3996_s23, %s4635_s9, %s4622_s30, %s4622_s30, %s4621_s10  }
 0x1f8   : > { %p4637_p12 = scmp.ne.s32.totalorder %s4636_s4, 0 }
 0x1f9   : > { %s4638_s5 = sld [smem:[#allocation51_spill]] (!%p4637_p12) }
 0x1fa   : > { %859 = sbr.rel (%p4637_p12) target bundleno = 1654 (0x676), region = 100 }
 0x1ff   : > { %p4639_p10 = scmp.eq.s32.totalorder (!%p4637_p12), %s4638_s5, 0 }
 0x201   : > { %3283 = dma.done.wait (%p4639_p10), [#allocation6], 512   ;;  %p4640_p6 = pmov %p4639_p10 }
 0x203   : > { %3285 = vsyncadd (%p4640_p6), [#allocation6], 4294966784  ;;  %p4641_p8 = pmov %p4640_p6 }
 0x204   : > { %p4642_p9 = pmov %p4640_p6 }
 0x205   : > { %3287 = dma.done.wait (%p4641_p8), [#allocation9], 1040  }
 0x206   : > { %3289 = vsyncadd (%p4642_p9), [#allocation9], 4294966256  ;;  %p4643_p7 = pmov %p4640_p6 }
 0x207   : > { %p4644_p5 = pmov %p4640_p6 }
 0x208   : > { %3291 = dma.done.wait (%p4643_p7), [#allocation12], 16  }
 0x209   : > { %3293 = vsyncadd (%p4644_p5), [#allocation12], 4294967280  ;;  %s4645_s27 = sld [smem:[#allocation49_spill]]  ;;  %s4646_s29 = sld [smem:[#allocation55_spill]] }
 0x20a   : > { %s877_s10 = sand.u32 1, %s4638_s5  }
 0x20b   : > { %s878_s22 = scalar_lea.sflag [#allocation6], %s877_s10 }
 0x20f   : > { %s4040_s30 = sand.u32 1, %s4645_s27   ;;  %p4647_p2 = scmp.ne.s32.totalorder %s4646_s29, 0 }
 0x210   : > { %s2284_s0 = sshll.u32 %s4040_s30, 5 }
 0x211   : > { %s4043_s18 = scalar_lea.vmem [#allocation13], %s2284_s0 }
 0x212   : > { %3295 = dma.done.wait (%p4647_p2), %s878_s22, 544  }
 0x213   : > { %3297 = vsyncadd (%p4647_p2), %s878_s22, 4294966752  ;;  %s889_s12 = scalar_lea.vmem [#allocation14], %s4040_s30  ;;  %s897_s15 = scalar_lea.vmem [#allocation15], %s4040_s30 }
 0x214   : > { %p4648_p4 = pmov %p4644_p5 }
 0x216   : > { %3299 = dma.done.wait (%p4648_p4), [#allocation9], 16   ;;  %p4649_p3 = pmov %p4648_p4 }
 0x218   : > { %3301 = vsyncadd (%p4649_p3), [#allocation9], 4294967280  ;;  %p4650_p13 = pmov %p4649_p3 }
 0x219   : > { %p4651_p1 = pmov %p4649_p3 }
 0x21a   : > { %3303 = dma.done.wait (%p4650_p13), [#allocation12], 16  }
 0x21b   : > { %3305 = vsyncadd (%p4651_p1), [#allocation12], 4294967280  ;;  %s2287_s23 = sshll.u32 %s4040_s30, 4  ;;  %s911_s17 = scalar_lea.sflag [#allocation19], %s877_s10 }
 0x21c   : > { %s4060_s26 = scalar_lea.vmem [#allocation18], %s2287_s23 }
 0x21d   : > { %3307 = dma.done.wait (%p4647_p2), %s911_s17, 272  }
 0x21e   : > { %3309 = vsyncadd (%p4647_p2), %s911_s17, 4294967024  ;;  %s922_s21 = scalar_lea.vmem [#allocation20], %s4040_s30  ;;  %s928_s24 = scalar_lea.sflag [#allocation22], %s877_s10 }
 0x21f   : > { %s930_s7 = scalar_lea.vmem [#allocation21], %s4040_s30 }
 0x220   : > { %3311 = dma.done.wait (%p4647_p2), %s928_s24, 528  }
 0x221   : > { %3313 = vsyncadd (%p4647_p2), %s928_s24, 4294966768  ;;  %s4072_s19 = scalar_lea.vmem [#allocation23], %s2284_s0  ;;  %p4652_p11 = pmov %p4651_p1 }
 0x222   : > { %p4653_p0 = pmov %p4651_p1 }
 0x223   : > { %3315 = dma.done.wait (%p4652_p11), [#allocation25], 32  }
 0x224   : > { %3317 = vsyncadd (%p4653_p0), [#allocation25], 4294967264  ;;  %p4654_p12 = pmov %p4653_p0 }
 0x225   : > { %p4655_p10 = pmov %p4653_p0 }
 0x226   : > { %3319 = dma.done.wait (%p4654_p12), [#allocation28], 32  }
 0x227   : > { %3321 = vsyncadd (%p4655_p10), [#allocation28], 4294967264  ;;  %p4656_p6 = scmp.ne.s32.totalorder %s4638_s5, 0 }
 0x228   : > { %v4084_v0 = vld [vmem:[#allocation8] sm:$0xff] (!%p4656_p6)   ;;  %v4086_v1 = vld [vmem:[#allocation8 + $0x8] sm:$0xff] (!%p4656_p6)   ;;  %v4089_v3 = vld [vmem:[#allocation8 + $0x10] sm:$0xff] (!%p4656_p6)   ;;  %vm1301_vm0 = vcmask (!%p4656_p6), 261120   ;;  %vm1191_vm1 = vcmask (!%p4656_p6), 1041409   ;;  %vm1193_vm2 = vcmask (!%p4656_p6), 1042434  }
 0x229   : > { %1044 = sbr.rel (%p4656_p6) target bundleno = 776 (0x308), region = 172  ;;  %v2339_v2 = vunpack.c.l.bf16 (!%p4656_p6), %v4084_v0  ;;  %v4091_v4 = vld [vmem:[#allocation8 + $0x18] sm:$0xff] (!%p4656_p6)   ;;  %v4093_v5 = vld [vmem:[#allocation8 + $0x20] sm:$0xff] (!%p4656_p6)   ;;  %v2340_v6 = vunpack.c.h.bf16 (!%p4656_p6), %v4084_v0  ;;  %v2343_v7 = vunpack.c.l.bf16 (!%p4656_p6), %v4086_v1  ;;  %v2344_v8 = vunpack.c.h.bf16 (!%p4656_p6), %v4086_v1  ;;  %v4099_v10 = vld [vmem:[#allocation8 + $0x28] sm:$0xff] (!%p4656_p6)   ;;  %s3372_s28 = smov (!%p4656_p6), 32  }
 0x22a   : > { %v2347_v9 = vunpack.c.l.bf16 (!%p4656_p6), %v4089_v3  ;;  %v4101_v11 = vld [vmem:[#allocation8 + $0x30] sm:$0xff] (!%p4656_p6)   ;;  %v4103_v12 = vld [vmem:[#allocation8 + $0x38] sm:$0xff] (!%p4656_p6)   ;;  %v2348_v13 = vunpack.c.h.bf16 (!%p4656_p6), %v4089_v3  ;;  %v2351_v14 = vunpack.c.l.bf16 (!%p4656_p6), %v4091_v4  ;;  %v2352_v15 = vunpack.c.h.bf16 (!%p4656_p6), %v4091_v4  ;;  %s3373_s2 = smov (!%p4656_p6), 64  }
 0x22b   : > { %v2355_v16 = vunpack.c.l.bf16 (!%p4656_p6), %v4093_v5  ;;  %v2356_v17 = vunpack.c.h.bf16 (!%p4656_p6), %v4093_v5  ;;  %v2359_v18 = vunpack.c.l.bf16 (!%p4656_p6), %v4099_v10  ;;  %v2360_v19 = vunpack.c.h.bf16 (!%p4656_p6), %v4099_v10 }
 0x22c   : > { %v4573_v20 = vunpack.c.l.bf16 (!%p4656_p6), %v4101_v11  ;;  %v4572_v21 = vunpack.c.h.bf16 (!%p4656_p6), %v4101_v11  ;;  %v4571_v22 = vunpack.c.l.bf16 (!%p4656_p6), %v4103_v12  ;;  %v4570_v23 = vunpack.c.h.bf16 (!%p4656_p6), %v4103_v12 }
 0x22d   : > { %v1383_v24 = vsel (!%p4656_p6), %vm1301_vm0, %v2339_v2, -inf  ;;  %v1384_v25 = vsel (!%p4656_p6), %vm1301_vm0, %v2340_v6, -inf  ;;  %v1392_v26 = vsel (!%p4656_p6), %vm1301_vm0, %v2343_v7, -inf  ;;  %v1393_v27 = vsel (!%p4656_p6), %vm1301_vm0, %v2344_v8, -inf }
 0x22e   : > { %v1385_v28 = vmax.f32 (!%p4656_p6), %v1383_v24, %v1384_v25  ;;  %v1394_v29 = vmax.f32 (!%p4656_p6), %v1392_v26, %v1393_v27  ;;  %v1401_v30 = vsel (!%p4656_p6), %vm1301_vm0, %v2347_v9, -inf  ;;  %v1402_v31 = vsel (!%p4656_p6), %vm1301_vm0, %v2348_v13, -inf }
 0x22f   : > { %v1403_v32 = vmax.f32 (!%p4656_p6), %v1401_v30, %v1402_v31  ;;  %v1410_v33 = vsel (!%p4656_p6), %vm1301_vm0, %v2351_v14, -inf  ;;  %v1411_v34 = vsel (!%p4656_p6), %vm1301_vm0, %v2352_v15, -inf  ;;  %v1419_v35 = vsel (!%p4656_p6), %vm1301_vm0, %v2355_v16, -inf }
 0x230   : > { %v1386_v36 = vrot.slane %v1385_v28, 4  ;;  %v1395_v37 = vrot.slane %v1394_v29, 4  ;;  %v1412_v38 = vmax.f32 %v1410_v33, %v1411_v34  ;;  %v1420_v39 = vsel %vm1301_vm0, %v2356_v17, -inf }
 0x231   : > { %v1404_v40 = vrot.slane %v1403_v32, 4  ;;  %v1421_v41 = vmax.f32 %v1419_v35, %v1420_v39  ;;  %v1428_v42 = vsel %vm1301_vm0, %v2359_v18, -inf  ;;  %v1429_v43 = vsel %vm1301_vm0, %v2360_v19, -inf }
 0x232   : > { %v1387_v44 = vmax.f32 %v1385_v28, %v1386_v36  ;;  %v1396_v45 = vmax.f32 %v1394_v29, %v1395_v37  ;;  %v1413_v46 = vrot.slane %v1412_v38, 4  ;;  %v1430_v47 = vmax.f32 %v1428_v42, %v1429_v43  ;;  %v4164_v36 = vld [vmem:[#allocation5] sm:$0xff]  }
 0x233   : > { %vm1195_vm3 = vcmask 1043459   ;;  %v1405_v48 = vmax.f32 %v1403_v32, %v1404_v40  ;;  %v1422_v49 = vrot.slane %v1421_v41, 4  ;;  %v1437_v50 = vsel %vm1301_vm0, %v4573_v20, -inf }
 0x234   : > { %v1438_v51 = vsel %vm1301_vm0, %v4572_v21, -inf  ;;  %vm1197_vm4 = vcmask 1044484   ;;  %v1388_v52 = vrot.slane %v1387_v44, 2  ;;  %v1397_v53 = vrot.slane %v1396_v45, 2 }
 0x235   : > { %v1414_v54 = vmax.f32 %v1412_v38, %v1413_v46  ;;  %v1431_v55 = vrot.slane %v1430_v47, 4  ;;  %vm1199_vm5 = vcmask 1045509   ;;  %v1406_v56 = vrot.slane %v1405_v48, 2 }
 0x236   : > { %v1423_v57 = vmax.f32 %v1421_v41, %v1422_v49  ;;  %v1439_v58 = vmax.f32 %v1437_v50, %v1438_v51  ;;  %v1446_v59 = vsel %vm1301_vm0, %v4571_v22, -inf  ;;  %v1389_v60 = vmax.f32 %v1387_v44, %v1388_v52 }
 0x237   : > { %v1398_v61 = vmax.f32 %v1396_v45, %v1397_v53  ;;  %v1415_v62 = vrot.slane %v1414_v54, 2  ;;  %v1432_v63 = vmax.f32 %v1430_v47, %v1431_v55  ;;  %v1407_v24 = vmax.f32 %v1405_v48, %v1406_v56  ;;  %v4166_v45 = vld [vmem:[#allocation5 + $0x8] sm:$0xff]   ;;  %v4173_v55 = vld [vmem:[#allocation5 + $0x18] sm:$0xff]  }
 0x238   : > { %v1424_v25 = vrot.slane %v1423_v57, 2  ;;  %v1440_v26 = vrot.slane %v1439_v58, 4  ;;  %v1447_v27 = vsel %vm1301_vm0, %v4570_v23, -inf  ;;  %vm1201_vm6 = vcmask 1046534  }
 0x239   : > { %v1390_v28 = vrot.slane %v1389_v60, 1  ;;  %v1399_v29 = vrot.slane %v1398_v61, 1  ;;  %v1416_v30 = vmax.f32 %v1414_v54, %v1415_v62  ;;  %v1433_v31 = vrot.slane %v1432_v63, 2  ;;  %v4171_v54 = vld [vmem:[#allocation5 + $0x10] sm:$0xff]  }
 0x23a   : > { %v1408_v32 = vrot.slane %v1407_v24, 1  ;;  %v1425_v33 = vmax.f32 %v1423_v57, %v1424_v25  ;;  %v1441_v34 = vmax.f32 %v1439_v58, %v1440_v26  ;;  %v1448_v35 = vmax.f32 %v1446_v59, %v1447_v27 }
 0x23b   : > { %v1391_v37 = vmax.f32 %v1389_v60, %v1390_v28  ;;  %v1400_v38 = vmax.f32 %v1398_v61, %v1399_v29  ;;  %v1417_v39 = vrot.slane %v1416_v30, 1  ;;  %v1434_v40 = vmax.f32 %v1432_v63, %v1433_v31 }
 0x23c   : > { %v1409_v41 = vmax.f32 %v1407_v24, %v1408_v32  ;;  %v1426_v42 = vrot.slane %v1425_v33, 1  ;;  %v1442_v43 = vrot.slane %v1441_v34, 2  ;;  %v1449_v44 = vrot.slane %v1448_v35, 4 }
 0x23d   : > { %vm1203_vm7 = vcmask 1047559   ;;  %v1418_v46 = vmax.f32 %v1416_v30, %v1417_v39  ;;  %v1435_v47 = vrot.slane %v1434_v40, 1  ;;  %v1479_v48 = vsel %vm1191_vm1, %v1400_v38, %v1391_v37 }
 0x23e   : > { %v2323_v49 = vunpack.c.l.bf16 %v4164_v36  ;;  %v1427_v50 = vmax.f32 %v1425_v33, %v1426_v42  ;;  %v1443_v51 = vmax.f32 %v1441_v34, %v1442_v43  ;;  %v1450_v52 = vmax.f32 %v1448_v35, %v1449_v44 }
 0x23f   : > { %v1480_v53 = vsel %vm1193_vm2, %v1409_v41, %v1479_v48  ;;  %v1436_v56 = vmax.f32 %v1434_v40, %v1435_v47  ;;  %v2324_v58 = vunpack.c.h.bf16 %v4164_v36  ;;  %v2327_v59 = vunpack.c.l.bf16 %v4166_v45 }
 0x240   : > { %v1481_v57 = vsel %vm1195_vm3, %v1418_v46, %v1480_v53  ;;  %v1444_v60 = vrot.slane %v1443_v51, 1  ;;  %v1451_v61 = vrot.slane %v1450_v52, 2  ;;  %v2328_v63 = vunpack.c.h.bf16 %v4166_v45 }
 0x241   : > { %v1482_v62 = vsel %vm1197_vm4, %v1427_v50, %v1481_v57  ;;  %v2331_v25 = vunpack.c.l.bf16 %v4171_v54  ;;  %v2332_v26 = vunpack.c.h.bf16 %v4171_v54  ;;  %v2335_v27 = vunpack.c.l.bf16 %v4173_v55 }
 0x242   : > { %v1483_v24 = vsel %vm1199_vm5, %v1436_v56, %v1482_v62  ;;  %v1445_v28 = vmax.f32 %v1443_v51, %v1444_v60  ;;  %v1452_v29 = vmax.f32 %v1450_v52, %v1451_v61  ;;  %v2336_v30 = vunpack.c.h.bf16 %v4173_v55 }
 0x243   : > { %vm1061_vm8 = vcmask 523264   ;;  %v1321_v0 = vsel %vm1301_vm0, %v2348_v13, 0.0  ;;  %v1338_v3 = vsel %vm1301_vm0, %v2355_v16, 0.0  ;;  %v1347_v4 = vsel %vm1301_vm0, %v2359_v18, 0.0 }
 0x244   : > { %v1127_v31 = vsel %vm1061_vm8, %v2323_v49, -inf  ;;  %v1134_v32 = vsel %vm1061_vm8, %v2324_v58, -inf  ;;  %v1141_v33 = vsel %vm1061_vm8, %v2327_v59, -inf  ;;  %v1148_v34 = vsel %vm1061_vm8, %v2328_v63, -inf }
 0x245   : > { %v1453_v35 = vrot.slane %v1452_v29, 1  ;;  %v1484_v37 = vsel %vm1201_vm6, %v1445_v28, %v1483_v24  ;;  %v1128_v38 = vrot.slane %v1127_v31, 4  ;;  %v1135_v39 = vrot.slane %v1134_v32, 4 }
 0x246   : > { %v1142_v40 = vrot.slane %v1141_v33, 4  ;;  %v1149_v41 = vrot.slane %v1148_v34, 4  ;;  %v1155_v42 = vsel %vm1061_vm8, %v2331_v25, -inf  ;;  %v1162_v43 = vsel %vm1061_vm8, %v2332_v26, -inf }
 0x247   : > { %v1454_v44 = vmax.f32 %v1452_v29, %v1453_v35  ;;  %v1129_v46 = vmax.f32 %v1127_v31, %v1128_v38  ;;  %v1136_v47 = vmax.f32 %v1134_v32, %v1135_v39  ;;  %v1156_v48 = vrot.slane %v1155_v42, 4 }
 0x248   : > { %v1143_v50 = vmax.f32 %v1141_v33, %v1142_v40  ;;  %v1150_v51 = vmax.f32 %v1148_v34, %v1149_v41  ;;  %v1163_v52 = vrot.slane %v1162_v43, 4  ;;  %v1169_v53 = vsel %vm1061_vm8, %v2335_v27, -inf }
 0x249   : > { %v1485_v56 = vsel %vm1203_vm7, %v1454_v44, %v1484_v37  ;;  %v1130_v57 = vrot.slane %v1129_v46, 2  ;;  %v1137_v60 = vrot.slane %v1136_v47, 2  ;;  %v1157_v61 = vmax.f32 %v1155_v42, %v1156_v48 }
 0x24a   : > { %1486 = vrot.lane.b32.xlu0 %v1485_v56, %s3372_s28  ;;  %v1144_v62 = vrot.slane %v1143_v50, 2  ;;  %v1151_v24 = vrot.slane %v1150_v51, 2  ;;  %v1164_v28 = vmax.f32 %v1162_v43, %v1163_v52  ;;  %v1170_v29 = vrot.slane %v1169_v53, 4 }
 0x24b   : > { %v1131_v31 = vmax.f32 %v1129_v46, %v1130_v57  ;;  %v1138_v32 = vmax.f32 %v1136_v47, %v1137_v60  ;;  %v1158_v33 = vrot.slane %v1157_v61, 2  ;;  %v1176_v34 = vsel %vm1061_vm8, %v2336_v30, -inf }
 0x24c   : > { %v1145_v35 = vmax.f32 %v1143_v50, %v1144_v62  ;;  %v1152_v38 = vmax.f32 %v1150_v51, %v1151_v24  ;;  %v1165_v39 = vrot.slane %v1164_v28, 2  ;;  %v1171_v37 = vmax.f32 %v1169_v53, %v1170_v29 }
 0x24d   : > { %v1132_v40 = vrot.slane %v1131_v31, 1  ;;  %v1139_v41 = vrot.slane %v1138_v32, 1  ;;  %v1159_v42 = vmax.f32 %v1157_v61, %v1158_v33  ;;  %v1177_v44 = vrot.slane %v1176_v34, 4 }
 0x24e   : > { %v1146_v48 = vrot.slane %v1145_v35, 1  ;;  %v1153_v56 = vrot.slane %v1152_v38, 1  ;;  %v1166_v23 = vmax.f32 %v1164_v28, %v1165_v39  ;;  %v1172_v43 = vrot.slane %v1171_v37, 2 }
 0x24f   : > { %v1133_v52 = vmax.f32 %v1131_v31, %v1132_v40  ;;  %v1140_v46 = vmax.f32 %v1138_v32, %v1139_v41  ;;  %v1160_v47 = vrot.slane %v1159_v42, 1  ;;  %v1178_v57 = vmax.f32 %v1176_v34, %v1177_v44 }
 0x250   : > { %v1147_v60 = vmax.f32 %v1145_v35, %v1146_v48  ;;  %v1154_v22 = vmax.f32 %v1152_v38, %v1153_v56  ;;  %v1167_v21 = vrot.slane %v1166_v23, 1  ;;  %v1173_v20 = vmax.f32 %v1171_v37, %v1172_v43 }
 0x251   : > { %v1161_v50 = vmax.f32 %v1159_v42, %v1160_v47  ;;  %v1179_v51 = vrot.slane %v1178_v57, 2  ;;  %v1214_v53 = vsel %vm1191_vm1, %v1140_v46, %v1133_v52  ;;  %v1062_v61 = vsel %vm1061_vm8, %v2323_v49, 0.0 }
 0x252   : > { %v1168_v62 = vmax.f32 %v1166_v23, %v1167_v21  ;;  %v1174_v24 = vrot.slane %v1173_v20, 1  ;;  %v1215_v28 = vsel %vm1193_vm2, %v1147_v60, %v1214_v53  ;;  %v1063_v29 = vrot.slane %v1062_v61, 4 }
 0x253   : > { %v1180_v31 = vmax.f32 %v1178_v57, %v1179_v51  ;;  %v1216_v32 = vsel %vm1195_vm3, %v1154_v22, %v1215_v28  ;;  %v1069_v33 = vsel %vm1061_vm8, %v2324_v58, 0.0  ;;  %v1076_v34 = vsel %vm1061_vm8, %v2327_v59, 0.0 }
 0x254   : > { %v1175_v35 = vmax.f32 %v1173_v20, %v1174_v24  ;;  %v1217_v38 = vsel %vm1197_vm4, %v1161_v50, %v1216_v32  ;;  %v1064_v49 = vadd.f32 %v1063_v29, %v1062_v61  ;;  %v1070_v21 = vrot.slane %v1069_v33, 4 }
 0x255   : > { %v1181_v23 = vrot.slane %v1180_v31, 1  ;;  %v1218_v39 = vsel %vm1199_vm5, %v1168_v62, %v1217_v38  ;;  %v1077_v37 = vrot.slane %v1076_v34, 4  ;;  %v1083_v22 = vsel %vm1061_vm8, %v2328_v63, 0.0 }
 0x256   : > { %v1219_v36 = vsel %vm1201_vm6, %v1175_v35, %v1218_v39  ;;  %v1065_v58 = vrot.slane %v1064_v49, 2  ;;  %v1071_v40 = vadd.f32 %v1070_v21, %v1069_v33  ;;  %v1084_v41 = vrot.slane %v1083_v22, 4 }
 0x257   : > { %v1182_v42 = vmax.f32 %v1180_v31, %v1181_v23  ;;  %v1078_v59 = vadd.f32 %v1077_v37, %v1076_v34  ;;  %v1090_v20 = vsel %vm1061_vm8, %v2331_v25, 0.0  ;;  %v1097_v44 = vsel %vm1061_vm8, %v2332_v26, 0.0 }
 0x258   : > { %v1066_v48 = vadd.f32 %v1065_v58, %v1064_v49  ;;  %v1072_v56 = vrot.slane %v1071_v40, 2  ;;  %v1085_v45 = vadd.f32 %v1084_v41, %v1083_v22  ;;  %v1091_v43 = vrot.slane %v1090_v20, 4 }
 0x259   : > { %v1220_v63 = vsel %vm1203_vm7, %v1182_v42, %v1219_v36  ;;  %v1079_v52 = vrot.slane %v1078_v59, 2  ;;  %v1098_v46 = vrot.slane %v1097_v44, 4  ;;  %v1104_v47 = vsel %vm1061_vm8, %v2335_v27, 0.0 }
 0x25a   : > { %1221 = vrot.lane.b32.xlu0 %v1220_v63, %s3373_s2  ;;  %v1067_v57 = vrot.slane %v1066_v48, 1  ;;  %v1073_v25 = vadd.f32 %v1072_v56, %v1071_v40  ;;  %v1086_v60 = vrot.slane %v1085_v45, 2  ;;  %v1092_v54 = vadd.f32 %v1091_v43, %v1090_v20 }
 0x25b   : > { %v1080_v50 = vadd.f32 %v1079_v52, %v1078_v59  ;;  %v1099_v26 = vadd.f32 %v1098_v46, %v1097_v44  ;;  %v1105_v51 = vrot.slane %v1104_v47, 4  ;;  %v1111_v53 = vsel %vm1061_vm8, %v2336_v30, 0.0 }
 0x25c   : > { %v1068_v61 = vadd.f32 %v1067_v57, %v1066_v48  ;;  %v1074_v62 = vrot.slane %v1073_v25, 1  ;;  %v1087_v24 = vadd.f32 %v1086_v60, %v1085_v45  ;;  %v1093_v28 = vrot.slane %v1092_v54, 2 }
 0x25d   : > { %v1081_v29 = vrot.slane %v1080_v50, 1  ;;  %v1100_v31 = vrot.slane %v1099_v26, 2  ;;  %v1106_v27 = vadd.f32 %v1105_v51, %v1104_v47  ;;  %v1112_v32 = vrot.slane %v1111_v53, 4 }
 0x25e   : > { %v1075_v33 = vadd.f32 %v1074_v62, %v1073_v25  ;;  %v1088_v34 = vrot.slane %v1087_v24, 1  ;;  %v1094_v35 = vadd.f32 %v1093_v28, %v1092_v54  ;;  %v1119_v38 = vmul.f32 0.125, %v1068_v61 }
 0x25f   : > { %v1082_v49 = vadd.f32 %v1081_v29, %v1080_v50  ;;  %v1101_v21 = vadd.f32 %v1100_v31, %v1099_v26  ;;  %v1107_v23 = vrot.slane %v1106_v27, 2  ;;  %v1113_v39 = vadd.f32 %v1112_v32, %v1111_v53 }
 0x260   : > { %v1089_v37 = vadd.f32 %v1088_v34, %v1087_v24  ;;  %v1095_v55 = vrot.slane %v1094_v35, 1  ;;  %v1120_v22 = vmul.f32 0.125, %v1075_v33  ;;  %v3374_v47 = vmov 0.0  }
 0x261   : > { %v1102_v30 = vrot.slane %v1101_v21, 1  ;;  %v1108_v36 = vadd.f32 %v1107_v23, %v1106_v27  ;;  %v1114_v58 = vrot.slane %v1113_v39, 2  ;;  %v1121_v40 = vmul.f32 0.125, %v1082_v49  ;;  %1532 = vst [vmem:[#allocation4] sm:$0xff] %v3374_v47  ;;  %1533 = vst [vmem:[#allocation4 + $0x8] sm:$0xff] %v3374_v47 }
 0x262   : > { %v1096_v41 = vadd.f32 %v1095_v55, %v1094_v35  ;;  %v1122_v42 = vmul.f32 0.125, %v1089_v37  ;;  %v1192_v59 = vsel %vm1191_vm1, %v1120_v22, %v1119_v38  ;;  %v1302_v25 = vsel %vm1301_vm0, %v2339_v2, 0.0 }
 0x263   : > { %v1103_v20 = vadd.f32 %v1102_v30, %v1101_v21  ;;  %v1109_v44 = vrot.slane %v1108_v36, 1  ;;  %v1115_v48 = vadd.f32 %v1114_v58, %v1113_v39  ;;  %v1194_v56 = vsel %vm1193_vm2, %v1121_v40, %v1192_v59 }
 0x264   : > { %v1123_v45 = vmul.f32 0.125, %v1096_v41  ;;  %v1196_v43 = vsel %vm1195_vm3, %v1122_v42, %v1194_v56  ;;  %v1303_v60 = vsel %vm1301_vm0, %v2340_v6, 0.0  ;;  %v1311_v54 = vsel %vm1301_vm0, %v2343_v7, 0.0 }
 0x265   : > { %v1110_v63 = vadd.f32 %v1109_v44, %v1108_v36  ;;  %v1116_v52 = vrot.slane %v1115_v48, 1  ;;  %v1124_v46 = vmul.f32 0.125, %v1103_v20  ;;  %v1304_v53 = vadd.f32 %v1303_v60, %v1302_v25 }
 0x266   : > { %v1198_v57 = vsel %vm1197_vm4, %v1123_v45, %v1196_v43  ;;  %v1312_v61 = vsel %vm1301_vm0, %v2344_v8, 0.0  ;;  %v1320_v2 = vsel %vm1301_vm0, %v2347_v9, 0.0  ;;  %v1329_v6 = vsel %vm1301_vm0, %v2351_v14, 0.0 }
 0x267   : > { %v1117_v50 = vadd.f32 %v1116_v52, %v1115_v48  ;;  %v1125_v26 = vmul.f32 0.125, %v1110_v63  ;;  %v1200_v51 = vsel %vm1199_vm5, %v1124_v46, %v1198_v57  ;;  %v1305_v24 = vrot.slane %v1304_v53, 4 }
 0x268   : > { %v1313_v28 = vadd.f32 %v1312_v61, %v1311_v54  ;;  %v1322_v1 = vadd.f32 %v1321_v0, %v1320_v2  ;;  %v1330_v8 = vsel %vm1301_vm0, %v2352_v15, 0.0  ;;  %v1339_v9 = vsel %vm1301_vm0, %v2356_v17, 0.0 }
 0x269   : > { %v1126_v7 = vmul.f32 0.125, %v1117_v50  ;;  %v1202_v62 = vsel %vm1201_vm6, %v1125_v26, %v1200_v51  ;;  %v1306_v14 = vadd.f32 %v1305_v24, %v1304_v53  ;;  %v1331_v31 = vadd.f32 %v1330_v8, %v1329_v6 }
 0x26a   : > { %v1314_v29 = vrot.slane %v1313_v28, 4  ;;  %v1323_v27 = vrot.slane %v1322_v1, 4  ;;  %v1340_v32 = vadd.f32 %v1339_v9, %v1338_v3  ;;  %v1348_v15 = vsel %vm1301_vm0, %v2360_v19, 0.0 }
 0x26b   : > { %v4281_v13 = vsel %vm1203_vm7, %v1126_v7, %v1202_v62  ;;  %v1307_v16 = vrot.slane %v1306_v14, 2  ;;  %v1332_v33 = vrot.slane %v1331_v31, 4  ;;  %v1349_v17 = vadd.f32 %v1348_v15, %v1347_v4 }
 0x26c   : > { %v1315_v5 = vadd.f32 %v1314_v29, %v1313_v28  ;;  %v1324_v34 = vadd.f32 %v1323_v27, %v1322_v1  ;;  %v1341_v35 = vrot.slane %v1340_v32, 4  ;;  %v4657_v38 = vunpack.c.l.bf16 %v4101_v11 }
 0x26d   : > { %v4658_v21 = vunpack.c.h.bf16 %v4101_v11  ;;  %v1308_v39 = vadd.f32 %v1307_v16, %v1306_v14  ;;  %v1333_v37 = vadd.f32 %v1332_v33, %v1331_v31  ;;  %v1350_v10 = vrot.slane %v1349_v17, 4 }
 0x26e   : > { %v1356_v49 = vsel %vm1301_vm0, %v4657_v38, 0.0  ;;  %v1316_v18 = vrot.slane %v1315_v5, 2  ;;  %v1325_v55 = vrot.slane %v1324_v34, 2  ;;  %v1342_v19 = vadd.f32 %v1341_v35, %v1340_v32 }
 0x26f   : > { %v1357_v23 = vsel %vm1301_vm0, %v4658_v21, 0.0  ;;  %v4659_v30 = vunpack.c.l.bf16 %v4103_v12  ;;  %v1309_v58 = vrot.slane %v1308_v39, 1  ;;  %v1334_v41 = vrot.slane %v1333_v37, 2 }
 0x270   : > { %v1358_v22 = vadd.f32 %v1357_v23, %v1356_v49  ;;  %v1317_v40 = vadd.f32 %v1316_v18, %v1315_v5  ;;  %v1351_v42 = vadd.f32 %v1350_v10, %v1349_v17  ;;  %v1326_v59 = vadd.f32 %v1325_v55, %v1324_v34 }
 0x271   : > { %v1365_v36 = vsel %vm1301_vm0, %v4659_v30, 0.0  ;;  %v1343_v20 = vrot.slane %v1342_v19, 2  ;;  %v4660_v44 = vunpack.c.h.bf16 %v4103_v12  ;;  %v1310_v56 = vadd.f32 %v1309_v58, %v1308_v39 }
 0x272   : > { %v1359_v11 = vrot.slane %v1358_v22, 4  ;;  %v1318_v45 = vrot.slane %v1317_v40, 1  ;;  %v1335_v43 = vadd.f32 %v1334_v41, %v1333_v37  ;;  %v1352_v63 = vrot.slane %v1351_v42, 2 }
 0x273   : > { %v1366_v48 = vsel %vm1301_vm0, %v4660_v44, 0.0  ;;  %v1327_v52 = vrot.slane %v1326_v59, 1  ;;  %v1344_v46 = vadd.f32 %v1343_v20, %v1342_v19  ;;  %v1375_v26 = vmul.f32 0.0625, %v1310_v56 }
 0x274   : > { %v1360_v57 = vadd.f32 %v1359_v11, %v1358_v22  ;;  %v1367_v25 = vadd.f32 %v1366_v48, %v1365_v36  ;;  %v1319_v60 = vadd.f32 %v1318_v45, %v1317_v40  ;;  %v1336_v54 = vrot.slane %v1335_v43, 1 }
 0x275   : > { %v1353_v50 = vadd.f32 %v1352_v63, %v1351_v42  ;;  %v1328_v51 = vadd.f32 %v1327_v52, %v1326_v59  ;;  %v1345_v53 = vrot.slane %v1344_v46, 1  ;;  %v1227_v21 = vlaneseq }
 0x276   : > { %v1361_v61 = vrot.slane %v1360_v57, 2  ;;  %v1368_v2 = vrot.slane %v1367_v25, 4  ;;  %v1337_v0 = vadd.f32 %v1336_v54, %v1335_v43  ;;  %v1376_v6 = vmul.f32 0.0625, %v1319_v60 }
 0x277   : > { %v1354_v12 = vrot.slane %v1353_v50, 1  ;;  %v1346_v7 = vadd.f32 %v1345_v53, %v1344_v46  ;;  %v1377_v28 = vmul.f32 0.0625, %v1328_v51  ;;  %v1228_v23 = vshrl.u32 %v1227_v21, 7 }
 0x278   : > { %v1362_v62 = vadd.f32 %v1361_v61, %v1360_v57  ;;  %v1369_v24 = vadd.f32 %v1368_v2, %v1367_v25  ;;  %v1378_v8 = vmul.f32 0.0625, %v1337_v0  ;;  %v1463_v3 = vsel %vm1191_vm1, %v1376_v6, %v1375_v26 }
 0x279   : > { %v1355_v1 = vadd.f32 %v1354_v12, %v1353_v50  ;;  %v1379_v29 = vmul.f32 0.0625, %v1346_v7  ;;  %v1464_v31 = vsel %vm1193_vm2, %v1377_v28, %v1463_v3  ;;  %vm1229_vm9 = vcmp.lt.s32.totalorder %v1228_v23, 2  ;;  %v2297_v3 = vld [vmem:[#allocation16] ss:$0 sm:$0xff] }
 0x27a   : > { %v1363_v9 = vrot.slane %v1362_v62, 1  ;;  %v1370_v14 = vrot.slane %v1369_v24, 2  ;;  %v1465_v32 = vsel %vm1195_vm3, %v1378_v8, %v1464_v31  ;;  %v2294_v39 = vsel %vm1229_vm9, 1.0, %v3374_v47 }
 0x27b   : > { %v1380_v27 = vmul.f32 0.0625, %v1355_v1  ;;  %v1466_v16 = vsel %vm1197_vm4, %v1379_v29, %v1465_v32  ;;  %v2298_v29 = vld [vmem:[#allocation17] ss:$0 sm:$0xff]  ;;  %vm1530_vm10 = vcmask 519168  }
 0x27c   : > { %v1364_v4 = vadd.f32 %v1363_v9, %v1362_v62  ;;  %v1371_v15 = vadd.f32 %v1370_v14, %v1369_v24 }
 0x27d   : > { %v1467_v5 = vsel %vm1199_vm5, %v1380_v27, %v1466_v16 }
 0x27e   : > { %v1372_v33 = vrot.slane %v1371_v15, 1  ;;  %v1381_v17 = vmul.f32 0.0625, %v1364_v4 }
 0x280   : > { %v1373_v34 = vadd.f32 %v1372_v33, %v1371_v15  ;;  %v1468_v35 = vsel %vm1201_vm6, %v1381_v17, %v1467_v5  ;;  %v2295_v15 = vld [vmem:[#allocation10] ss:$0 sm:$0xff]  ;;  %v2296_v5 = vld [vmem:[#allocation11] ss:$0 sm:$0xff] }
 0x282   : > { %v1382_v38 = vmul.f32 0.0625, %v1373_v34 }
 0x284   : > { %v1469_v49 = vsel %vm1203_vm7, %v1382_v38, %v1468_v35 }
 0x2bc   : > { %v1487_v18 = vpop.permute.xlu0 %1486 }
 0x2bd   : > { %v1489_v37 = vsel %vm1301_vm0, %v1469_v49, %v1487_v18 }
 0x2be   : > { %v1492_v10 = vmul.f32 %v2294_v39, %v1489_v37 }
 0x2c0   : > { %v1493_v55 = vsel %vm1061_vm8, %v1492_v10, 0.0 }
 0x2c1   : > { %v1494_v19 = vrot.slane %v1493_v55, 4 }
 0x2c3   : > { %v1495_v22 = vadd.f32 %v1494_v19, %v1493_v55 }
 0x2c5   : > { %v1496_v30 = vrot.slane %v1495_v22, 2 }
 0x2c7   : > { %v1497_v36 = vadd.f32 %v1496_v30, %v1495_v22 }
 0x2c9   : > { %v1498_v58 = vrot.slane %v1497_v36, 1 }
 0x2cb   : > { %v1499_v40 = vadd.f32 %v1498_v58, %v1497_v36 }
 0x2cc   : > { %v1222_v41 = vpop.permute.xlu0 %1221 }
 0x2cd   : > { %v1224_v42 = vsel %vm1061_vm8, %v4281_v13, %v1222_v41  ;;  %v1500_v59 = vmul.f32 0.5, %v1499_v40 }
 0x2ce   : > { %v1232_v20 = vmul.f32 %v2294_v39, %v1224_v42 }
 0x2cf   : > { %v1501_v11 = vsub.f32 %v1489_v37, %v1500_v59 }
 0x2d0   : > { %v1233_v47 = vrot.slane %v1232_v20, 4 }
 0x2d1   : > { %v1502_v44 = vmul.f32 %v2294_v39, %v1501_v11 }
 0x2d2   : > { %v1234_v48 = vadd.f32 %v1233_v47, %v1232_v20 }
 0x2d3   : > { %v1503_v56 = vmul.f32 %v1502_v44, %v1502_v44 }
 0x2d4   : > { %v1235_v45 = vrot.slane %v1234_v48, 2 }
 0x2d5   : > { %v1504_v43 = vsel %vm1061_vm8, %v1503_v56, 0.0 }
 0x2d6   : > { %v1236_v63 = vadd.f32 %v1235_v45, %v1234_v48  ;;  %v1505_v52 = vrot.slane %v1504_v43, 4 }
 0x2d8   : > { %v1237_v46 = vrot.slane %v1236_v63, 1  ;;  %v1506_v57 = vadd.f32 %v1505_v52, %v1504_v43 }
 0x2da   : > { %v1238_v25 = vadd.f32 %v1237_v46, %v1236_v63  ;;  %v1507_v60 = vrot.slane %v1506_v57, 2 }
 0x2dc   : > { %v1239_v54 = vmul.f32 0.5, %v1238_v25  ;;  %v1508_v50 = vadd.f32 %v1507_v60, %v1506_v57 }
 0x2de   : > { %v1240_v26 = vsub.f32 %v1224_v42, %v1239_v54  ;;  %v1509_v13 = vrot.slane %v1508_v50, 1 }
 0x2e0   : > { %v1241_v51 = vmul.f32 %v2294_v39, %v1240_v26  ;;  %v1510_v53 = vadd.f32 %v1509_v13, %v1508_v50 }
 0x2e2   : > { %v1242_v61 = vmul.f32 %v1241_v51, %v1241_v51  ;;  %v1511_v2 = vmul.f32 0.5, %v1510_v53 }
 0x2e4   : > { %v1243_v0 = vrot.slane %v1242_v61, 4  ;;  %v1512_v12 = vadd.f32 1e-05, %v1511_v2 }
 0x2e6   : > { %v1244_v6 = vadd.f32 %v1243_v0, %v1242_v61  ;;  %2664 = vrsqrt.f32 %v1512_v12 }
 0x2e8   : > { %v1245_v7 = vrot.slane %v1244_v6, 2 }
 0x2ea   : > { %v1246_v62 = vadd.f32 %v1245_v7, %v1244_v6 }
 0x2ec   : > { %v1247_v24 = vrot.slane %v1246_v62, 1 }
 0x2ee   : > { %v1248_v28 = vadd.f32 %v1247_v24, %v1246_v62 }
 0x2f0   : > { %v2665_v1 = vpop.eup %2664  ;;  %v1249_v8 = vmul.f32 0.5, %v1248_v28 }
 0x2f1   : > { %v1514_v9 = vmul.f32 %v2665_v1, %v1501_v11 }
 0x2f2   : > { %v1250_v14 = vadd.f32 1e-05, %v1249_v8 }
 0x2f3   : > { %v1521_v31 = vmul.f32 %v2297_v3, %v1514_v9 }
 0x2f4   : > { %2666 = vrsqrt.f32 %v1250_v14 }
 0x2f5   : > { %v1528_v27 = vadd.f32 %v2298_v29, %v1521_v31 }
 0x2f7   : > { %v1529_v32 = vpack.c.bf16 %v1528_v27, %v1528_v27 }
 0x2f9   : > { %1531 = vst.msk [vmem:[#allocation3] sm:$0xf] %vm1530_vm10, %v1529_v32 }
 0x2fe   : > { %v2667_v4 = vpop.eup %2666 }
 0x2ff   : > { %v1252_v16 = vmul.f32 %v2667_v4, %v1240_v26 }
 0x301   : > { %v1259_v33 = vmul.f32 %v2295_v15, %v1252_v16 }
 0x303   : > { %v1266_v17 = vadd.f32 %v2296_v5, %v1259_v33 }
 0x305   : > { %v1267_v34 = vpack.c.bf16 %v1266_v17, %v1266_v17 }
 0x307   : > { %1268 = vst [vmem:[#allocation2] sm:$0xf] %v1267_v34 }
 0x308 PF: > { %v1535_v35 = vld [vmem:[%s4043_s18] sm:$0xff]  ;;  %v1604_v38 = vld [vmem:[%s4060_s26] sm:$0xff]  ;;  %v3375_v49 = vmov 0.0   ;;  %vm3376_vm11 = vmmov 0   ;;  %v1537_v30 = vld [vmem:[%s4043_s18 + $0x10] sm:$0xff]  ;;  %vm1610_vm12 = vcmask 523264  }
 0x309   : > { %2402 = vmatprep.subr.bf16.mxu0 %v3375_v49  ;;  %v1539_v21 = vunpack.c.l.s8.bf16 %v1535_v35  ;;  %2422 = vmatprep.subr.bf16.mxu1 %v3375_v49  ;;  %v1606_v23 = vunpack.c.l.s8.bf16 %v1604_v38  ;;  %v1540_v39 = vunpack.c.h.s8.bf16 %v1535_v35  ;;  %v1536_v18 = vld [vmem:[%s4043_s18 + $0x8] sm:$0xff]  ;;  %v1607_v37 = vunpack.c.h.s8.bf16 %v1604_v38  ;;  %v1605_v10 = vld [vmem:[%s4060_s26 + $0x8] sm:$0xff]  ;;  %v1538_v20 = vld [vmem:[%s4043_s18 + $0x18] sm:$0xff]  ;;  %s4661_s25 = sld [smem:[#allocation51_spill]] }
 0x30a   : > { %2430 = vmatprep.mubr.msk.bf16.mxu1 %vm3376_vm11, %v3375_v49  ;;  %2418 = vmatprep.mubr.msk.bf16.mxu0 %vm3376_vm11, %v3375_v49  ;;  %v1541_v55 = vunpack.c.l.s8.bf16 %v1536_v18  ;;  %v1608_v19 = vunpack.c.l.s8.bf16 %v1605_v10  ;;  %v1542_v22 = vunpack.c.h.s8.bf16 %v1536_v18  ;;  %v1609_v36 = vunpack.c.h.s8.bf16 %v1605_v10  ;;  %v1673_v58 = vld [vmem:[%s4072_s19] sm:$0xff]  ;;  %v1603_v41 = vld [vmem:[#allocation3] sm:$0xf]  ;;  %v1674_v47 = vld [vmem:[%s4072_s19 + $0x8] sm:$0xff] }
 0x30b   : > { %2403 = vmatpush3.bf16.msra.mxu0 %v1539_v21  ;;  %2423 = vmatpush3.bf16.msra.mxu1 %v1606_v23  ;;  %v1543_v40 = vunpack.c.l.s8.bf16 %v1537_v30  ;;  %v1677_v42 = vunpack.c.l.s8.bf16 %v1673_v58  ;;  %v1544_v59 = vunpack.c.h.s8.bf16 %v1537_v30  ;;  %v1678_v11 = vunpack.c.h.s8.bf16 %v1673_v58  ;;  %v1675_v43 = vld [vmem:[%s4072_s19 + $0x10] sm:$0xff]  ;;  %v1676_v57 = vld [vmem:[%s4072_s19 + $0x18] sm:$0xff]  ;;  %v1671_v3 = vld [vmem:[#allocation4] sm:$0xff] }
 0x30c   : > { %2404 = vmatprep.subr.bf16.mxu0 %v3375_v49  ;;  %2424 = vmatprep.subr.bf16.mxu1 %v3375_v49  ;;  %v1545_v44 = vunpack.c.l.s8.bf16 %v1538_v20  ;;  %v1679_v48 = vunpack.c.l.s8.bf16 %v1674_v47  ;;  %v1546_v56 = vunpack.c.h.s8.bf16 %v1538_v20  ;;  %v1680_v45 = vunpack.c.h.s8.bf16 %v1674_v47  ;;  %v2302_v51 = vld [vmem:[%s922_s21] ss:$0 sm:$0xff]  ;;  %v1672_v14 = vld [vmem:[#allocation4 + $0x8] sm:$0xff] }
 0x30d   : > { %v1681_v52 = vunpack.c.l.s8.bf16 %v1675_v43  ;;  %v1682_v46 = vunpack.c.h.s8.bf16 %v1675_v43  ;;  %v1683_v25 = vunpack.c.l.s8.bf16 %v1676_v57  ;;  %v1684_v60 = vunpack.c.h.s8.bf16 %v1676_v57  ;;  %v2303_v61 = vld [vmem:[%s930_s7] ss:$0 sm:$0xff] }
 0x30e   : > { %v1534_v63 = vld [vmem:[#allocation2] sm:$0xf] }
 0x30f   : > { %2405 = vmatpush3.bf16.msra.mxu0 %v1540_v39  ;;  %2425 = vmatpush3.bf16.msra.mxu1 %v1607_v37  ;;  %v2299_v2 = vld [vmem:[%s889_s12] ss:$0 sm:$0xff]  ;;  %p2304_p8 = scmp.ne.s32.totalorder %s4661_s25, 1 }
 0x310   : > { %2406 = vmatprep.subr.bf16.mxu0 %v3375_v49  ;;  %2426 = vmatprep.subr.bf16.mxu1 %v3375_v49  ;;  %v2300_v12 = vld [vmem:[%s897_s15] ss:$0 sm:$0xff]  ;;  %s4662_s4 = sld [smem:[#allocation69_spill]] (!%p2304_p8)  ;;  %v3377_v34 = vmov (!%p2304_p8), 0   ;;  %v1756_v35 = vlaneseq (!%p2304_p8)  ;;  %v2305_v23 = vld [vmem:[#allocation24] ss:$0 sm:$0xff] (!%p2304_p8) }
 0x311   : > { %v2306_v18 = vld [vmem:[#allocation26] ss:$0 sm:$0xff] (!%p2304_p8)  ;;  %s4664_s28 = sld [smem:[#allocation70_spill]] (!%p2304_p8)  ;;  %s4665_s3 = sld [smem:[#allocation71_spill]] (!%p2304_p8) }
 0x313   : > { %2407 = vmatpush3.bf16.msra.mxu0 %v1541_v55  ;;  %2427 = vmatpush3.bf16.msra.mxu1 %v1608_v19 }
 0x314   : > { %2408 = vmatprep.subr.bf16.mxu0 %v3375_v49  ;;  %2428 = vmatprep.subr.bf16.mxu1 %v3375_v49 }
 0x316   : > { %s4663_s5 = smov (!%p2304_p8), %s4662_s4  ;;  %v1823_v15 = vld [vmem:[%s4662_s4 + $0x8] sm:$0xff] (!%p2304_p8) }
 0x317   : > { %2409 = vmatpush3.bf16.msra.mxu0 %v1542_v22  ;;  %2429 = vmatpush3.bf16.msra.mxu1 %v1609_v36  ;;  %v1822_v16 = vld [vmem:[%s4663_s5] sm:$0xff] (!%p2304_p8)  ;;  %v1831_v5 = vunpack.c.l.s8.bf16 (!%p2304_p8), %v1823_v15  ;;  %v1833_v33 = vunpack.c.h.s8.bf16 (!%p2304_p8), %v1823_v15  ;;  %v1825_v38 = vld [vmem:[%s4663_s5 + $0x18] sm:$0xff] (!%p2304_p8)  ;;  %v1824_v10 = vld [vmem:[%s4663_s5 + $0x10] sm:$0xff] (!%p2304_p8)  ;;  %v4371_v22 = vshrl.u32 (!%p2304_p8), %v1756_v35, 7 }
 0x318   : > { %2410 = vmatprep.subr.bf16.mxu0 %v3375_v49  ;;  %2434 = vmatprep.subr.bf16.mxu1 %v3375_v49  ;;  %v1830_v17 = vunpack.c.l.s8.bf16 (!%p2304_p8), %v1822_v16  ;;  %v1832_v39 = vunpack.c.h.s8.bf16 (!%p2304_p8), %v1822_v16  ;;  %v1835_v37 = vunpack.c.l.s8.bf16 (!%p2304_p8), %v1825_v38  ;;  %v1834_v58 = vunpack.c.l.s8.bf16 (!%p2304_p8), %v1824_v10 }
 0x319   : > { %vm1758_vm13 = vcmp.lt.s32.totalorder (!%p2304_p8), %v4371_v22, 2 }
 0x31a   : > { %2431 = vmatmul.mubr.msk.bf16.vlgmr.msra.gmra.mrb[0].mxu1 %vm1610_vm12, %v1603_v41 }
 0x31b   : > { %2411 = vmatpush3.bf16.msra.mxu0 %v1543_v40  ;;  %2435 = vmatpush3.bf16.msra.mxu1 %v1677_v42  ;;  %v3378_v40 = vmov (!%p2304_p8), 0.0   ;;  %v1837_v42 = vunpack.c.h.s8.bf16 (!%p2304_p8), %v1825_v38 }
 0x31c   : > { %2412 = vmatprep.subr.bf16.mxu0 %v3375_v49  ;;  %2436 = vmatprep.subr.bf16.mxu1 %v3375_v49  ;;  %v2307_v41 = vsel (!%p2304_p8), %vm1758_vm13, 1.0, %v3378_v40 }
 0x31d   : > { %2450 = vmatprep.mubr.msk.bf16.mxu1 %vm3376_vm11, %v3375_v49 }
 0x31f   : > { %2413 = vmatpush3.bf16.msra.mxu0 %v1544_v59  ;;  %2437 = vmatpush3.bf16.msra.mxu1 %v1678_v11  ;;  %v1827_v11 = vld [vmem:[%s4663_s5 + $0x28] sm:$0xff] (!%p2304_p8) }
 0x320   : > { %2414 = vmatprep.subr.bf16.mxu0 %v3375_v49  ;;  %2438 = vmatprep.subr.bf16.mxu1 %v3375_v49 }
 0x323   : > { %2415 = vmatpush3.bf16.msra.mxu0 %v1545_v44  ;;  %2439 = vmatpush3.bf16.msra.mxu1 %v1679_v48  ;;  %v1836_v48 = vunpack.c.h.s8.bf16 (!%p2304_p8), %v1824_v10 }
 0x324   : > { %2416 = vmatprep.subr.bf16.mxu0 %v3375_v49  ;;  %2440 = vmatprep.subr.bf16.mxu1 %v3375_v49 }
 0x327   : > { %2417 = vmatpush3.bf16.msra.mxu0 %v1546_v56  ;;  %2441 = vmatpush3.bf16.msra.mxu1 %v1680_v45  ;;  %v1839_v56 = vunpack.c.l.s8.bf16 (!%p2304_p8), %v1827_v11  ;;  %v1826_v45 = vld [vmem:[%s4663_s5 + $0x20] sm:$0xff] (!%p2304_p8) }
 0x328   : > { %2442 = vmatprep.subr.bf16.mxu1 %v3375_v49  ;;  %1846 = vmatprep.subr.bf16.mxu0 (!%p2304_p8), %v1831_v5  ;;  %v1838_v57 = vunpack.c.l.s8.bf16 (!%p2304_p8), %v1826_v45 }
 0x32a   : > { %2419 = vmatmul.mubr.bf16.vlgmr.msra.gmra.mrb[0].mxu0 %v1534_v63 }
 0x32b   : > { %2443 = vmatpush3.bf16.msra.mxu1 %v1681_v52  ;;  %1878 = vmatprep.mubr.bf16.mxu0 (!%p2304_p8), %v3377_v34 }
 0x32c   : > { %2444 = vmatprep.subr.bf16.mxu1 %v3375_v49  ;;  %1847 = vmatpush1.bf16.msra.mxu0 (!%p2304_p8), %v1830_v17 }
 0x32d   : > { %1848 = vmatprep.subr.bf16.mxu0 (!%p2304_p8), %v1833_v33 }
 0x32f   : > { %2445 = vmatpush3.bf16.msra.mxu1 %v1682_v46 }
 0x330   : > { %2446 = vmatprep.subr.bf16.mxu1 %v3375_v49  ;;  %1849 = vmatpush1.bf16.msra.mxu0 (!%p2304_p8), %v1832_v39 }
 0x331   : > { %1850 = vmatprep.subr.bf16.mxu0 (!%p2304_p8), %v1835_v37 }
 0x333   : > { %2447 = vmatpush3.bf16.msra.mxu1 %v1683_v25  ;;  %v1841_v25 = vunpack.c.h.s8.bf16 (!%p2304_p8), %v1827_v11  ;;  %v1905_v11 = vld [vmem:[%s4665_s3] sm:$0x3] (!%p2304_p8) }
 0x334   : > { %2448 = vmatprep.subr.bf16.mxu1 %v3375_v49  ;;  %1851 = vmatpush1.bf16.msra.mxu0 (!%p2304_p8), %v1834_v58 }
 0x335   : > { %1852 = vmatprep.subr.bf16.mxu0 (!%p2304_p8), %v1837_v42  ;;  %v1893_v42 = vsub.s32 (!%p2304_p8), 0, %v4371_v22 }
 0x337   : > { %2449 = vmatpush3.bf16.msra.mxu1 %v1684_v60 }
 0x338   : > { %1853 = vmatpush1.bf16.msra.mxu0 (!%p2304_p8), %v1836_v48  ;;  %v1910_v48 = vrot.slane (!%p2304_p8), %v1905_v11, %v1893_v42 }
 0x339   : > { %1854 = vmatprep.subr.bf16.mxu0 (!%p2304_p8), %v1839_v56 }
 0x33c   : > { %1855 = vmatpush1.bf16.msra.mxu0 (!%p2304_p8), %v1838_v57 }
 0x33d   : > { %1856 = vmatprep.subr.bf16.mxu0 (!%p2304_p8), %v1841_v25 }
 0x3ed   : > { %v1648_v54 = vpop.f32.mrb[0].mxu1 }
 0x3ee   : > { %v2432_v50 = vpop.f32.mrb[1].mxu1  ;;  %v1661_v53 = vmul.f32 %v2302_v51, %v1648_v54  ;;  %v1840_v51 = vunpack.c.h.s8.bf16 (!%p2304_p8), %v1826_v45 }
 0x3ef   : > { %v1651_v26 = vpop.f32.mrb[2].mxu1  ;;  %v1829_v50 = vld [vmem:[%s4663_s5 + $0x38] sm:$0xff] (!%p2304_p8) }
 0x3f0   : > { %v2433_v13 = vpop.f32.mrb[3].mxu1  ;;  %v1669_v6 = vadd.f32 %v2303_v61, %v1661_v53  ;;  %v1843_v53 = vunpack.c.l.s8.bf16 (!%p2304_p8), %v1829_v50  ;;  %v1828_v61 = vld [vmem:[%s4663_s5 + $0x30] sm:$0xff] (!%p2304_p8)  ;;  %1857 = vmatpush1.bf16.msra.mxu0 (!%p2304_p8), %v1840_v51 }
 0x3f2   : > { %1858 = vmatprep.subr.bf16.mxu0 (!%p2304_p8), %v1843_v53 }
 0x3fd   : > { %v1581_v0 = vpop.f32.mrb[0].mxu0 }
 0x3fe   : > { %v1594_v7 = vmul.f32 %v2299_v2, %v1581_v0  ;;  %v2420_v62 = vpop.f32.mrb[1].mxu0 }
 0x3ff   : > { %v1584_v24 = vpop.f32.mrb[2].mxu0  ;;  %v1845_v62 = vunpack.c.h.s8.bf16 (!%p2304_p8), %v1829_v50 }
 0x400   : > { %v1602_v28 = vadd.f32 %v2300_v12, %v1594_v7  ;;  %v2421_v1 = vpop.f32.mrb[3].mxu0  ;;  %v1842_v7 = vunpack.c.l.s8.bf16 (!%p2304_p8), %v1828_v61 }
 0x402   : > { %v1670_v8 = vpack.c.bf16 %v1669_v6, %v1602_v28  ;;  %1859 = vmatpush1.bf16.msra.mxu0 (!%p2304_p8), %v1842_v7 }
 0x403   : > { %1860 = vmatprep.subr.bf16.mxu0 (!%p2304_p8), %v1845_v62 }
 0x404   : > { %2451 = vmatmul.mubr.bf16.vlgmr.msra.gmra.mrb[4].mxu1 %v1670_v8 }
 0x4d6   : > { %1733 = sbr.rel (%p2304_p8) target bundleno = 1533 (0x5fd), region = 176 }
 0x4d7   : > { %v1719_v9 = vpop.f32.mrb[4].mxu1 }
 0x4d8   : > { %v1726_v29 = vadd.f32 %v1719_v9, %v1671_v3  ;;  %v2452_v31 = vpop.f32.mrb[5].mxu1  ;;  %v1844_v3 = vunpack.c.h.s8.bf16 (!%p2304_p8), %v1828_v61 }
 0x4d9   : > { %v1722_v27 = vpop.f32.mrb[6].mxu1 }
 0x4da   : > { %1728 = vst [vmem:[#allocation4] sm:$0xff] %v1726_v29  ;;  %v1727_v32 = vadd.f32 %v1722_v27, %v1672_v14  ;;  %v2453_v4 = vpop.f32.mrb[7].mxu1  ;;  %1861 = vmatpush1.bf16.msra.mxu0 (!%p2304_p8), %v1844_v3 }
 0x4dc   : > { %1729 = vst [vmem:[#allocation4 + $0x8] sm:$0xff] %v1727_v32 }
 0x4e1   : > { %v1734_v49 = vld [vmem:[#allocation4] sm:$0xff] }
 0x4e2   : > { %v1743_v55 = vmul.f32 %v2305_v23, %v1734_v49 }
 0x4e3   : > { %v1735_v21 = vld [vmem:[#allocation4 + $0x8] sm:$0xff] }
 0x4e4   : > { %v1744_v19 = vmul.f32 %v2305_v23, %v1735_v21  ;;  %v1752_v30 = vadd.f32 %v2306_v18, %v1743_v55  ;;  %v2309_v55 = vld [vmem:[#allocation29] ss:$0 sm:$0xff] }
 0x4e6   : > { %v1753_v36 = vadd.f32 %v2306_v18, %v1744_v19  ;;  %v1761_v59 = vmul.f32 %v2307_v41, %v1752_v30  ;;  %v2308_v18 = vld [vmem:[#allocation27] ss:$0 sm:$0xff] }
 0x4e8   : > { %v1796_v20 = vmul.f32 %v2307_v41, %v1753_v36  ;;  %v1762_v47 = vrot.slane %v1761_v59, 4 }
 0x4ea   : > { %v1797_v44 = vrot.slane %v1796_v20, 4  ;;  %v1763_v43 = vadd.f32 %v1762_v47, %v1761_v59  ;;  %v1889_v59 = vld [vmem:[%s4664_s28] sm:$0x3] }
 0x4eb   : > { %v1894_v47 = vrot.slane %v1889_v59, %v1893_v42 }
 0x4ec   : > { %v1798_v63 = vadd.f32 %v1797_v44, %v1796_v20  ;;  %v1764_v52 = vrot.slane %v1763_v43, 2  ;;  %v1897_v20 = vsub.s32 1, %v4371_v22 }
 0x4ee   : > { %v1799_v46 = vrot.slane %v1798_v63, 2  ;;  %v1765_v60 = vadd.f32 %v1764_v52, %v1763_v43  ;;  %v1898_v44 = vrot.slane %v1889_v59, %v1897_v20  ;;  %v1914_v45 = vrot.slane %v1905_v11, %v1897_v20 }
 0x4f0   : > { %v1800_v54 = vadd.f32 %v1799_v46, %v1798_v63  ;;  %v1766_v26 = vrot.slane %v1765_v60, 1 }
 0x4f2   : > { %v1801_v13 = vrot.slane %v1800_v54, 1  ;;  %v1767_v2 = vadd.f32 %v1766_v26, %v1765_v60 }
 0x4f4   : > { %v1802_v0 = vadd.f32 %v1801_v13, %v1800_v54  ;;  %v1768_v12 = vmul.f32 0.5, %v1767_v2 }
 0x4f6   : > { %v1803_v6 = vmul.f32 0.5, %v1802_v0  ;;  %v1769_v24 = vsub.f32 %v1752_v30, %v1768_v12 }
 0x4f8   : > { %v1804_v28 = vsub.f32 %v1753_v36, %v1803_v6  ;;  %v1770_v1 = vmul.f32 %v2307_v41, %v1769_v24 }
 0x4fa   : > { %v1805_v8 = vmul.f32 %v2307_v41, %v1804_v28  ;;  %v1771_v9 = vmul.f32 %v1770_v1, %v1770_v1 }
 0x4fc   : > { %v1806_v14 = vmul.f32 %v1805_v8, %v1805_v8  ;;  %v1772_v29 = vrot.slane %v1771_v9, 4 }
 0x4fe   : > { %v1807_v31 = vrot.slane %v1806_v14, 4  ;;  %v1773_v27 = vadd.f32 %v1772_v29, %v1771_v9 }
 0x500   : > { %v1808_v32 = vadd.f32 %v1807_v31, %v1806_v14  ;;  %v1774_v4 = vrot.slane %v1773_v27, 2 }
 0x502   : > { %v1809_v15 = vrot.slane %v1808_v32, 2  ;;  %v1775_v16 = vadd.f32 %v1774_v4, %v1773_v27 }
 0x504   : > { %v1810_v5 = vadd.f32 %v1809_v15, %v1808_v32  ;;  %v1776_v33 = vrot.slane %v1775_v16, 1 }
 0x506   : > { %v1811_v17 = vrot.slane %v1810_v5, 1  ;;  %v1777_v34 = vadd.f32 %v1776_v33, %v1775_v16 }
 0x508   : > { %v1812_v35 = vadd.f32 %v1811_v17, %v1810_v5  ;;  %v1778_v38 = vmul.f32 0.5, %v1777_v34 }
 0x50a   : > { %v1813_v49 = vmul.f32 0.5, %v1812_v35  ;;  %v1779_v21 = vadd.f32 1e-05, %v1778_v38 }
 0x50c   : > { %v1814_v23 = vadd.f32 1e-05, %v1813_v49  ;;  %2668 = vrsqrt.f32 %v1779_v21 }
 0x50e   : > { %2670 = vrsqrt.f32 %v1814_v23 }
 0x516   : > { %v2669_v39 = vpop.eup %2668 }
 0x517   : > { %v1781_v10 = vmul.f32 %v2669_v39, %v1769_v24 }
 0x518   : > { %v2671_v37 = vpop.eup %2670 }
 0x519   : > { %v1816_v19 = vmul.f32 %v2671_v37, %v1804_v28  ;;  %v1788_v30 = vmul.f32 %v2308_v18, %v1781_v10 }
 0x51b   : > { %v1817_v36 = vmul.f32 %v2308_v18, %v1816_v19  ;;  %v1795_v58 = vadd.f32 %v2309_v55, %v1788_v30 }
 0x51d   : > { %v1818_v40 = vadd.f32 %v2309_v55, %v1817_v36  ;;  %1819 = vst [vmem:[#allocation31] sm:$0xff] %v1795_v58 }
 0x51f   : > { %1820 = vst [vmem:[#allocation30] sm:$0xff] %v1818_v40  ;;  %v1821_v41 = vpack.c.bf16 %v1818_v40, %v1795_v58 }
 0x521   : > { %1879 = vmatmul.mubr.bf16.vlgmr.msra.gmra.mrb[0].mxu0 %v1821_v41 }
 0x5f4   : > { %v1880_v56 = vpop.f32.mrb[0].mxu0 }
 0x5f5   : > { %v1901_v43 = vmul.f32 %v1894_v47, %v1880_v56  ;;  %v1882_v63 = vpop.f32.mrb[1].mxu0 }
 0x5f6   : > { %v1902_v52 = vmul.f32 %v1898_v44, %v1882_v63  ;;  %v1884_v46 = vpop.f32.mrb[2].mxu0 }
 0x5f7   : > { %v1917_v57 = vadd.f32 %v1910_v48, %v1901_v43  ;;  %v1903_v25 = vmul.f32 %v1894_v47, %v1884_v46  ;;  %v1886_v60 = vpop.f32.mrb[3].mxu0 }
 0x5f8   : > { %v1918_v54 = vadd.f32 %v1914_v45, %v1902_v52  ;;  %v1904_v50 = vmul.f32 %v1898_v44, %v1886_v60 }
 0x5f9   : > { %1921 = vst [vmem:[#allocation34] sm:$0xff] %v1917_v57  ;;  %v1919_v22 = vadd.f32 %v1910_v48, %v1903_v25 }
 0x5fa   : > { %1922 = vst [vmem:[#allocation34 + $0x8] sm:$0xff] %v1918_v54  ;;  %v1920_v26 = vadd.f32 %v1914_v45, %v1904_v50 }
 0x5fb   : > { %1923 = vst [vmem:[#allocation33] sm:$0xff] %v1919_v22 }
 0x5fc   : > { %1924 = vst [vmem:[#allocation33 + $0x8] sm:$0xff] %v1920_v26 }
 0x5fd PF: > { %s4666_s9 = sld [smem:[#allocation51_spill]]  ;;  %s3379_s4 = smov [#allocation31]  }
 0x5fe   : > { %s1943_s27 = sshll.u32 %s3379_s4, 4  ;;  %s3380_s29 = smov [#allocation30]   ;;  %s1944_s27 = int_to_ptr.vmem [resolvable:$true] %s1943_s27 }
 0x5ff   : > { %s1932_s10 = sshll.u32 %s3380_s29, 4  ;;  %s3162_s30 = scalar_lea.vmem %s1944_s27, 128  ;;  %s1933_s10 = int_to_ptr.vmem [resolvable:$true] %s1932_s10 }
 0x600   : > { %p3163_p7 = scmp.ne.s32.totalorder %s1944_s27, %s3162_s30  ;;  %p3169_p4 = scmp.lt.s32.totalorder %s1944_s27, %s1944_s27 }
 0x601   : > { %p3170_p3 = scmp.lt.s32.totalorder %s3162_s30, %s3162_s30 }
 0x603   : > { %p2598_p9 = scmp.eq.s32.totalorder %s4666_s9, 1  ;;  %p3171_p13 = por %p3170_p3, %p3169_p4 }
 0x605   : > { %p3164_p5 = pnand %p3163_p7, %p2598_p9 }
 0x607   : > { %p3165_p2 = pneg %p3164_p5 }
 0x609   : > { %p3172_p1 = pnand %p3171_p13, %p3165_p2 }
 0x60b   : > { %3175 = shalt.err (!%p3172_p1)
}
 0x60c   : > { %s4667_s18 = sld [smem:[#allocation73_spill]] }
 0x612   : > { %s3176_s12 = scalar_lea.hbm %s4667_s18, 128 }
 0x613   : > { %p3177_p11 = scmp.ne.s32.totalorder %s4667_s18, %s3176_s12  ;;  %p3182_p10 = scmp.lt.u32.totalorder %s3176_s12, %s4667_s18 }
 0x615   : > { %p3178_p0 = pnand %p3177_p11, %p2598_p9 }
 0x617   : > { %p3179_p12 = pneg %p3178_p0 }
 0x619   : > { %p3184_p6 = pnand %p3182_p10, %p3179_p12 }
 0x61b   : > { %3187 = shalt.err (!%p3184_p6)
}
 0x61c   : > { %2511 = dma.vmem_to_hbm [thread:$0]  (%p2598_p9), %s1944_s27, 128, %s4667_s18, [#allocation32]  }
 0x61d   : > { %s3188_s7 = scalar_lea.vmem %s1933_s10, 128  ;;  %p3195_p2 = scmp.lt.s32.totalorder %s1933_s10, %s1933_s10 }
 0x61e   : > { %p3189_p8 = scmp.ne.s32.totalorder %s1933_s10, %s3188_s7  ;;  %p3196_p4 = scmp.lt.s32.totalorder %s3188_s7, %s3188_s7 }
 0x620   : > { %p3190_p7 = pnand %p3189_p8, %p2598_p9  ;;  %p3197_p3 = por %p3196_p4, %p3195_p2 }
 0x622   : > { %p3191_p5 = pneg %p3190_p7 }
 0x624   : > { %p3198_p13 = pnand %p3197_p3, %p3191_p5 }
 0x626   : > { %3201 = shalt.err (!%p3198_p13)
}
 0x627   : > { %s4668_s2 = sld [smem:[#allocation72_spill]] }
 0x62d   : > { %s3202_s25 = scalar_lea.hbm %s4668_s2, 128 }
 0x62e   : > { %p3203_p1 = scmp.ne.s32.totalorder %s4668_s2, %s3202_s25  ;;  %p3208_p12 = scmp.lt.u32.totalorder %s3202_s25, %s4668_s2 }
 0x630   : > { %p3204_p11 = pnand %p3203_p1, %p2598_p9 }
 0x632   : > { %p3205_p0 = pneg %p3204_p11 }
 0x634   : > { %p3210_p10 = pnand %p3208_p12, %p3205_p0 }
 0x636   : > { %3213 = shalt.err (!%p3210_p10)
}
 0x637   : > { %2509 = dma.vmem_to_hbm [thread:$0]  (%p2598_p9), %s1933_s10, 128, %s4668_s2, [#allocation7]  }
 0x638   : > { %s3381_s22 = smov [#allocation33]   ;;  %s3382_s15 = smov [#allocation34]  }
 0x639   : > { %s1954_s12 = sshll.u32 %s3381_s22, 4  ;;  %s1965_s23 = sshll.u32 %s3382_s15, 4  ;;  %s1955_s12 = int_to_ptr.vmem [resolvable:$true] %s1954_s12  ;;  %s1966_s23 = int_to_ptr.vmem [resolvable:$true] %s1965_s23 }
 0x63a   : > { %s3214_s17 = scalar_lea.vmem %s1955_s12, 256  ;;  %p3221_p5 = scmp.lt.s32.totalorder %s1955_s12, %s1955_s12 }
 0x63b   : > { %p3215_p6 = scmp.ne.s32.totalorder %s1955_s12, %s3214_s17  ;;  %p3222_p2 = scmp.lt.s32.totalorder %s3214_s17, %s3214_s17 }
 0x63d   : > { %p3216_p8 = pnand %p3215_p6, %p2598_p9  ;;  %p3223_p4 = por %p3222_p2, %p3221_p5 }
 0x63f   : > { %p3217_p7 = pneg %p3216_p8 }
 0x641   : > { %p3224_p3 = pnand %p3223_p4, %p3217_p7 }
 0x643   : > { %3227 = shalt.err (!%p3224_p3)
}
 0x644   : > { %s4669_s24 = sld [smem:[#allocation74_spill]] }
 0x64a   : > { %s4670_s7 = smov %s4669_s24  ;;  %s3228_s10 = scalar_lea.hbm %s4669_s24, 256 }
 0x64b   : > { %p3229_p13 = scmp.ne.s32.totalorder %s4670_s7, %s3228_s10  ;;  %p3234_p0 = scmp.lt.u32.totalorder %s3228_s10, %s4670_s7 }
 0x64d   : > { %p3230_p1 = pnand %p3229_p13, %p2598_p9 }
 0x64f   : > { %p3231_p11 = pneg %p3230_p1 }
 0x651   : > { %p3236_p12 = pnand %p3234_p0, %p3231_p11 }
 0x653   : > { %3239 = shalt.err (!%p3236_p12)
}
 0x654   : > { %2513 = dma.vmem_to_hbm [thread:$0]  (%p2598_p9), %s1955_s12, 256, %s4670_s7, [#allocation32]  }
 0x655   : > { %s3240_s29 = scalar_lea.vmem %s1966_s23, 256  ;;  %p3247_p7 = scmp.lt.s32.totalorder %s1966_s23, %s1966_s23 }
 0x656   : > { %p3241_p10 = scmp.ne.s32.totalorder %s1966_s23, %s3240_s29  ;;  %p3248_p5 = scmp.lt.s32.totalorder %s3240_s29, %s3240_s29 }
 0x658   : > { %p3242_p6 = pnand %p3241_p10, %p2598_p9  ;;  %p3249_p2 = por %p3248_p5, %p3247_p7 }
 0x65a   : > { %p3243_p8 = pneg %p3242_p6 }
 0x65c   : > { %p3250_p4 = pnand %p3249_p2, %p3243_p8 }
 0x65e   : > { %3253 = shalt.err (!%p3250_p4)
}
 0x65f   : > { %s4671_s22 = sld [smem:[#allocation75_spill]] }
 0x665   : > { %s3254_s15 = scalar_lea.hbm %s4671_s22, 256 }
 0x666   : > { %p3255_p3 = scmp.ne.s32.totalorder %s4671_s22, %s3254_s15  ;;  %p3260_p11 = scmp.lt.u32.totalorder %s3254_s15, %s4671_s22 }
 0x668   : > { %p3256_p13 = pnand %p3255_p3, %p2598_p9 }
 0x66a   : > { %p3257_p1 = pneg %p3256_p13 }
 0x66c   : > { %p3262_p0 = pnand %p3260_p11, %p3257_p1 }
 0x66e   : > { %3265 = shalt.err (!%p3262_p0)
}
 0x66f   : > { %2515 = dma.vmem_to_hbm [thread:$0]  (%p2598_p9), %s1966_s23, 256, %s4671_s22, [#allocation35]  }
 0x670   : > { %3323 = dma.done.wait (%p2598_p9), [#allocation7], 128  }
 0x671   : > { %3325 = vsyncadd (%p2598_p9), [#allocation7], 4294967168 }
 0x672   : > { %3327 = dma.done.wait (%p2598_p9), [#allocation32], 384  }
 0x673   : > { %3329 = vsyncadd (%p2598_p9), [#allocation32], 4294966912 }
 0x674   : > { %3331 = dma.done.wait (%p2598_p9), [#allocation35], 256  }
 0x675   : > { %3333 = vsyncadd (%p2598_p9), [#allocation35], 4294967040 }
 0x676 PF: > { %s4672_s25 = sld [smem:[#allocation53_spill]]  ;;  %s4673_s4 = sld [smem:[#allocation49_spill]] }
 0x677   : > { %s4674_s30 = sld [smem:[#allocation50_spill]]  ;;  %s4675_s24 = sld [smem:[#allocation54_spill]] }
 0x67c   : > { %p45_p12 = scmp.ge.s32.totalorder %s4672_s25, 4  }
 0x67e   :  { %47 = sbr.rel (!%p45_p12) target bundleno = 34 (0x22), region = 278 }
 0x685   :  { %1990 = vsyncpa [#allocation6], 1 }
 0x686   :  { %1992 = vsyncpa [#allocation6 + $0x1], 1 }
 0x687   :  { %1993 = vsyncpa [#allocation9], 1 }
 0x688   :  { %1994 = vsyncpa [#allocation12], 1 }
 0x689   :  { %1995 = vsyncpa [#allocation19], 1 }
 0x68a   :  { %1997 = vsyncpa [#allocation19 + $0x1], 1 }
 0x68b   :  { %1998 = vsyncpa [#allocation22], 1 }
 0x68c   :  { %2000 = vsyncpa [#allocation22 + $0x1], 1 }
 0x68d   :  { %2001 = vsyncpa [#allocation25], 1 }
 0x68e   :  { %2002 = vsyncpa [#allocation28], 1 }
 0x68f   :  { %2003 = vsyncpa [#allocation7], 1 }
 0x690   :  { %2005 = vsyncpa [#allocation7 + $0x1], 1 }
 0x691   :  { %2006 = vsyncpa [#allocation32], 1 }
 0x692   :  { %2007 = vsyncpa [#allocation35], 1 }

</bundles_post_ra>
